<compile_context>
chip_gen: v7x
topology: tpu7x:2x2x1
jax: 0.10.0
libtpu: 0.0.40
codegen_flags: <defaults>
</compile_context>

<pallas_src>
import functools

import jax
import jax.numpy as jnp
from jax.experimental import pallas as pl
from jax.experimental.pallas import tpu as pltpu


# ------------------------------ helpers -----------------------------------

def _round_up(v, m):
    return ((v + m - 1) // m) * m


def _pick_tm(m_rows):
    """Row-tile size: >=2 grid steps when possible, sublane/bf16 friendly."""
    if m_rows <= 64:
        return m_rows                       # single full block (== full dim)
    return min(512, _round_up(pl.cdiv(m_rows, 2), 64))


def _im2col(x, k, s, p):
    """NHWC im2col (XLA glue, bf16). Returns ((B*OH*OW, k*k*C), OH, OW)."""
    B, H, W, C = x.shape
    OH = (H + 2 * p - k) // s + 1
    OW = (W + 2 * p - k) // s + 1
    xp = jnp.pad(x, ((0, 0), (p, p), (p, p), (0, 0)))
    taps = [xp[:, dh:dh + s * (OH - 1) + 1:s, dw:dw + s * (OW - 1) + 1:s, :]
            for dh in range(k) for dw in range(k)]
    pat = jnp.concatenate(taps, axis=-1)    # (B, OH, OW, k*k*C)
    return pat.reshape(B * OH * OW, k * k * C), OH, OW


# ----------------------------- Pallas kernels -----------------------------

def _matmul_bias_act_kernel(pat_ref, w_ref, b_ref, o_ref, *, relu):
    """(TM, K) @ (K, Cout) + b  [+ ReLU]; bf16 operands, f32 accumulate."""
    y = jnp.dot(pat_ref[...], w_ref[...], preferred_element_type=jnp.float32)
    y = y + b_ref[...]
    if relu:
        y = jnp.maximum(y, 0.0)
    o_ref[...] = y.astype(o_ref.dtype)


def _conv_matmul(pat, wm, b, *, relu=True, out_dtype=jnp.bfloat16):
    """One fused im2col matmul for a conv layer, batch folded into M."""
    M, K = pat.shape
    Cout = wm.shape[1]
    tm = _pick_tm(M)
    return pl.pallas_call(
        functools.partial(_matmul_bias_act_kernel, relu=relu),
        out_shape=jax.ShapeDtypeStruct((M, Cout), out_dtype),
        grid=(pl.cdiv(M, tm),),
        in_specs=[
            pl.BlockSpec((tm, K), lambda i: (i, 0)),
            pl.BlockSpec((K, Cout), lambda i: (0, 0)),   # constant block: DMA'd once
            pl.BlockSpec((1, Cout), lambda i: (0, 0)),
        ],
        out_specs=pl.BlockSpec((tm, Cout), lambda i: (i, 0)),
        compiler_params=pltpu.CompilerParams(
            dimension_semantics=("parallel",)),
    )(pat, wm, b)


def _mlp_head_kernel(h_ref, w1_ref, b1_ref, w2_ref, b2_ref, o_ref):
    """Fused head: relu(h @ W1 + b1) @ W2 + b2, both weights VMEM-resident."""
    h = h_ref[0]                                                    # (TB, 3136)
    z1 = jnp.dot(h, w1_ref[...], preferred_element_type=jnp.float32)
    z1 = jnp.maximum(z1 + b1_ref[...], 0.0)
    z2 = jnp.dot(z1.astype(w2_ref.dtype), w2_ref[...],
                 preferred_element_type=jnp.float32)
    o_ref[0] = (z2 + b2_ref[...]).astype(o_ref.dtype)


def _mlp_head(h3, w1, b1, w2, b2):
    """h3: (G, TB, K) bf16 -> (G, TB, N) f32; grid over G batch groups."""
    G, TB, K = h3.shape
    H1 = w1.shape[1]
    N = w2.shape[1]
    return pl.pallas_call(
        _mlp_head_kernel,
        out_shape=jax.ShapeDtypeStruct((G, TB, N), jnp.float32),
        grid=(G,),
        in_specs=[
            pl.BlockSpec((1, TB, K), lambda i: (i, 0, 0)),
            pl.BlockSpec((K, H1), lambda i: (0, 0)),
            pl.BlockSpec((1, H1), lambda i: (0, 0)),
            pl.BlockSpec((H1, N), lambda i: (0, 0)),
            pl.BlockSpec((1, N), lambda i: (0, 0)),
        ],
        out_specs=pl.BlockSpec((1, TB, N), lambda i: (i, 0, 0)),
        compiler_params=pltpu.CompilerParams(
            dimension_semantics=("parallel",)),
    )(h3, w1, b1, w2, b2)


# ----------------------------- parameters ---------------------------------

def init_encoder_params(key, num_channels, latent_dim):
    """Parameters in PyTorch layouts: conv (Cout,Cin,k,k), linear (out,in)."""
    ks = jax.random.split(key, 12)

    def u(k, shape, fan_in):
        lim = 1.0 / jnp.sqrt(float(fan_in))
        return jax.random.uniform(k, shape, jnp.float32, -lim, lim)

    return {
        "c1_w": u(ks[0], (32, num_channels, 4, 4), num_channels * 16),
        "c1_b": u(ks[1], (32,), num_channels * 16),
        "c2_w": u(ks[2], (32, 32, 2, 2), 32 * 4),
        "c2_b": u(ks[3], (32,), 32 * 4),
        "c3_w": u(ks[4], (64, 32, 2, 2), 32 * 4),
        "c3_b": u(ks[5], (64,), 32 * 4),
        "c4_w": u(ks[6], (64, 64, 2, 2), 64 * 4),
        "c4_b": u(ks[7], (64,), 64 * 4),
        "d1_w": u(ks[8], (256, 3136), 3136),
        "d1_b": u(ks[9], (256,), 3136),
        "d2_w": u(ks[10], (2 * latent_dim, 256), 256),
        "d2_b": u(ks[11], (2 * latent_dim,), 256),
    }


def prepare_params(params):
    """One-time weight re-layout (hoisted out of the forward path).

    conv:   (Cout,Cin,k,k) -> (k*k*Cin, Cout) bf16, rows in (dh,dw,ci) order
            matching the im2col tap concatenation.
    dense1: rows permuted from NCHW flatten order (c*49+p) to NHWC flatten
            order (p*64+c), stored as (3136, 256) bf16.
    dense2: transposed to (256, 2*latent) bf16. Biases stay f32 as (1, C).
    """
    cdt = jnp.bfloat16

    def conv_w(w):
        co, ci, kh, kw = w.shape
        return jnp.transpose(w, (2, 3, 1, 0)).reshape(kh * kw * ci, co).astype(cdt)

    d1 = (jnp.transpose(params["d1_w"])          # (3136, 256), rows c*49+p
          .reshape(64, 49, 256)
          .transpose(1, 0, 2)
          .reshape(3136, 256)                    # rows now p*64+c (NHWC order)
          .astype(cdt))

    return {
        "c1_w": conv_w(params["c1_w"]), "c1_b": params["c1_b"].reshape(1, -1),
        "c2_w": conv_w(params["c2_w"]), "c2_b": params["c2_b"].reshape(1, -1),
        "c3_w": conv_w(params["c3_w"]), "c3_b": params["c3_b"].reshape(1, -1),
        "c4_w": conv_w(params["c4_w"]), "c4_b": params["c4_b"].reshape(1, -1),
        "d1_w": d1, "d1_b": params["d1_b"].reshape(1, -1),
        "d2_w": jnp.transpose(params["d2_w"]).astype(cdt),
        "d2_b": params["d2_b"].reshape(1, -1),
    }


# ------------------------------ forward ------------------------------------

def encoder_forward(prep, x):
    """x: (B, num_channels, 84, 84) NCHW f32 -> (B, 2*latent_dim) f32,
    matching Encoder.forward (returns the dense_means_logVar output)."""
    B = x.shape[0]
    x = jnp.transpose(x, (0, 2, 3, 1)).astype(jnp.bfloat16)      # NHWC bf16

    pat, OH, OW = _im2col(x, 4, 2, 1)                            # K = 16*C
    h = _conv_matmul(pat, prep["c1_w"], prep["c1_b"]).reshape(B, OH, OW, 32)

    pat, OH, OW = _im2col(h, 2, 2, 1)                            # K = 128
    h = _conv_matmul(pat, prep["c2_w"], prep["c2_b"]).reshape(B, OH, OW, 32)

    pat, OH, OW = _im2col(h, 2, 2, 1)                            # K = 128
    h = _conv_matmul(pat, prep["c3_w"], prep["c3_b"]).reshape(B, OH, OW, 64)

    pat, OH, OW = _im2col(h, 2, 2, 1)                            # K = 256
    h4 = _conv_matmul(pat, prep["c4_w"], prep["c4_b"])           # (B*49, 64) bf16

    # NHWC flatten (row-major: index = p*64 + c) matches the pre-permuted d1_w.
    G = 2 if (B % 2 == 0 and B >= 2) else 1                      # >=2 parallel steps
    TB = B // G
    h4 = h4.reshape(G, TB, -1)                                   # (G, TB, 3136)

    out = _mlp_head(h4, prep["d1_w"], prep["d1_b"], prep["d2_w"], prep["d2_b"])
    return out.reshape(B, -1)

# TODO(synk): Encoder.reparameterize (torch.randn_like sampling) is not part of
# forward() and is therefore not implemented here.


# --------------------------------- main -------------------------------------

if __name__ == "__main__":
    num_channels = 4
    latent_dim = 32
    batch = 2  # spatial must be 84x84 so that Flatten -> 3136 matches dense1

    key = jax.random.PRNGKey(0)
    pkey, xkey = jax.random.split(key)
    params = init_encoder_params(pkey, num_channels, latent_dim)
    prep = jax.tree_util.tree_map(jax.block_until_ready, prepare_params(params))
    x = jax.random.normal(xkey, (batch, num_channels, 84, 84), jnp.float32)

    fwd = jax.jit(encoder_forward)
    out = jax.block_until_ready(fwd(prep, x))

    assert out.shape == (batch, 2 * latent_dim), out.shape
    assert out.dtype == jnp.float32
    assert bool(jnp.all(jnp.isfinite(out)))
    print("KERNEL_OK")
</pallas_src>

<mosaic_0001>
module attributes {stable_mosaic.version = 11 : i64} {
  func.func @_matmul_bias_act_kernel(%arg0: i32, %arg1: memref<512x64xbf16, #tpu.memory_space<vmem>>, %arg2: memref<64x32xbf16, #tpu.memory_space<vmem>>, %arg3: memref<1x32xf32, #tpu.memory_space<vmem>>, %arg4: memref<512x32xbf16, #tpu.memory_space<vmem>>) attributes {dimension_semantics = [#tpu.dimension_semantics<parallel>], iteration_bounds = array<i64: 7>, scalar_prefetch = 0 : i64, scratch_operands = 0 : i64, tpu.core_type = #tpu.core_type<tc>, window_params = [{transform_indices = @transform_0, window_bounds = array<i64: 512, 64>}, {pipeline_mode = #tpu.pipeline_mode<synchronous>, transform_indices = @transform_1, window_bounds = array<i64: 64, 32>}, {pipeline_mode = #tpu.pipeline_mode<synchronous>, transform_indices = @transform_2, window_bounds = array<i64: 1, 32>}, {transform_indices = @transform_3, window_bounds = array<i64: 512, 32>}]} {
    %c0 = arith.constant 0 : index
    %c0_0 = arith.constant 0 : index
    %0 = vector.load %arg1[%c0, %c0_0] : memref<512x64xbf16, #tpu.memory_space<vmem>>, vector<512x64xbf16>
    %c0_1 = arith.constant 0 : index
    %c0_2 = arith.constant 0 : index
    %1 = vector.load %arg2[%c0_1, %c0_2] : memref<64x32xbf16, #tpu.memory_space<vmem>>, vector<64x32xbf16>
    %cst = arith.constant dense<0.000000e+00> : vector<512x32xf32>
    %2 = tpu.matmul %0, %1, %cst {dimension_numbers = #tpu.dot_dimension_numbers<[1], [0], [0], [1], [0, 0, 1, 1], [], []>} : vector<512x64xbf16>, vector<64x32xbf16>, vector<512x32xf32> -> vector<512x32xf32>
    %c0_3 = arith.constant 0 : index
    %c0_4 = arith.constant 0 : index
    %3 = vector.load %arg3[%c0_3, %c0_4] : memref<1x32xf32, #tpu.memory_space<vmem>>, vector<1x32xf32>
    %4 = vector.broadcast %3 : vector<1x32xf32> to vector<512x32xf32>
    %5 = arith.addf %2, %4 : vector<512x32xf32>
    %cst_5 = arith.constant 0.000000e+00 : f32
    %6 = vector.broadcast %cst_5 : f32 to vector<512x32xf32>
    %7 = arith.maximumf %5, %6 : vector<512x32xf32>
    %8 = arith.truncf %7 : vector<512x32xf32> to vector<512x32xbf16>
    %c0_6 = arith.constant 0 : index
    %c0_7 = arith.constant 0 : index
    %9 = vector.load %arg4[%c0_6, %c0_7] : memref<512x32xbf16, #tpu.memory_space<vmem>>, vector<512x32xbf16>
    tpu.vector_store %arg4[%c0_6, %c0_7], %8 {strides = array<i32>} : memref<512x32xbf16, #tpu.memory_space<vmem>>, vector<512x32xbf16>,
    return
  }
  func.func @transform_0(%arg0: i32) -> (i32, i32) {
    %c0_i32 = arith.constant 0 : i32
    %c0_i32_0 = arith.constant 0 : i32
    return %arg0, %c0_i32 : i32, i32
  }
  func.func @transform_1(%arg0: i32) -> (i32, i32) {
    %c0_i32 = arith.constant 0 : i32
    %c0_i32_0 = arith.constant 0 : i32
    %c0_i32_1 = arith.constant 0 : i32
    return %c0_i32, %c0_i32_0 : i32, i32
  }
  func.func @transform_2(%arg0: i32) -> (i32, i32) {
    %c0_i32 = arith.constant 0 : i32
    %c0_i32_0 = arith.constant 0 : i32
    %c0_i32_1 = arith.constant 0 : i32
    return %c0_i32, %c0_i32_0 : i32, i32
  }
  func.func @transform_3(%arg0: i32) -> (i32, i32) {
    %c0_i32 = arith.constant 0 : i32
    %c0_i32_0 = arith.constant 0 : i32
    return %arg0, %c0_i32 : i32, i32
  }
}

module attributes {stable_mosaic.version = 11 : i64} {
  func.func @_matmul_bias_act_kernel(%arg0: i32, %arg1: memref<512x128xbf16, #tpu.memory_space<vmem>>, %arg2: memref<128x32xbf16, #tpu.memory_space<vmem>>, %arg3: memref<1x32xf32, #tpu.memory_space<vmem>>, %arg4: memref<512x32xbf16, #tpu.memory_space<vmem>>) attributes {dimension_semantics = [#tpu.dimension_semantics<parallel>], iteration_bounds = array<i64: 2>, scalar_prefetch = 0 : i64, scratch_operands = 0 : i64, tpu.core_type = #tpu.core_type<tc>, window_params = [{transform_indices = @transform_0, window_bounds = array<i64: 512, 128>}, {pipeline_mode = #tpu.pipeline_mode<synchronous>, transform_indices = @transform_1, window_bounds = array<i64: 128, 32>}, {pipeline_mode = #tpu.pipeline_mode<synchronous>, transform_indices = @transform_2, window_bounds = array<i64: 1, 32>}, {transform_indices = @transform_3, window_bounds = array<i64: 512, 32>}]} {
    %c0 = arith.constant 0 : index
    %c0_0 = arith.constant 0 : index
    %0 = vector.load %arg1[%c0, %c0_0] : memref<512x128xbf16, #tpu.memory_space<vmem>>, vector<512x128xbf16>
    %c0_1 = arith.constant 0 : index
    %c0_2 = arith.constant 0 : index
    %1 = vector.load %arg2[%c0_1, %c0_2] : memref<128x32xbf16, #tpu.memory_space<vmem>>, vector<128x32xbf16>
    %cst = arith.constant dense<0.000000e+00> : vector<512x32xf32>
    %2 = tpu.matmul %0, %1, %cst {dimension_numbers = #tpu.dot_dimension_numbers<[1], [0], [0], [1], [0, 0, 1, 1], [], []>} : vector<512x128xbf16>, vector<128x32xbf16>, vector<512x32xf32> -> vector<512x32xf32>
    %c0_3 = arith.constant 0 : index
    %c0_4 = arith.constant 0 : index
    %3 = vector.load %arg3[%c0_3, %c0_4] : memref<1x32xf32, #tpu.memory_space<vmem>>, vector<1x32xf32>
    %4 = vector.broadcast %3 : vector<1x32xf32> to vector<512x32xf32>
    %5 = arith.addf %2, %4 : vector<512x32xf32>
    %cst_5 = arith.constant 0.000000e+00 : f32
    %6 = vector.broadcast %cst_5 : f32 to vector<512x32xf32>
    %7 = arith.maximumf %5, %6 : vector<512x32xf32>
    %8 = arith.truncf %7 : vector<512x32xf32> to vector<512x32xbf16>
    %c0_6 = arith.constant 0 : index
    %c0_7 = arith.constant 0 : index
    %9 = vector.load %arg4[%c0_6, %c0_7] : memref<512x32xbf16, #tpu.memory_space<vmem>>, vector<512x32xbf16>
    tpu.vector_store %arg4[%c0_6, %c0_7], %8 {strides = array<i32>} : memref<512x32xbf16, #tpu.memory_space<vmem>>, vector<512x32xbf16>,
    return
  }
  func.func @transform_0(%arg0: i32) -> (i32, i32) {
    %c0_i32 = arith.constant 0 : i32
    %c0_i32_0 = arith.constant 0 : i32
    return %arg0, %c0_i32 : i32, i32
  }
  func.func @transform_1(%arg0: i32) -> (i32, i32) {
    %c0_i32 = arith.constant 0 : i32
    %c0_i32_0 = arith.constant 0 : i32
    %c0_i32_1 = arith.constant 0 : i32
    return %c0_i32, %c0_i32_0 : i32, i32
  }
  func.func @transform_2(%arg0: i32) -> (i32, i32) {
    %c0_i32 = arith.constant 0 : i32
    %c0_i32_0 = arith.constant 0 : i32
    %c0_i32_1 = arith.constant 0 : i32
    return %c0_i32, %c0_i32_0 : i32, i32
  }
  func.func @transform_3(%arg0: i32) -> (i32, i32) {
    %c0_i32 = arith.constant 0 : i32
    %c0_i32_0 = arith.constant 0 : i32
    return %arg0, %c0_i32 : i32, i32
  }
}

module attributes {stable_mosaic.version = 11 : i64} {
  func.func @_matmul_bias_act_kernel(%arg0: i32, %arg1: memref<192x128xbf16, #tpu.memory_space<vmem>>, %arg2: memref<128x64xbf16, #tpu.memory_space<vmem>>, %arg3: memref<1x64xf32, #tpu.memory_space<vmem>>, %arg4: memref<192x64xbf16, #tpu.memory_space<vmem>>) attributes {dimension_semantics = [#tpu.dimension_semantics<parallel>], iteration_bounds = array<i64: 2>, scalar_prefetch = 0 : i64, scratch_operands = 0 : i64, tpu.core_type = #tpu.core_type<tc>, window_params = [{transform_indices = @transform_0, window_bounds = array<i64: 192, 128>}, {pipeline_mode = #tpu.pipeline_mode<synchronous>, transform_indices = @transform_1, window_bounds = array<i64: 128, 64>}, {pipeline_mode = #tpu.pipeline_mode<synchronous>, transform_indices = @transform_2, window_bounds = array<i64: 1, 64>}, {transform_indices = @transform_3, window_bounds = array<i64: 192, 64>}]} {
    %c0 = arith.constant 0 : index
    %c0_0 = arith.constant 0 : index
    %0 = vector.load %arg1[%c0, %c0_0] : memref<192x128xbf16, #tpu.memory_space<vmem>>, vector<192x128xbf16>
    %c0_1 = arith.constant 0 : index
    %c0_2 = arith.constant 0 : index
    %1 = vector.load %arg2[%c0_1, %c0_2] : memref<128x64xbf16, #tpu.memory_space<vmem>>, vector<128x64xbf16>
    %cst = arith.constant dense<0.000000e+00> : vector<192x64xf32>
    %2 = tpu.matmul %0, %1, %cst {dimension_numbers = #tpu.dot_dimension_numbers<[1], [0], [0], [1], [0, 0, 1, 1], [], []>} : vector<192x128xbf16>, vector<128x64xbf16>, vector<192x64xf32> -> vector<192x64xf32>
    %c0_3 = arith.constant 0 : index
    %c0_4 = arith.constant 0 : index
    %3 = vector.load %arg3[%c0_3, %c0_4] : memref<1x64xf32, #tpu.memory_space<vmem>>, vector<1x64xf32>
    %4 = vector.broadcast %3 : vector<1x64xf32> to vector<192x64xf32>
    %5 = arith.addf %2, %4 : vector<192x64xf32>
    %cst_5 = arith.constant 0.000000e+00 : f32
    %6 = vector.broadcast %cst_5 : f32 to vector<192x64xf32>
    %7 = arith.maximumf %5, %6 : vector<192x64xf32>
    %8 = arith.truncf %7 : vector<192x64xf32> to vector<192x64xbf16>
    %c0_6 = arith.constant 0 : index
    %c0_7 = arith.constant 0 : index
    %9 = vector.load %arg4[%c0_6, %c0_7] : memref<192x64xbf16, #tpu.memory_space<vmem>>, vector<192x64xbf16>
    tpu.vector_store %arg4[%c0_6, %c0_7], %8 {strides = array<i32>} : memref<192x64xbf16, #tpu.memory_space<vmem>>, vector<192x64xbf16>,
    return
  }
  func.func @transform_0(%arg0: i32) -> (i32, i32) {
    %c0_i32 = arith.constant 0 : i32
    %c0_i32_0 = arith.constant 0 : i32
    return %arg0, %c0_i32 : i32, i32
  }
  func.func @transform_1(%arg0: i32) -> (i32, i32) {
    %c0_i32 = arith.constant 0 : i32
    %c0_i32_0 = arith.constant 0 : i32
    %c0_i32_1 = arith.constant 0 : i32
    return %c0_i32, %c0_i32_0 : i32, i32
  }
  func.func @transform_2(%arg0: i32) -> (i32, i32) {
    %c0_i32 = arith.constant 0 : i32
    %c0_i32_0 = arith.constant 0 : i32
    %c0_i32_1 = arith.constant 0 : i32
    return %c0_i32, %c0_i32_0 : i32, i32
  }
  func.func @transform_3(%arg0: i32) -> (i32, i32) {
    %c0_i32 = arith.constant 0 : i32
    %c0_i32_0 = arith.constant 0 : i32
    return %arg0, %c0_i32 : i32, i32
  }
}

module attributes {stable_mosaic.version = 11 : i64} {
  func.func @_matmul_bias_act_kernel(%arg0: i32, %arg1: memref<64x256xbf16, #tpu.memory_space<vmem>>, %arg2: memref<256x64xbf16, #tpu.memory_space<vmem>>, %arg3: memref<1x64xf32, #tpu.memory_space<vmem>>, %arg4: memref<64x64xbf16, #tpu.memory_space<vmem>>) attributes {dimension_semantics = [#tpu.dimension_semantics<parallel>], iteration_bounds = array<i64: 2>, scalar_prefetch = 0 : i64, scratch_operands = 0 : i64, tpu.core_type = #tpu.core_type<tc>, window_params = [{transform_indices = @transform_0, window_bounds = array<i64: 64, 256>}, {pipeline_mode = #tpu.pipeline_mode<synchronous>, transform_indices = @transform_1, window_bounds = array<i64: 256, 64>}, {pipeline_mode = #tpu.pipeline_mode<synchronous>, transform_indices = @transform_2, window_bounds = array<i64: 1, 64>}, {transform_indices = @transform_3, window_bounds = array<i64: 64, 64>}]} {
    %c0 = arith.constant 0 : index
    %c0_0 = arith.constant 0 : index
    %0 = vector.load %arg1[%c0, %c0_0] : memref<64x256xbf16, #tpu.memory_space<vmem>>, vector<64x256xbf16>
    %c0_1 = arith.constant 0 : index
    %c0_2 = arith.constant 0 : index
    %1 = vector.load %arg2[%c0_1, %c0_2] : memref<256x64xbf16, #tpu.memory_space<vmem>>, vector<256x64xbf16>
    %cst = arith.constant dense<0.000000e+00> : vector<64x64xf32>
    %2 = tpu.matmul %0, %1, %cst {dimension_numbers = #tpu.dot_dimension_numbers<[1], [0], [0], [1], [0, 0, 1, 1], [], []>} : vector<64x256xbf16>, vector<256x64xbf16>, vector<64x64xf32> -> vector<64x64xf32>
    %c0_3 = arith.constant 0 : index
    %c0_4 = arith.constant 0 : index
    %3 = vector.load %arg3[%c0_3, %c0_4] : memref<1x64xf32, #tpu.memory_space<vmem>>, vector<1x64xf32>
    %4 = vector.broadcast %3 : vector<1x64xf32> to vector<64x64xf32>
    %5 = arith.addf %2, %4 : vector<64x64xf32>
    %cst_5 = arith.constant 0.000000e+00 : f32
    %6 = vector.broadcast %cst_5 : f32 to vector<64x64xf32>
    %7 = arith.maximumf %5, %6 : vector<64x64xf32>
    %8 = arith.truncf %7 : vector<64x64xf32> to vector<64x64xbf16>
    %c0_6 = arith.constant 0 : index
    %c0_7 = arith.constant 0 : index
    %9 = vector.load %arg4[%c0_6, %c0_7] : memref<64x64xbf16, #tpu.memory_space<vmem>>, vector<64x64xbf16>
    tpu.vector_store %arg4[%c0_6, %c0_7], %8 {strides = array<i32>} : memref<64x64xbf16, #tpu.memory_space<vmem>>, vector<64x64xbf16>,
    return
  }
  func.func @transform_0(%arg0: i32) -> (i32, i32) {
    %c0_i32 = arith.constant 0 : i32
    %c0_i32_0 = arith.constant 0 : i32
    return %arg0, %c0_i32 : i32, i32
  }
  func.func @transform_1(%arg0: i32) -> (i32, i32) {
    %c0_i32 = arith.constant 0 : i32
    %c0_i32_0 = arith.constant 0 : i32
    %c0_i32_1 = arith.constant 0 : i32
    return %c0_i32, %c0_i32_0 : i32, i32
  }
  func.func @transform_2(%arg0: i32) -> (i32, i32) {
    %c0_i32 = arith.constant 0 : i32
    %c0_i32_0 = arith.constant 0 : i32
    %c0_i32_1 = arith.constant 0 : i32
    return %c0_i32, %c0_i32_0 : i32, i32
  }
  func.func @transform_3(%arg0: i32) -> (i32, i32) {
    %c0_i32 = arith.constant 0 : i32
    %c0_i32_0 = arith.constant 0 : i32
    return %arg0, %c0_i32 : i32, i32
  }
}

module attributes {stable_mosaic.version = 11 : i64} {
  func.func @_mlp_head_kernel(%arg0: i32, %arg1: memref<1x1x3136xbf16, #tpu.memory_space<vmem>>, %arg2: memref<3136x256xbf16, #tpu.memory_space<vmem>>, %arg3: memref<1x256xf32, #tpu.memory_space<vmem>>, %arg4: memref<256x64xbf16, #tpu.memory_space<vmem>>, %arg5: memref<1x64xf32, #tpu.memory_space<vmem>>, %arg6: memref<1x1x64xf32, #tpu.memory_space<vmem>>) attributes {dimension_semantics = [#tpu.dimension_semantics<parallel>], iteration_bounds = array<i64: 2>, scalar_prefetch = 0 : i64, scratch_operands = 0 : i64, tpu.core_type = #tpu.core_type<tc>, window_params = [{transform_indices = @transform_0, window_bounds = array<i64: 1, 1, 3136>}, {pipeline_mode = #tpu.pipeline_mode<synchronous>, transform_indices = @transform_1, window_bounds = array<i64: 3136, 256>}, {pipeline_mode = #tpu.pipeline_mode<synchronous>, transform_indices = @transform_2, window_bounds = array<i64: 1, 256>}, {pipeline_mode = #tpu.pipeline_mode<synchronous>, transform_indices = @transform_3, window_bounds = array<i64: 256, 64>}, {pipeline_mode = #tpu.pipeline_mode<synchronous>, transform_indices = @transform_4, window_bounds = array<i64: 1, 64>}, {transform_indices = @transform_5, window_bounds = array<i64: 1, 1, 64>}]} {
    %c0 = arith.constant 0 : index
    %c0_0 = arith.constant 0 : index
    %c0_1 = arith.constant 0 : index
    %0 = vector.load %arg1[%c0, %c0_0, %c0_1] : memref<1x1x3136xbf16, #tpu.memory_space<vmem>>, vector<1x1x3136xbf16>
    %1 = vector.shape_cast %0 : vector<1x1x3136xbf16> to vector<1x3136xbf16>
    %c0_2 = arith.constant 0 : index
    %c0_3 = arith.constant 0 : index
    %2 = vector.load %arg2[%c0_2, %c0_3] : memref<3136x256xbf16, #tpu.memory_space<vmem>>, vector<3136x256xbf16>
    %cst = arith.constant dense<0.000000e+00> : vector<1x256xf32>
    %3 = tpu.matmul %1, %2, %cst {dimension_numbers = #tpu.dot_dimension_numbers<[1], [0], [0], [1], [0, 0, 1, 1], [], []>} : vector<1x3136xbf16>, vector<3136x256xbf16>, vector<1x256xf32> -> vector<1x256xf32>
    %c0_4 = arith.constant 0 : index
    %c0_5 = arith.constant 0 : index
    %4 = vector.load %arg3[%c0_4, %c0_5] : memref<1x256xf32, #tpu.memory_space<vmem>>, vector<1x256xf32>
    %5 = arith.addf %3, %4 : vector<1x256xf32>
    %cst_6 = arith.constant 0.000000e+00 : f32
    %6 = vector.broadcast %cst_6 : f32 to vector<1x256xf32>
    %7 = arith.maximumf %5, %6 : vector<1x256xf32>
    %8 = arith.truncf %7 : vector<1x256xf32> to vector<1x256xbf16>
    %c0_7 = arith.constant 0 : index
    %c0_8 = arith.constant 0 : index
    %9 = vector.load %arg4[%c0_7, %c0_8] : memref<256x64xbf16, #tpu.memory_space<vmem>>, vector<256x64xbf16>
    %cst_9 = arith.constant dense<0.000000e+00> : vector<1x64xf32>
    %10 = tpu.matmul %8, %9, %cst_9 {dimension_numbers = #tpu.dot_dimension_numbers<[1], [0], [0], [1], [0, 0, 1, 1], [], []>} : vector<1x256xbf16>, vector<256x64xbf16>, vector<1x64xf32> -> vector<1x64xf32>
    %c0_10 = arith.constant 0 : index
    %c0_11 = arith.constant 0 : index
    %11 = vector.load %arg5[%c0_10, %c0_11] : memref<1x64xf32, #tpu.memory_space<vmem>>, vector<1x64xf32>
    %12 = arith.addf %10, %11 : vector<1x64xf32>
    %c0_12 = arith.constant 0 : index
    %c0_13 = arith.constant 0 : index
    %c0_14 = arith.constant 0 : index
    %13 = vector.load %arg6[%c0_12, %c0_13, %c0_14] : memref<1x1x64xf32, #tpu.memory_space<vmem>>, vector<1x1x64xf32>
    %14 = vector.shape_cast %13 : vector<1x1x64xf32> to vector<1x64xf32>
    %15 = vector.shape_cast %12 : vector<1x64xf32> to vector<1x1x64xf32>
    tpu.vector_store %arg6[%c0_12, %c0_13, %c0_14], %15 {strides = array<i32>} : memref<1x1x64xf32, #tpu.memory_space<vmem>>, vector<1x1x64xf32>,
    return
  }
  func.func @transform_0(%arg0: i32) -> (i32, i32, i32) {
    %c0_i32 = arith.constant 0 : i32
    %c0_i32_0 = arith.constant 0 : i32
    %c0_i32_1 = arith.constant 0 : i32
    return %arg0, %c0_i32, %c0_i32_0 : i32, i32, i32
  }
  func.func @transform_1(%arg0: i32) -> (i32, i32) {
    %c0_i32 = arith.constant 0 : i32
    %c0_i32_0 = arith.constant 0 : i32
    %c0_i32_1 = arith.constant 0 : i32
    return %c0_i32, %c0_i32_0 : i32, i32
  }
  func.func @transform_2(%arg0: i32) -> (i32, i32) {
    %c0_i32 = arith.constant 0 : i32
    %c0_i32_0 = arith.constant 0 : i32
    %c0_i32_1 = arith.constant 0 : i32
    return %c0_i32, %c0_i32_0 : i32, i32
  }
  func.func @transform_3(%arg0: i32) -> (i32, i32) {
    %c0_i32 = arith.constant 0 : i32
    %c0_i32_0 = arith.constant 0 : i32
    %c0_i32_1 = arith.constant 0 : i32
    return %c0_i32, %c0_i32_0 : i32, i32
  }
  func.func @transform_4(%arg0: i32) -> (i32, i32) {
    %c0_i32 = arith.constant 0 : i32
    %c0_i32_0 = arith.constant 0 : i32
    %c0_i32_1 = arith.constant 0 : i32
    return %c0_i32, %c0_i32_0 : i32, i32
  }
  func.func @transform_5(%arg0: i32) -> (i32, i32, i32) {
    %c0_i32 = arith.constant 0 : i32
    %c0_i32_0 = arith.constant 0 : i32
    %c0_i32_1 = arith.constant 0 : i32
    return %arg0, %c0_i32, %c0_i32_0 : i32, i32, i32
  }
}

</mosaic_0001>

<bundles_post_ra>
// kernel: encoder_forward.5
= control target key start
LH: loop header
LB: loop body
LE: loop exit
PB: predicated region body
PF: predicated region fallthrough
CT: control target
= control target key end

     0   :  { %s2265_s12 = smov 0   ;;  %s2267_s13 = smov 0   ;;  %s2779_s0 = inlined_call_operand.vmem [shape: bf16[3528,64], index: 0, kind: input, shape index: {}]   ;;  %s2780_s1 = inlined_call_operand.vmem [shape: bf16[64,32], index: 1, kind: input, shape index: {}]   ;;  %s2781_s2 = inlined_call_operand.vmem [shape: f32[1,32], index: 2, kind: input, shape index: {}]   ;;  %s2782_s3 = inlined_call_operand.vmem [shape: bf16[3528,32], index: 3, kind: output, shape index: {}]  }
   0x1   :  { %s2269_s14 = smov 0  }
   0x2 LB: > { %s2278_s15 = sadd.s32 4294967295, %s2211_s14   ;;  %s2280_s16 = sadd.s32 1, %s2211_s14   ;;  %s2211_s14 = sphi %s2269_s14, %s2789_s14   ;;  %s2207_s13 = sphi %s2267_s13, %s2788_s13   ;;  %s2203_s12 = sphi %s2265_s12, %s2787_s12  }
   0x3   : > { %s85_s17 = ssub.s32 %s2211_s14, %s2280_s16  ;;  %s88_s18 = sadd.s32 1, %s2207_s13 }
   0x4   : > { %p86_p0 = scmp.eq.s32.totalorder %s85_s17, 0  ;;  %p98_p1 = scmp.ne.s32.totalorder %s2207_s13, %s2203_s12 }
   0x5   : > { %p99_p2 = scmp.eq.s32.totalorder %s2278_s15, 6  ;;  %p1696_p3 = scmp.ge.s32.totalorder %s2211_s14, 1 }
   0x6   : > { %s2288_s19 = scalar_select %p86_p0, %s2207_s13, %s88_s18  }
   0x7   : > { %p2290_p4 = por %p99_p2, %p98_p1  ;;  %p146_p5 = scmp.lt.s32.totalorder %s2211_s14, 8 }
   0x9   : > { %p147_p6 = pnand %p1696_p3, %p146_p5 }
   0xa   : > { %v2121_v0 = vld [vmem:[%s2780_s1] sm:$0xff] (!%p147_p6)   ;;  %s2298_s23 = sshll.u32 (!%p147_p6), %s2278_s15, 6  ;;  %v2122_v1 = vld [vmem:[%s2780_s1 + $0x8] sm:$0xff] (!%p147_p6)   ;;  %v2123_v2 = vld [vmem:[%s2780_s1 + $0x10] sm:$0xff] (!%p147_p6)   ;;  %vm456_vm0 = vcmask (!%p147_p6), 523264   ;;  %s170_s8 = sand.u32 (!%p147_p6), 1, %s2203_s12  }
   0xb   : > { %150 = sbr.rel (%p147_p6) target bundleno = 397 (0x18d), region = 32  ;;  %p178_p7 = scmp.lt.s32.totalorder (!%p147_p6), %s2298_s23, 440  ;;  %1953 = vmatprep.subr.bf16.mxu0 (!%p147_p6), %v2121_v0  ;;  %2025 = vmatprep.subr.bf16.mxu1 (!%p147_p6), %v2121_v0  ;;  %v2124_v3 = vld [vmem:[%s2780_s1 + $0x18] sm:$0xff] (!%p147_p6)   ;;  %v2384_v36 = vld [vmem:[%s2781_s2] ss:$0 sm:$0xff] (!%p147_p6)  ;;  %vm1162_vm1 = vcmask (!%p147_p6), 257024  }
   0xc   : > { %1954 = vmatpush3.bf16.msra.mxu0 (!%p147_p6), %v2121_v0  ;;  %2029 = vmatpush3.bf16.msra.mxu1 (!%p147_p6), %v2121_v0  ;;  %s1697_s11 = sshll.u32 (!%p147_p6), %s170_s8, 8 }
   0xd   : > { %1955 = vmatprep.subr.bf16.mxu0 (!%p147_p6), %v2122_v1  ;;  %2026 = vmatprep.subr.bf16.mxu1 (!%p147_p6), %v2122_v1  ;;  %s2394_s12 = scalar_lea.vmem (!%p147_p6), [#allocation2], %s1697_s11  }
  0x10   : > { %1956 = vmatpush3.bf16.msra.mxu0 (!%p147_p6), %v2122_v1  ;;  %2030 = vmatpush3.bf16.msra.mxu1 (!%p147_p6), %v2122_v1 }
  0x11   : > { %1957 = vmatprep.subr.bf16.mxu0 (!%p147_p6), %v2123_v2  ;;  %2027 = vmatprep.subr.bf16.mxu1 (!%p147_p6), %v2123_v2 }
  0x12   : > { %s179_s26 = scalar_select %p178_p7, %s2298_s23, 440 }
  0x13   : > { %s1235_s14 = ssub.s32 (%p2290_p4), 441, %s2298_s23  ;;  %s1914_s17 = sshll.u32 (%p2290_p4), %s2278_s15, 8 }
  0x14   : > { %s1699_s29 = sshll.u32 %s179_s26, 2  ;;  %1958 = vmatpush3.bf16.msra.mxu0 %v2123_v2  ;;  %2031 = vmatpush3.bf16.msra.mxu1 %v2123_v2  ;;  %p1236_p8 = scmp.lt.s32.totalorder (%p2290_p4), %s1235_s14, 64 }
  0x15   : > { %s2314_s7 = scalar_lea.vmem %s2779_s0, %s1699_s29  ;;  %1959 = vmatprep.subr.bf16.mxu0 %v2124_v3  ;;  %2028 = vmatprep.subr.bf16.mxu1 %v2124_v3  ;;  %s2587_s22 = scalar_lea.vmem (%p2290_p4), %s2782_s3, %s1914_s17  }
  0x16   : > { %v2125_v4 = vld [vmem:[%s2314_s7] sm:$0xff]   ;;  %v2127_v6 = vld [vmem:[%s2314_s7 + $0x8] sm:$0xff]   ;;  %v2129_v8 = vld [vmem:[%s2314_s7 + $0x10] sm:$0xff]  }
  0x17   : > { %v2126_v5 = vld [vmem:[%s2314_s7 + $0x80] sm:$0xff]   ;;  %1961 = vmatprep.mubr.msk.bf16.mxu0 %vm456_vm0, %v2125_v4  ;;  %v2128_v7 = vld [vmem:[%s2314_s7 + $0x88] sm:$0xff]   ;;  %v2130_v9 = vld [vmem:[%s2314_s7 + $0x90] sm:$0xff]  }
  0x18   : > { %1993 = vmatprep.mubr.msk.bf16.mxu1 %vm456_vm0, %v2126_v5  ;;  %1960 = vmatpush3.bf16.msra.mxu0 %v2124_v3  ;;  %v2131_v10 = vld [vmem:[%s2314_s7 + $0x18] sm:$0xff]   ;;  %v2133_v12 = vld [vmem:[%s2314_s7 + $0x20] sm:$0xff]   ;;  %v2135_v14 = vld [vmem:[%s2314_s7 + $0x28] sm:$0xff]  }
  0x19   : > { %2032 = vmatpush3.bf16.msra.mxu1 %v2124_v3  ;;  %v2132_v11 = vld [vmem:[%s2314_s7 + $0x98] sm:$0xff]   ;;  %v2134_v13 = vld [vmem:[%s2314_s7 + $0xa0] sm:$0xff]   ;;  %v2136_v15 = vld [vmem:[%s2314_s7 + $0xa8] sm:$0xff]  }
  0x1a   : > { %v2137_v16 = vld [vmem:[%s2314_s7 + $0x30] sm:$0xff]   ;;  %v2139_v18 = vld [vmem:[%s2314_s7 + $0x38] sm:$0xff]   ;;  %v2141_v20 = vld [vmem:[%s2314_s7 + $0x40] sm:$0xff]  }
  0x1b   : > { %1962 = vmatmul.mubr.msk.bf16.vlgmr.msra.gmra.mrb[0].mxu0 %vm456_vm0, %v2127_v6  ;;  %v2138_v17 = vld [vmem:[%s2314_s7 + $0xb0] sm:$0xff]   ;;  %v2140_v19 = vld [vmem:[%s2314_s7 + $0xb8] sm:$0xff]   ;;  %v2142_v21 = vld [vmem:[%s2314_s7 + $0xc0] sm:$0xff]  }
  0x1c   : > { %1994 = vmatmul.mubr.msk.bf16.vlgmr.msra.gmra.mrb[0].mxu1 %vm456_vm0, %v2128_v7  ;;  %1965 = vmatprep.mubr.msk.bf16.mxu0 %vm456_vm0, %v2129_v8  ;;  %v2143_v22 = vld [vmem:[%s2314_s7 + $0x48] sm:$0xff]   ;;  %v2145_v24 = vld [vmem:[%s2314_s7 + $0x50] sm:$0xff]   ;;  %v2147_v26 = vld [vmem:[%s2314_s7 + $0x58] sm:$0xff]  }
  0x1d   : > { %1997 = vmatprep.mubr.msk.bf16.mxu1 %vm456_vm0, %v2130_v9  ;;  %v2144_v23 = vld [vmem:[%s2314_s7 + $0xc8] sm:$0xff]   ;;  %v2146_v25 = vld [vmem:[%s2314_s7 + $0xd0] sm:$0xff]   ;;  %v2148_v27 = vld [vmem:[%s2314_s7 + $0xd8] sm:$0xff]  }
  0x1e   : > { %v2149_v28 = vld [vmem:[%s2314_s7 + $0x60] sm:$0xff]   ;;  %v2151_v30 = vld [vmem:[%s2314_s7 + $0x68] sm:$0xff]   ;;  %v2153_v32 = vld [vmem:[%s2314_s7 + $0x70] sm:$0xff]  }
  0x1f   : > { %v2150_v29 = vld [vmem:[%s2314_s7 + $0xe0] sm:$0xff]   ;;  %v2152_v31 = vld [vmem:[%s2314_s7 + $0xe8] sm:$0xff]   ;;  %v2154_v33 = vld [vmem:[%s2314_s7 + $0xf0] sm:$0xff]  }
  0x20   : > { %v2155_v34 = vld [vmem:[%s2314_s7 + $0x78] sm:$0xff]  }
  0x21   : > { %v2156_v35 = vld [vmem:[%s2314_s7 + $0xf8] sm:$0xff]  }
  0x23   : > { %1966 = vmatmul.mubr.msk.bf16.gmra.mrb[4].mxu0 %vm456_vm0, %v2131_v10 }
  0x24   : > { %1998 = vmatmul.mubr.msk.bf16.gmra.mrb[4].mxu1 %vm456_vm0, %v2132_v11  ;;  %1969 = vmatprep.mubr.msk.bf16.mxu0 %vm456_vm0, %v2133_v12 }
  0x25   : > { %2001 = vmatprep.mubr.msk.bf16.mxu1 %vm456_vm0, %v2134_v13 }
  0x2b   : > { %1970 = vmatmul.mubr.msk.bf16.gmra.mrb[8].mxu0 %vm456_vm0, %v2135_v14 }
  0x2c   : > { %2002 = vmatmul.mubr.msk.bf16.gmra.mrb[8].mxu1 %vm456_vm0, %v2136_v15  ;;  %1973 = vmatprep.mubr.msk.bf16.mxu0 %vm456_vm0, %v2137_v16 }
  0x2d   : > { %2005 = vmatprep.mubr.msk.bf16.mxu1 %vm456_vm0, %v2138_v17 }
  0x33   : > { %1974 = vmatmul.mubr.msk.bf16.gmra.mrb[12].mxu0 %vm456_vm0, %v2139_v18 }
  0x34   : > { %2006 = vmatmul.mubr.msk.bf16.gmra.mrb[12].mxu1 %vm456_vm0, %v2140_v19  ;;  %1977 = vmatprep.mubr.msk.bf16.mxu0 %vm456_vm0, %v2141_v20 }
  0x35   : > { %2009 = vmatprep.mubr.msk.bf16.mxu1 %vm456_vm0, %v2142_v21 }
  0x3b   : > { %1978 = vmatmul.mubr.msk.bf16.gmra.mrb[16].mxu0 %vm456_vm0, %v2143_v22 }
  0x3c   : > { %2010 = vmatmul.mubr.msk.bf16.gmra.mrb[16].mxu1 %vm456_vm0, %v2144_v23  ;;  %1981 = vmatprep.mubr.msk.bf16.mxu0 %vm456_vm0, %v2145_v24 }
  0x3d   : > { %2013 = vmatprep.mubr.msk.bf16.mxu1 %vm456_vm0, %v2146_v25 }
  0x43   : > { %1982 = vmatmul.mubr.msk.bf16.gmra.mrb[20].mxu0 %vm456_vm0, %v2147_v26 }
  0x44   : > { %2014 = vmatmul.mubr.msk.bf16.gmra.mrb[20].mxu1 %vm456_vm0, %v2148_v27  ;;  %1985 = vmatprep.mubr.msk.bf16.mxu0 %vm456_vm0, %v2149_v28 }
  0x45   : > { %2017 = vmatprep.mubr.msk.bf16.mxu1 %vm456_vm0, %v2150_v29 }
  0x4b   : > { %1986 = vmatmul.mubr.msk.bf16.gmra.mrb[24].mxu0 %vm456_vm0, %v2151_v30 }
  0x4c   : > { %2018 = vmatmul.mubr.msk.bf16.gmra.mrb[24].mxu1 %vm456_vm0, %v2152_v31  ;;  %1989 = vmatprep.mubr.msk.bf16.mxu0 %vm456_vm0, %v2153_v32 }
  0x4d   : > { %2021 = vmatprep.mubr.msk.bf16.mxu1 %vm456_vm0, %v2154_v33 }
  0x53   : > { %1990 = vmatmul.mubr.msk.bf16.gmra.mrb[28].mxu0 %vm456_vm0, %v2155_v34 }
  0x54   : > { %2022 = vmatmul.mubr.msk.bf16.gmra.mrb[28].mxu1 %vm456_vm0, %v2156_v35 }
  0xee   : > { %v1963_v37 = vpop.f32.mrb[0].mxu0 }
  0xef   : > { %v1995_v38 = vpop.f32.mrb[0].mxu1  ;;  %v596_v39 = vadd.f32 %v1963_v37, %v2384_v36  ;;  %v587_v41 = vpop.f32.mrb[1].mxu0 }
  0xf0   : > { %v724_v40 = vadd.f32 %v1995_v38, %v2384_v36  ;;  %v715_v42 = vpop.f32.mrb[1].mxu1  ;;  %v588_v43 = vadd.f32 %v2384_v36, %v587_v41  ;;  %v1964_v45 = vpop.f32.mrb[2].mxu0 }
  0xf1   : > { %v716_v44 = vadd.f32 %v2384_v36, %v715_v42  ;;  %v1996_v46 = vpop.f32.mrb[2].mxu1  ;;  %v844_v47 = vmax.f32 %v596_v39, 0.0  ;;  %v599_v49 = vadd.f32 %v1964_v45, %v2384_v36  ;;  %v590_v51 = vpop.f32.mrb[3].mxu0 }
  0xf2   : > { %v876_v48 = vmax.f32 %v724_v40, 0.0  ;;  %v727_v50 = vadd.f32 %v1996_v46, %v2384_v36  ;;  %v718_v52 = vpop.f32.mrb[3].mxu1  ;;  %v842_v53 = vmax.f32 %v588_v43, 0.0  ;;  %v591_v55 = vadd.f32 %v2384_v36, %v590_v51 }
  0xf3   : > { %v874_v54 = vmax.f32 %v716_v44, 0.0  ;;  %v719_v56 = vadd.f32 %v2384_v36, %v718_v52  ;;  %v1852_v57 = vpack.c.bf16 %v844_v47, %v844_v47  ;;  %v845_v59 = vmax.f32 %v599_v49, 0.0 }
  0xf4   : > { %v1884_v58 = vpack.c.bf16 %v876_v48, %v876_v48  ;;  %v877_v60 = vmax.f32 %v727_v50, 0.0  ;;  %v1850_v61 = vpack.c.bf16 %v842_v53, %v842_v53  ;;  %v843_v63 = vmax.f32 %v591_v55, 0.0 }
  0xf5   : > { %v1882_v62 = vpack.c.bf16 %v874_v54, %v874_v54  ;;  %v875_v0 = vmax.f32 %v719_v56, 0.0  ;;  %1165 = vst.msk [vmem:[%s2394_s12 + $0x8] sm:$0xf] %vm1162_vm1, %v1852_v57  ;;  %v1853_v1 = vpack.c.bf16 %v845_v59, %v845_v59 }
  0xf6   : > { %1197 = vst.msk [vmem:[%s2394_s12 + $0x88] sm:$0xf] %vm1162_vm1, %v1884_v58  ;;  %v1885_v2 = vpack.c.bf16 %v877_v60, %v877_v60  ;;  %1163 = vst.msk [vmem:[%s2394_s12] sm:$0xf] %vm1162_vm1, %v1850_v61  ;;  %v1851_v3 = vpack.c.bf16 %v843_v63, %v843_v63  ;;  %v1967_v5 = vpop.f32.mrb[4].mxu0 }
  0xf7   : > { %1195 = vst.msk [vmem:[%s2394_s12 + $0x80] sm:$0xf] %vm1162_vm1, %v1882_v62  ;;  %v1883_v4 = vpack.c.bf16 %v875_v0, %v875_v0  ;;  %v1999_v6 = vpop.f32.mrb[4].mxu1  ;;  %1166 = vst.msk [vmem:[%s2394_s12 + $0xc] sm:$0xf] %vm1162_vm1, %v1853_v1  ;;  %v612_v7 = vadd.f32 %v1967_v5, %v2384_v36  ;;  %v603_v9 = vpop.f32.mrb[5].mxu0 }
  0xf8   : > { %1198 = vst.msk [vmem:[%s2394_s12 + $0x8c] sm:$0xf] %vm1162_vm1, %v1885_v2  ;;  %v740_v8 = vadd.f32 %v1999_v6, %v2384_v36  ;;  %v731_v10 = vpop.f32.mrb[5].mxu1  ;;  %1164 = vst.msk [vmem:[%s2394_s12 + $0x4] sm:$0xf] %vm1162_vm1, %v1851_v3  ;;  %v604_v11 = vadd.f32 %v2384_v36, %v603_v9  ;;  %v1968_v13 = vpop.f32.mrb[6].mxu0 }
  0xf9   : > { %1196 = vst.msk [vmem:[%s2394_s12 + $0x84] sm:$0xf] %vm1162_vm1, %v1883_v4  ;;  %v732_v12 = vadd.f32 %v2384_v36, %v731_v10  ;;  %v2000_v14 = vpop.f32.mrb[6].mxu1  ;;  %v848_v15 = vmax.f32 %v612_v7, 0.0  ;;  %v615_v17 = vadd.f32 %v1968_v13, %v2384_v36  ;;  %v606_v19 = vpop.f32.mrb[7].mxu0 }
  0xfa   : > { %v880_v16 = vmax.f32 %v740_v8, 0.0  ;;  %v743_v18 = vadd.f32 %v2000_v14, %v2384_v36  ;;  %v734_v20 = vpop.f32.mrb[7].mxu1  ;;  %v846_v21 = vmax.f32 %v604_v11, 0.0  ;;  %v607_v23 = vadd.f32 %v2384_v36, %v606_v19 }
  0xfb   : > { %v878_v22 = vmax.f32 %v732_v12, 0.0  ;;  %v735_v24 = vadd.f32 %v2384_v36, %v734_v20  ;;  %v1856_v25 = vpack.c.bf16 %v848_v15, %v848_v15  ;;  %v849_v27 = vmax.f32 %v615_v17, 0.0 }
  0xfc   : > { %v1888_v26 = vpack.c.bf16 %v880_v16, %v880_v16  ;;  %v881_v28 = vmax.f32 %v743_v18, 0.0  ;;  %v1854_v29 = vpack.c.bf16 %v846_v21, %v846_v21  ;;  %v847_v31 = vmax.f32 %v607_v23, 0.0 }
  0xfd   : > { %v1886_v30 = vpack.c.bf16 %v878_v22, %v878_v22  ;;  %v879_v32 = vmax.f32 %v735_v24, 0.0  ;;  %1169 = vst.msk [vmem:[%s2394_s12 + $0x18] sm:$0xf] %vm1162_vm1, %v1856_v25  ;;  %v1857_v33 = vpack.c.bf16 %v849_v27, %v849_v27 }
  0xfe   : > { %1201 = vst.msk [vmem:[%s2394_s12 + $0x98] sm:$0xf] %vm1162_vm1, %v1888_v26  ;;  %v1889_v34 = vpack.c.bf16 %v881_v28, %v881_v28  ;;  %1167 = vst.msk [vmem:[%s2394_s12 + $0x10] sm:$0xf] %vm1162_vm1, %v1854_v29  ;;  %v1855_v35 = vpack.c.bf16 %v847_v31, %v847_v31  ;;  %v1971_v38 = vpop.f32.mrb[8].mxu0 }
  0xff   : > { %1199 = vst.msk [vmem:[%s2394_s12 + $0x90] sm:$0xf] %vm1162_vm1, %v1886_v30  ;;  %v1887_v37 = vpack.c.bf16 %v879_v32, %v879_v32  ;;  %v2003_v39 = vpop.f32.mrb[8].mxu1  ;;  %1170 = vst.msk [vmem:[%s2394_s12 + $0x1c] sm:$0xf] %vm1162_vm1, %v1857_v33  ;;  %v628_v40 = vadd.f32 %v1971_v38, %v2384_v36  ;;  %v619_v42 = vpop.f32.mrb[9].mxu0 }
 0x100   : > { %1202 = vst.msk [vmem:[%s2394_s12 + $0x9c] sm:$0xf] %vm1162_vm1, %v1889_v34  ;;  %v756_v41 = vadd.f32 %v2003_v39, %v2384_v36  ;;  %v747_v43 = vpop.f32.mrb[9].mxu1  ;;  %1168 = vst.msk [vmem:[%s2394_s12 + $0x14] sm:$0xf] %vm1162_vm1, %v1855_v35  ;;  %v620_v44 = vadd.f32 %v2384_v36, %v619_v42  ;;  %v1972_v46 = vpop.f32.mrb[10].mxu0 }
 0x101   : > { %1200 = vst.msk [vmem:[%s2394_s12 + $0x94] sm:$0xf] %vm1162_vm1, %v1887_v37  ;;  %v748_v45 = vadd.f32 %v2384_v36, %v747_v43  ;;  %v2004_v47 = vpop.f32.mrb[10].mxu1  ;;  %v852_v48 = vmax.f32 %v628_v40, 0.0  ;;  %v631_v50 = vadd.f32 %v1972_v46, %v2384_v36  ;;  %v622_v52 = vpop.f32.mrb[11].mxu0 }
 0x102   : > { %v884_v49 = vmax.f32 %v756_v41, 0.0  ;;  %v759_v51 = vadd.f32 %v2004_v47, %v2384_v36  ;;  %v750_v53 = vpop.f32.mrb[11].mxu1  ;;  %v850_v54 = vmax.f32 %v620_v44, 0.0  ;;  %v623_v56 = vadd.f32 %v2384_v36, %v622_v52 }
 0x103   : > { %v882_v55 = vmax.f32 %v748_v45, 0.0  ;;  %v751_v57 = vadd.f32 %v2384_v36, %v750_v53  ;;  %v1860_v58 = vpack.c.bf16 %v852_v48, %v852_v48  ;;  %v853_v60 = vmax.f32 %v631_v50, 0.0 }
 0x104   : > { %v1892_v59 = vpack.c.bf16 %v884_v49, %v884_v49  ;;  %v885_v61 = vmax.f32 %v759_v51, 0.0  ;;  %v1858_v62 = vpack.c.bf16 %v850_v54, %v850_v54  ;;  %v851_v0 = vmax.f32 %v623_v56, 0.0 }
 0x105   : > { %v1890_v63 = vpack.c.bf16 %v882_v55, %v882_v55  ;;  %v883_v1 = vmax.f32 %v751_v57, 0.0  ;;  %1173 = vst.msk [vmem:[%s2394_s12 + $0x28] sm:$0xf] %vm1162_vm1, %v1860_v58  ;;  %v1861_v2 = vpack.c.bf16 %v853_v60, %v853_v60 }
 0x106   : > { %1205 = vst.msk [vmem:[%s2394_s12 + $0xa8] sm:$0xf] %vm1162_vm1, %v1892_v59  ;;  %v1893_v3 = vpack.c.bf16 %v885_v61, %v885_v61  ;;  %1171 = vst.msk [vmem:[%s2394_s12 + $0x20] sm:$0xf] %vm1162_vm1, %v1858_v62  ;;  %v1859_v4 = vpack.c.bf16 %v851_v0, %v851_v0  ;;  %v1975_v6 = vpop.f32.mrb[12].mxu0 }
 0x107   : > { %1203 = vst.msk [vmem:[%s2394_s12 + $0xa0] sm:$0xf] %vm1162_vm1, %v1890_v63  ;;  %v1891_v5 = vpack.c.bf16 %v883_v1, %v883_v1  ;;  %v2007_v7 = vpop.f32.mrb[12].mxu1  ;;  %1174 = vst.msk [vmem:[%s2394_s12 + $0x2c] sm:$0xf] %vm1162_vm1, %v1861_v2  ;;  %v644_v8 = vadd.f32 %v1975_v6, %v2384_v36  ;;  %v635_v10 = vpop.f32.mrb[13].mxu0 }
 0x108   : > { %1206 = vst.msk [vmem:[%s2394_s12 + $0xac] sm:$0xf] %vm1162_vm1, %v1893_v3  ;;  %v772_v9 = vadd.f32 %v2007_v7, %v2384_v36  ;;  %v763_v11 = vpop.f32.mrb[13].mxu1  ;;  %1172 = vst.msk [vmem:[%s2394_s12 + $0x24] sm:$0xf] %vm1162_vm1, %v1859_v4  ;;  %v636_v12 = vadd.f32 %v2384_v36, %v635_v10  ;;  %v1976_v14 = vpop.f32.mrb[14].mxu0 }
 0x109   : > { %1204 = vst.msk [vmem:[%s2394_s12 + $0xa4] sm:$0xf] %vm1162_vm1, %v1891_v5  ;;  %v764_v13 = vadd.f32 %v2384_v36, %v763_v11  ;;  %v2008_v15 = vpop.f32.mrb[14].mxu1  ;;  %v856_v16 = vmax.f32 %v644_v8, 0.0  ;;  %v647_v18 = vadd.f32 %v1976_v14, %v2384_v36  ;;  %v638_v20 = vpop.f32.mrb[15].mxu0 }
 0x10a   : > { %v888_v17 = vmax.f32 %v772_v9, 0.0  ;;  %v775_v19 = vadd.f32 %v2008_v15, %v2384_v36  ;;  %v766_v21 = vpop.f32.mrb[15].mxu1  ;;  %v854_v22 = vmax.f32 %v636_v12, 0.0  ;;  %v639_v24 = vadd.f32 %v2384_v36, %v638_v20 }
 0x10b   : > { %v886_v23 = vmax.f32 %v764_v13, 0.0  ;;  %v767_v25 = vadd.f32 %v2384_v36, %v766_v21  ;;  %v1864_v26 = vpack.c.bf16 %v856_v16, %v856_v16  ;;  %v857_v28 = vmax.f32 %v647_v18, 0.0 }
 0x10c   : > { %v1896_v27 = vpack.c.bf16 %v888_v17, %v888_v17  ;;  %v889_v29 = vmax.f32 %v775_v19, 0.0  ;;  %v1862_v30 = vpack.c.bf16 %v854_v22, %v854_v22  ;;  %v855_v32 = vmax.f32 %v639_v24, 0.0 }
 0x10d   : > { %v1894_v31 = vpack.c.bf16 %v886_v23, %v886_v23  ;;  %v887_v33 = vmax.f32 %v767_v25, 0.0  ;;  %1177 = vst.msk [vmem:[%s2394_s12 + $0x38] sm:$0xf] %vm1162_vm1, %v1864_v26  ;;  %v1865_v34 = vpack.c.bf16 %v857_v28, %v857_v28 }
 0x10e   : > { %1209 = vst.msk [vmem:[%s2394_s12 + $0xb8] sm:$0xf] %vm1162_vm1, %v1896_v27  ;;  %v1897_v35 = vpack.c.bf16 %v889_v29, %v889_v29  ;;  %1175 = vst.msk [vmem:[%s2394_s12 + $0x30] sm:$0xf] %vm1162_vm1, %v1862_v30  ;;  %v1863_v37 = vpack.c.bf16 %v855_v32, %v855_v32  ;;  %v1979_v39 = vpop.f32.mrb[16].mxu0 }
 0x10f   : > { %1207 = vst.msk [vmem:[%s2394_s12 + $0xb0] sm:$0xf] %vm1162_vm1, %v1894_v31  ;;  %v1895_v38 = vpack.c.bf16 %v887_v33, %v887_v33  ;;  %v2011_v40 = vpop.f32.mrb[16].mxu1  ;;  %1178 = vst.msk [vmem:[%s2394_s12 + $0x3c] sm:$0xf] %vm1162_vm1, %v1865_v34  ;;  %v660_v41 = vadd.f32 %v1979_v39, %v2384_v36  ;;  %v651_v43 = vpop.f32.mrb[17].mxu0 }
 0x110   : > { %1210 = vst.msk [vmem:[%s2394_s12 + $0xbc] sm:$0xf] %vm1162_vm1, %v1897_v35  ;;  %v788_v42 = vadd.f32 %v2011_v40, %v2384_v36  ;;  %v779_v44 = vpop.f32.mrb[17].mxu1  ;;  %1176 = vst.msk [vmem:[%s2394_s12 + $0x34] sm:$0xf] %vm1162_vm1, %v1863_v37  ;;  %v652_v45 = vadd.f32 %v2384_v36, %v651_v43  ;;  %v1980_v47 = vpop.f32.mrb[18].mxu0 }
 0x111   : > { %1208 = vst.msk [vmem:[%s2394_s12 + $0xb4] sm:$0xf] %vm1162_vm1, %v1895_v38  ;;  %v780_v46 = vadd.f32 %v2384_v36, %v779_v44  ;;  %v2012_v48 = vpop.f32.mrb[18].mxu1  ;;  %v860_v49 = vmax.f32 %v660_v41, 0.0  ;;  %v663_v51 = vadd.f32 %v1980_v47, %v2384_v36  ;;  %v654_v53 = vpop.f32.mrb[19].mxu0 }
 0x112   : > { %v892_v50 = vmax.f32 %v788_v42, 0.0  ;;  %v791_v52 = vadd.f32 %v2012_v48, %v2384_v36  ;;  %v782_v54 = vpop.f32.mrb[19].mxu1  ;;  %v858_v55 = vmax.f32 %v652_v45, 0.0  ;;  %v655_v57 = vadd.f32 %v2384_v36, %v654_v53 }
 0x113   : > { %v890_v56 = vmax.f32 %v780_v46, 0.0  ;;  %v783_v58 = vadd.f32 %v2384_v36, %v782_v54  ;;  %v1868_v59 = vpack.c.bf16 %v860_v49, %v860_v49  ;;  %v861_v61 = vmax.f32 %v663_v51, 0.0 }
 0x114   : > { %v1900_v60 = vpack.c.bf16 %v892_v50, %v892_v50  ;;  %v893_v62 = vmax.f32 %v791_v52, 0.0  ;;  %v1866_v63 = vpack.c.bf16 %v858_v55, %v858_v55  ;;  %v859_v1 = vmax.f32 %v655_v57, 0.0 }
 0x115   : > { %v1898_v0 = vpack.c.bf16 %v890_v56, %v890_v56  ;;  %v891_v2 = vmax.f32 %v783_v58, 0.0  ;;  %1181 = vst.msk [vmem:[%s2394_s12 + $0x48] sm:$0xf] %vm1162_vm1, %v1868_v59  ;;  %v1869_v3 = vpack.c.bf16 %v861_v61, %v861_v61 }
 0x116   : > { %1213 = vst.msk [vmem:[%s2394_s12 + $0xc8] sm:$0xf] %vm1162_vm1, %v1900_v60  ;;  %v1901_v4 = vpack.c.bf16 %v893_v62, %v893_v62  ;;  %1179 = vst.msk [vmem:[%s2394_s12 + $0x40] sm:$0xf] %vm1162_vm1, %v1866_v63  ;;  %v1867_v5 = vpack.c.bf16 %v859_v1, %v859_v1  ;;  %v1983_v7 = vpop.f32.mrb[20].mxu0 }
 0x117   : > { %1211 = vst.msk [vmem:[%s2394_s12 + $0xc0] sm:$0xf] %vm1162_vm1, %v1898_v0  ;;  %v1899_v6 = vpack.c.bf16 %v891_v2, %v891_v2  ;;  %v2015_v8 = vpop.f32.mrb[20].mxu1  ;;  %1182 = vst.msk [vmem:[%s2394_s12 + $0x4c] sm:$0xf] %vm1162_vm1, %v1869_v3  ;;  %v676_v9 = vadd.f32 %v1983_v7, %v2384_v36  ;;  %v667_v11 = vpop.f32.mrb[21].mxu0 }
 0x118   : > { %1214 = vst.msk [vmem:[%s2394_s12 + $0xcc] sm:$0xf] %vm1162_vm1, %v1901_v4  ;;  %v804_v10 = vadd.f32 %v2015_v8, %v2384_v36  ;;  %v795_v12 = vpop.f32.mrb[21].mxu1  ;;  %1180 = vst.msk [vmem:[%s2394_s12 + $0x44] sm:$0xf] %vm1162_vm1, %v1867_v5  ;;  %v668_v13 = vadd.f32 %v2384_v36, %v667_v11  ;;  %v1984_v15 = vpop.f32.mrb[22].mxu0 }
 0x119   : > { %1212 = vst.msk [vmem:[%s2394_s12 + $0xc4] sm:$0xf] %vm1162_vm1, %v1899_v6  ;;  %v796_v14 = vadd.f32 %v2384_v36, %v795_v12  ;;  %v2016_v16 = vpop.f32.mrb[22].mxu1  ;;  %v864_v17 = vmax.f32 %v676_v9, 0.0  ;;  %v679_v19 = vadd.f32 %v1984_v15, %v2384_v36  ;;  %v670_v21 = vpop.f32.mrb[23].mxu0 }
 0x11a   : > { %v896_v18 = vmax.f32 %v804_v10, 0.0  ;;  %v807_v20 = vadd.f32 %v2016_v16, %v2384_v36  ;;  %v798_v22 = vpop.f32.mrb[23].mxu1  ;;  %v862_v23 = vmax.f32 %v668_v13, 0.0  ;;  %v671_v25 = vadd.f32 %v2384_v36, %v670_v21 }
 0x11b   : > { %v894_v24 = vmax.f32 %v796_v14, 0.0  ;;  %v799_v26 = vadd.f32 %v2384_v36, %v798_v22  ;;  %v1872_v27 = vpack.c.bf16 %v864_v17, %v864_v17  ;;  %v865_v29 = vmax.f32 %v679_v19, 0.0 }
 0x11c   : > { %v1904_v28 = vpack.c.bf16 %v896_v18, %v896_v18  ;;  %v897_v30 = vmax.f32 %v807_v20, 0.0  ;;  %v1870_v31 = vpack.c.bf16 %v862_v23, %v862_v23  ;;  %v863_v33 = vmax.f32 %v671_v25, 0.0 }
 0x11d   : > { %v1902_v32 = vpack.c.bf16 %v894_v24, %v894_v24  ;;  %v895_v34 = vmax.f32 %v799_v26, 0.0  ;;  %1185 = vst.msk [vmem:[%s2394_s12 + $0x58] sm:$0xf] %vm1162_vm1, %v1872_v27  ;;  %v1873_v35 = vpack.c.bf16 %v865_v29, %v865_v29 }
 0x11e   : > { %1217 = vst.msk [vmem:[%s2394_s12 + $0xd8] sm:$0xf] %vm1162_vm1, %v1904_v28  ;;  %v1905_v37 = vpack.c.bf16 %v897_v30, %v897_v30  ;;  %1183 = vst.msk [vmem:[%s2394_s12 + $0x50] sm:$0xf] %vm1162_vm1, %v1870_v31  ;;  %v1871_v38 = vpack.c.bf16 %v863_v33, %v863_v33  ;;  %v1987_v40 = vpop.f32.mrb[24].mxu0 }
 0x11f   : > { %1215 = vst.msk [vmem:[%s2394_s12 + $0xd0] sm:$0xf] %vm1162_vm1, %v1902_v32  ;;  %v1903_v39 = vpack.c.bf16 %v895_v34, %v895_v34  ;;  %v2019_v41 = vpop.f32.mrb[24].mxu1  ;;  %1186 = vst.msk [vmem:[%s2394_s12 + $0x5c] sm:$0xf] %vm1162_vm1, %v1873_v35  ;;  %v692_v42 = vadd.f32 %v1987_v40, %v2384_v36  ;;  %v683_v44 = vpop.f32.mrb[25].mxu0 }
 0x120   : > { %1218 = vst.msk [vmem:[%s2394_s12 + $0xdc] sm:$0xf] %vm1162_vm1, %v1905_v37  ;;  %v820_v43 = vadd.f32 %v2019_v41, %v2384_v36  ;;  %v811_v45 = vpop.f32.mrb[25].mxu1  ;;  %1184 = vst.msk [vmem:[%s2394_s12 + $0x54] sm:$0xf] %vm1162_vm1, %v1871_v38  ;;  %v684_v46 = vadd.f32 %v2384_v36, %v683_v44  ;;  %v1988_v48 = vpop.f32.mrb[26].mxu0 }
 0x121   : > { %1216 = vst.msk [vmem:[%s2394_s12 + $0xd4] sm:$0xf] %vm1162_vm1, %v1903_v39  ;;  %v812_v47 = vadd.f32 %v2384_v36, %v811_v45  ;;  %v2020_v49 = vpop.f32.mrb[26].mxu1  ;;  %v868_v50 = vmax.f32 %v692_v42, 0.0  ;;  %v695_v52 = vadd.f32 %v1988_v48, %v2384_v36  ;;  %v686_v54 = vpop.f32.mrb[27].mxu0 }
 0x122   : > { %v900_v51 = vmax.f32 %v820_v43, 0.0  ;;  %v823_v53 = vadd.f32 %v2020_v49, %v2384_v36  ;;  %v814_v55 = vpop.f32.mrb[27].mxu1  ;;  %v866_v56 = vmax.f32 %v684_v46, 0.0  ;;  %v687_v58 = vadd.f32 %v2384_v36, %v686_v54 }
 0x123   : > { %v898_v57 = vmax.f32 %v812_v47, 0.0  ;;  %v815_v59 = vadd.f32 %v2384_v36, %v814_v55  ;;  %v1876_v60 = vpack.c.bf16 %v868_v50, %v868_v50  ;;  %v869_v62 = vmax.f32 %v695_v52, 0.0 }
 0x124   : > { %v1908_v61 = vpack.c.bf16 %v900_v51, %v900_v51  ;;  %v901_v63 = vmax.f32 %v823_v53, 0.0  ;;  %v1874_v0 = vpack.c.bf16 %v866_v56, %v866_v56  ;;  %v867_v2 = vmax.f32 %v687_v58, 0.0 }
 0x125   : > { %v1906_v1 = vpack.c.bf16 %v898_v57, %v898_v57  ;;  %v899_v3 = vmax.f32 %v815_v59, 0.0  ;;  %1189 = vst.msk [vmem:[%s2394_s12 + $0x68] sm:$0xf] %vm1162_vm1, %v1876_v60  ;;  %v1877_v4 = vpack.c.bf16 %v869_v62, %v869_v62 }
 0x126   : > { %1221 = vst.msk [vmem:[%s2394_s12 + $0xe8] sm:$0xf] %vm1162_vm1, %v1908_v61  ;;  %v1909_v5 = vpack.c.bf16 %v901_v63, %v901_v63  ;;  %1187 = vst.msk [vmem:[%s2394_s12 + $0x60] sm:$0xf] %vm1162_vm1, %v1874_v0  ;;  %v1875_v6 = vpack.c.bf16 %v867_v2, %v867_v2  ;;  %v1991_v8 = vpop.f32.mrb[28].mxu0 }
 0x127   : > { %1219 = vst.msk [vmem:[%s2394_s12 + $0xe0] sm:$0xf] %vm1162_vm1, %v1906_v1  ;;  %v1907_v7 = vpack.c.bf16 %v899_v3, %v899_v3  ;;  %v2023_v9 = vpop.f32.mrb[28].mxu1  ;;  %1190 = vst.msk [vmem:[%s2394_s12 + $0x6c] sm:$0xf] %vm1162_vm1, %v1877_v4  ;;  %v708_v10 = vadd.f32 %v1991_v8, %v2384_v36  ;;  %v699_v12 = vpop.f32.mrb[29].mxu0 }
 0x128   : > { %1222 = vst.msk [vmem:[%s2394_s12 + $0xec] sm:$0xf] %vm1162_vm1, %v1909_v5  ;;  %v836_v11 = vadd.f32 %v2023_v9, %v2384_v36  ;;  %v827_v13 = vpop.f32.mrb[29].mxu1  ;;  %1188 = vst.msk [vmem:[%s2394_s12 + $0x64] sm:$0xf] %vm1162_vm1, %v1875_v6  ;;  %v700_v14 = vadd.f32 %v2384_v36, %v699_v12  ;;  %v1992_v16 = vpop.f32.mrb[30].mxu0 }
 0x129   : > { %1220 = vst.msk [vmem:[%s2394_s12 + $0xe4] sm:$0xf] %vm1162_vm1, %v1907_v7  ;;  %v828_v15 = vadd.f32 %v2384_v36, %v827_v13  ;;  %v2024_v17 = vpop.f32.mrb[30].mxu1  ;;  %v872_v18 = vmax.f32 %v708_v10, 0.0  ;;  %v711_v20 = vadd.f32 %v1992_v16, %v2384_v36  ;;  %v702_v22 = vpop.f32.mrb[31].mxu0 }
 0x12a   : > { %v904_v19 = vmax.f32 %v836_v11, 0.0  ;;  %v839_v21 = vadd.f32 %v2024_v17, %v2384_v36  ;;  %v830_v23 = vpop.f32.mrb[31].mxu1  ;;  %v870_v24 = vmax.f32 %v700_v14, 0.0  ;;  %v703_v26 = vadd.f32 %v2384_v36, %v702_v22 }
 0x12b   : > { %v902_v25 = vmax.f32 %v828_v15, 0.0  ;;  %v831_v27 = vadd.f32 %v2384_v36, %v830_v23  ;;  %v1880_v28 = vpack.c.bf16 %v872_v18, %v872_v18  ;;  %v873_v30 = vmax.f32 %v711_v20, 0.0  ;;  %1233 = sbr.rel (!%p2290_p4) target bundleno = 397 (0x18d), region = 36 }
 0x12c   : > { %v1912_v29 = vpack.c.bf16 %v904_v19, %v904_v19  ;;  %v905_v31 = vmax.f32 %v839_v21, 0.0  ;;  %v1878_v32 = vpack.c.bf16 %v870_v24, %v870_v24  ;;  %v871_v34 = vmax.f32 %v703_v26, 0.0 }
 0x12d   : > { %v1910_v33 = vpack.c.bf16 %v902_v25, %v902_v25  ;;  %v903_v35 = vmax.f32 %v831_v27, 0.0  ;;  %1193 = vst.msk [vmem:[%s2394_s12 + $0x78] sm:$0xf] %vm1162_vm1, %v1880_v28  ;;  %v1881_v37 = vpack.c.bf16 %v873_v30, %v873_v30 }
 0x12e   : > { %1225 = vst.msk [vmem:[%s2394_s12 + $0xf8] sm:$0xf] %vm1162_vm1, %v1912_v29  ;;  %v1913_v38 = vpack.c.bf16 %v905_v31, %v905_v31  ;;  %1191 = vst.msk [vmem:[%s2394_s12 + $0x70] sm:$0xf] %vm1162_vm1, %v1878_v32  ;;  %v1879_v36 = vpack.c.bf16 %v871_v34, %v871_v34 }
 0x12f   : > { %1223 = vst.msk [vmem:[%s2394_s12 + $0xf0] sm:$0xf] %vm1162_vm1, %v1910_v33  ;;  %v1911_v39 = vpack.c.bf16 %v903_v35, %v903_v35  ;;  %1194 = vst.msk [vmem:[%s2394_s12 + $0x7c] sm:$0xf] %vm1162_vm1, %v1881_v37 }
 0x130   : > { %1226 = vst.msk [vmem:[%s2394_s12 + $0xfc] sm:$0xf] %vm1162_vm1, %v1913_v38  ;;  %1192 = vst.msk [vmem:[%s2394_s12 + $0x74] sm:$0xf] %vm1162_vm1, %v1879_v36 }
 0x131   : > { %1224 = vst.msk [vmem:[%s2394_s12 + $0xf4] sm:$0xf] %vm1162_vm1, %v1911_v39 }
 0x132   : > { %s2791_s14 = smov (!%p1236_p8, %s1235_s14), 64 }
 0x133   : > { %s1835_s24 = sshll.u32 %s2791_s14, 6 }
 0x134   : > { %p1838_p9 = scmp.eq.s32.totalorder %s1835_s24, 0 }
 0x135   : > { %s2593_s25 = sshrl.u32 (!%p1838_p9), %s2791_s14, 6 }
 0x136   : > { %1244 = sbr.rel (%p1838_p9) target bundleno = 397 (0x18d), region = 40  ;;  %p1839_p10 = scmp.le.s32.totalorder (!%p1838_p9), %s2593_s25, 0 }
 0x13d   : > { %1649 = sbr.rel (%p1839_p10) target bundleno = 376 (0x178), region = 112  ;;  %s2784_s15 = smov (!%p1839_p10), %s2587_s22 }
 0x13e   : > { %s2785_s20 = smov (!%p1839_p10), %s2394_s12  ;;  %s2602_s23 = smov (!%p1839_p10), 0  }
 0x13f   : > { %s2604_s26 = smov (!%p1839_p10), 0  }
 0x144 LB: >> { %v1260_v40 = vld [vmem:[%s2219_s20] sm:$0xf]  ;;  %v1262_v41 = vld [vmem:[%s2219_s20 + $0x4] sm:$0xf]  ;;  %v1264_v42 = vld [vmem:[%s2219_s20 + $0x8] sm:$0xf]  ;;  %s2227_s26 = sphi %s2604_s26, %s1254_s26   ;;  %s2223_s23 = sphi %s2602_s23, %s2786_s23   ;;  %s2219_s20 = sphi %s2785_s20, %s1393_s20   ;;  %s2215_s15 = sphi %s2784_s15, %s1394_s15  }
 0x145   : >> { %1261 = vst [vmem:[%s2215_s15] sm:$0xf] %v1260_v40  ;;  %1263 = vst [vmem:[%s2215_s15 + $0x4] sm:$0xf] %v1262_v41  ;;  %v1266_v43 = vld [vmem:[%s2219_s20 + $0xc] sm:$0xf]  ;;  %s1388_s27 = sadd.s32 1, %s2223_s23 }
 0x146   : >> { %1265 = vst [vmem:[%s2215_s15 + $0x8] sm:$0xf] %v1264_v42  ;;  %v1268_v44 = vld [vmem:[%s2219_s20 + $0x10] sm:$0xf]  ;;  %v1270_v45 = vld [vmem:[%s2219_s20 + $0x14] sm:$0xf]  ;;  %p1389_p11 = scmp.ge.s32.totalorder %s1388_s27, %s2593_s25 }
 0x147   : >> { %1267 = vst [vmem:[%s2215_s15 + $0xc] sm:$0xf] %v1266_v43  ;;  %1269 = vst [vmem:[%s2215_s15 + $0x10] sm:$0xf] %v1268_v44  ;;  %v1272_v46 = vld [vmem:[%s2219_s20 + $0x18] sm:$0xf] }
 0x148   : >> { %1271 = vst [vmem:[%s2215_s15 + $0x14] sm:$0xf] %v1270_v45  ;;  %v1274_v47 = vld [vmem:[%s2219_s20 + $0x1c] sm:$0xf]  ;;  %v1276_v48 = vld [vmem:[%s2219_s20 + $0x20] sm:$0xf] }
 0x149   : >> { %1273 = vst [vmem:[%s2215_s15 + $0x18] sm:$0xf] %v1272_v46  ;;  %1275 = vst [vmem:[%s2215_s15 + $0x1c] sm:$0xf] %v1274_v47  ;;  %v1278_v49 = vld [vmem:[%s2219_s20 + $0x24] sm:$0xf] }
 0x14a   : >> { %1277 = vst [vmem:[%s2215_s15 + $0x20] sm:$0xf] %v1276_v48  ;;  %v1280_v50 = vld [vmem:[%s2219_s20 + $0x28] sm:$0xf]  ;;  %v1282_v51 = vld [vmem:[%s2219_s20 + $0x2c] sm:$0xf] }
 0x14b   : >> { %1279 = vst [vmem:[%s2215_s15 + $0x24] sm:$0xf] %v1278_v49  ;;  %1281 = vst [vmem:[%s2215_s15 + $0x28] sm:$0xf] %v1280_v50  ;;  %v1284_v52 = vld [vmem:[%s2219_s20 + $0x30] sm:$0xf] }
 0x14c   : >> { %1283 = vst [vmem:[%s2215_s15 + $0x2c] sm:$0xf] %v1282_v51  ;;  %v1286_v53 = vld [vmem:[%s2219_s20 + $0x34] sm:$0xf]  ;;  %v1288_v54 = vld [vmem:[%s2219_s20 + $0x38] sm:$0xf] }
 0x14d   : >> { %1285 = vst [vmem:[%s2215_s15 + $0x30] sm:$0xf] %v1284_v52  ;;  %1287 = vst [vmem:[%s2215_s15 + $0x34] sm:$0xf] %v1286_v53  ;;  %v1290_v55 = vld [vmem:[%s2219_s20 + $0x3c] sm:$0xf] }
 0x14e   : >> { %1289 = vst [vmem:[%s2215_s15 + $0x38] sm:$0xf] %v1288_v54  ;;  %v1292_v56 = vld [vmem:[%s2219_s20 + $0x40] sm:$0xf]  ;;  %v1294_v57 = vld [vmem:[%s2219_s20 + $0x44] sm:$0xf] }
 0x14f   : >> { %1291 = vst [vmem:[%s2215_s15 + $0x3c] sm:$0xf] %v1290_v55  ;;  %1293 = vst [vmem:[%s2215_s15 + $0x40] sm:$0xf] %v1292_v56  ;;  %v1296_v58 = vld [vmem:[%s2219_s20 + $0x48] sm:$0xf] }
 0x150   : >> { %1295 = vst [vmem:[%s2215_s15 + $0x44] sm:$0xf] %v1294_v57  ;;  %v1298_v59 = vld [vmem:[%s2219_s20 + $0x4c] sm:$0xf]  ;;  %v1300_v60 = vld [vmem:[%s2219_s20 + $0x50] sm:$0xf] }
 0x151   : >> { %1297 = vst [vmem:[%s2215_s15 + $0x48] sm:$0xf] %v1296_v58  ;;  %1299 = vst [vmem:[%s2215_s15 + $0x4c] sm:$0xf] %v1298_v59  ;;  %v1302_v61 = vld [vmem:[%s2219_s20 + $0x54] sm:$0xf] }
 0x152   : >> { %1301 = vst [vmem:[%s2215_s15 + $0x50] sm:$0xf] %v1300_v60  ;;  %v1304_v62 = vld [vmem:[%s2219_s20 + $0x58] sm:$0xf]  ;;  %v1306_v63 = vld [vmem:[%s2219_s20 + $0x5c] sm:$0xf] }
 0x153   : >> { %1303 = vst [vmem:[%s2215_s15 + $0x54] sm:$0xf] %v1302_v61  ;;  %1305 = vst [vmem:[%s2215_s15 + $0x58] sm:$0xf] %v1304_v62  ;;  %v1308_v0 = vld [vmem:[%s2219_s20 + $0x60] sm:$0xf] }
 0x154   : >> { %1307 = vst [vmem:[%s2215_s15 + $0x5c] sm:$0xf] %v1306_v63  ;;  %v1310_v1 = vld [vmem:[%s2219_s20 + $0x64] sm:$0xf]  ;;  %v1312_v2 = vld [vmem:[%s2219_s20 + $0x68] sm:$0xf] }
 0x155   : >> { %1309 = vst [vmem:[%s2215_s15 + $0x60] sm:$0xf] %v1308_v0  ;;  %1311 = vst [vmem:[%s2215_s15 + $0x64] sm:$0xf] %v1310_v1  ;;  %v1314_v3 = vld [vmem:[%s2219_s20 + $0x6c] sm:$0xf] }
 0x156   : >> { %1313 = vst [vmem:[%s2215_s15 + $0x68] sm:$0xf] %v1312_v2  ;;  %v1316_v4 = vld [vmem:[%s2219_s20 + $0x70] sm:$0xf]  ;;  %v1318_v5 = vld [vmem:[%s2219_s20 + $0x74] sm:$0xf] }
 0x157   : >> { %1315 = vst [vmem:[%s2215_s15 + $0x6c] sm:$0xf] %v1314_v3  ;;  %1317 = vst [vmem:[%s2215_s15 + $0x70] sm:$0xf] %v1316_v4  ;;  %v1320_v6 = vld [vmem:[%s2219_s20 + $0x78] sm:$0xf] }
 0x158   : >> { %1319 = vst [vmem:[%s2215_s15 + $0x74] sm:$0xf] %v1318_v5  ;;  %v1322_v7 = vld [vmem:[%s2219_s20 + $0x7c] sm:$0xf]  ;;  %v1324_v8 = vld [vmem:[%s2219_s20 + $0x80] sm:$0xf] }
 0x159   : >> { %1321 = vst [vmem:[%s2215_s15 + $0x78] sm:$0xf] %v1320_v6  ;;  %1323 = vst [vmem:[%s2215_s15 + $0x7c] sm:$0xf] %v1322_v7  ;;  %v1326_v9 = vld [vmem:[%s2219_s20 + $0x84] sm:$0xf] }
 0x15a   : >> { %1325 = vst [vmem:[%s2215_s15 + $0x80] sm:$0xf] %v1324_v8  ;;  %v1328_v10 = vld [vmem:[%s2219_s20 + $0x88] sm:$0xf]  ;;  %v1330_v11 = vld [vmem:[%s2219_s20 + $0x8c] sm:$0xf] }
 0x15b   : >> { %1327 = vst [vmem:[%s2215_s15 + $0x84] sm:$0xf] %v1326_v9  ;;  %1329 = vst [vmem:[%s2215_s15 + $0x88] sm:$0xf] %v1328_v10  ;;  %v1332_v12 = vld [vmem:[%s2219_s20 + $0x90] sm:$0xf] }
 0x15c   : >> { %1331 = vst [vmem:[%s2215_s15 + $0x8c] sm:$0xf] %v1330_v11  ;;  %v1334_v13 = vld [vmem:[%s2219_s20 + $0x94] sm:$0xf]  ;;  %v1336_v14 = vld [vmem:[%s2219_s20 + $0x98] sm:$0xf] }
 0x15d   : >> { %1333 = vst [vmem:[%s2215_s15 + $0x90] sm:$0xf] %v1332_v12  ;;  %1335 = vst [vmem:[%s2215_s15 + $0x94] sm:$0xf] %v1334_v13  ;;  %v1338_v15 = vld [vmem:[%s2219_s20 + $0x9c] sm:$0xf] }
 0x15e   : >> { %1337 = vst [vmem:[%s2215_s15 + $0x98] sm:$0xf] %v1336_v14  ;;  %v1340_v16 = vld [vmem:[%s2219_s20 + $0xa0] sm:$0xf]  ;;  %v1342_v17 = vld [vmem:[%s2219_s20 + $0xa4] sm:$0xf] }
 0x15f   : >> { %1339 = vst [vmem:[%s2215_s15 + $0x9c] sm:$0xf] %v1338_v15  ;;  %1341 = vst [vmem:[%s2215_s15 + $0xa0] sm:$0xf] %v1340_v16  ;;  %v1344_v18 = vld [vmem:[%s2219_s20 + $0xa8] sm:$0xf] }
 0x160   : >> { %1343 = vst [vmem:[%s2215_s15 + $0xa4] sm:$0xf] %v1342_v17  ;;  %v1346_v19 = vld [vmem:[%s2219_s20 + $0xac] sm:$0xf]  ;;  %v1348_v20 = vld [vmem:[%s2219_s20 + $0xb0] sm:$0xf] }
 0x161   : >> { %1345 = vst [vmem:[%s2215_s15 + $0xa8] sm:$0xf] %v1344_v18  ;;  %1347 = vst [vmem:[%s2215_s15 + $0xac] sm:$0xf] %v1346_v19  ;;  %v1350_v21 = vld [vmem:[%s2219_s20 + $0xb4] sm:$0xf] }
 0x162   : >> { %1349 = vst [vmem:[%s2215_s15 + $0xb0] sm:$0xf] %v1348_v20  ;;  %v1352_v22 = vld [vmem:[%s2219_s20 + $0xb8] sm:$0xf]  ;;  %v1354_v23 = vld [vmem:[%s2219_s20 + $0xbc] sm:$0xf] }
 0x163   : >> { %1351 = vst [vmem:[%s2215_s15 + $0xb4] sm:$0xf] %v1350_v21  ;;  %1353 = vst [vmem:[%s2215_s15 + $0xb8] sm:$0xf] %v1352_v22  ;;  %v1356_v24 = vld [vmem:[%s2219_s20 + $0xc0] sm:$0xf] }
 0x164   : >> { %1355 = vst [vmem:[%s2215_s15 + $0xbc] sm:$0xf] %v1354_v23  ;;  %v1358_v25 = vld [vmem:[%s2219_s20 + $0xc4] sm:$0xf]  ;;  %v1360_v26 = vld [vmem:[%s2219_s20 + $0xc8] sm:$0xf] }
 0x165   : >> { %1357 = vst [vmem:[%s2215_s15 + $0xc0] sm:$0xf] %v1356_v24  ;;  %1359 = vst [vmem:[%s2215_s15 + $0xc4] sm:$0xf] %v1358_v25  ;;  %v1362_v27 = vld [vmem:[%s2219_s20 + $0xcc] sm:$0xf] }
 0x166   : >> { %1361 = vst [vmem:[%s2215_s15 + $0xc8] sm:$0xf] %v1360_v26  ;;  %v1364_v28 = vld [vmem:[%s2219_s20 + $0xd0] sm:$0xf]  ;;  %v1366_v29 = vld [vmem:[%s2219_s20 + $0xd4] sm:$0xf] }
 0x167   : >> { %1363 = vst [vmem:[%s2215_s15 + $0xcc] sm:$0xf] %v1362_v27  ;;  %1365 = vst [vmem:[%s2215_s15 + $0xd0] sm:$0xf] %v1364_v28  ;;  %v1368_v30 = vld [vmem:[%s2219_s20 + $0xd8] sm:$0xf] }
 0x168   : >> { %1367 = vst [vmem:[%s2215_s15 + $0xd4] sm:$0xf] %v1366_v29  ;;  %v1370_v31 = vld [vmem:[%s2219_s20 + $0xdc] sm:$0xf]  ;;  %v1372_v32 = vld [vmem:[%s2219_s20 + $0xe0] sm:$0xf] }
 0x169   : >> { %1369 = vst [vmem:[%s2215_s15 + $0xd8] sm:$0xf] %v1368_v30  ;;  %1371 = vst [vmem:[%s2215_s15 + $0xdc] sm:$0xf] %v1370_v31  ;;  %v1374_v33 = vld [vmem:[%s2219_s20 + $0xe4] sm:$0xf] }
 0x16a   : >> { %1373 = vst [vmem:[%s2215_s15 + $0xe0] sm:$0xf] %v1372_v32  ;;  %v1376_v34 = vld [vmem:[%s2219_s20 + $0xe8] sm:$0xf]  ;;  %v1378_v35 = vld [vmem:[%s2219_s20 + $0xec] sm:$0xf] }
 0x16b   : >> { %1375 = vst [vmem:[%s2215_s15 + $0xe4] sm:$0xf] %v1374_v33  ;;  %1377 = vst [vmem:[%s2215_s15 + $0xe8] sm:$0xf] %v1376_v34  ;;  %v1380_v37 = vld [vmem:[%s2219_s20 + $0xf0] sm:$0xf] }
 0x16c   : >> { %1379 = vst [vmem:[%s2215_s15 + $0xec] sm:$0xf] %v1378_v35  ;;  %v1382_v38 = vld [vmem:[%s2219_s20 + $0xf4] sm:$0xf]  ;;  %v1384_v36 = vld [vmem:[%s2219_s20 + $0xf8] sm:$0xf] }
 0x16d   : >> { %1381 = vst [vmem:[%s2215_s15 + $0xf0] sm:$0xf] %v1380_v37  ;;  %1383 = vst [vmem:[%s2215_s15 + $0xf4] sm:$0xf] %v1382_v38  ;;  %v1386_v39 = vld [vmem:[%s2219_s20 + $0xfc] sm:$0xf] }
 0x16e   : >> { %1385 = vst [vmem:[%s2215_s15 + $0xf8] sm:$0xf] %v1384_v36  ;;  %1387 = vst [vmem:[%s2215_s15 + $0xfc] sm:$0xf] %v1386_v39  ;;  %s2793_s27 = smov (%p1389_p11, %s1388_s27), 0  ;;  %s1254_s26 = sadd.s32 1, %s2227_s26  }
 0x16f   : >> { %s1840_s28 = sshll.u32 %s2793_s27, 8  ;;  %p1253_p12 = scmp.ge.s32.totalorder %s1254_s26, %s2593_s25 }
 0x170   : >> { %s1393_s20 = scalar_lea.vmem %s2394_s12, %s1840_s28 [#allocation2]   ;;  %s1394_s15 = scalar_lea.vmem %s2587_s22, %s1840_s28  }
 0x171   : >> { %s2786_s23 = smov %s2793_s27  ;;  %1256 = sbr.rel (!%p1253_p12) target bundleno = 324 (0x144), region = 118 }
 0x178 PF: > { %s2761_s29 = sand.u32 63, %s2791_s14   ;;  %s1915_s30 = sshll.u32 %s2593_s25, 8 }
 0x179   : > { %s1399_s4 = scalar_lea.vmem %s2394_s12, %s1915_s30 [#allocation2]   ;;  %s1401_s5 = scalar_lea.vmem %s2587_s22, %s1915_s30  }
 0x17a   : > { %p1845_p13 = scmp.le.s32.totalorder %s2761_s29, 0 }
 0x17b   : > { %s2229_s6 = smov (!%p1845_p13), %s1401_s5   ;;  %s2233_s7 = smov (!%p1845_p13), %s1399_s4  }
 0x17c   : > { %1663 = sbr.rel (%p1845_p13) target bundleno = 397 (0x18d), region = 123  ;;  %s2237_s8 = smov (!%p1845_p13), 0  }
 0x17d   : > { %s2241_s9 = smov (!%p1845_p13), 0  }
 0x183 LB: >> { %v1411_v40 = vld [vmem:[%s2235_s7] sm:$0xf]  ;;  %s1413_s10 = sadd.s32 1, %s2239_s8  ;;  %s1405_s9 = sadd.s32 1, %s2243_s9   ;;  %s2243_s9 = sphi %s2241_s9, %s1405_s9   ;;  %s2239_s8 = sphi %s2237_s8, %s2238_s8   ;;  %s2235_s7 = sphi %s2233_s7, %s1418_s7   ;;  %s2231_s6 = sphi %s2229_s6, %s1419_s6  }
 0x184   : >> { %1412 = vst [vmem:[%s2231_s6] sm:$0xf] %v1411_v40  ;;  %p1414_p0 = scmp.ge.s32.totalorder %s1413_s10, %s2761_s29  ;;  %p1404_p1 = scmp.ge.s32.totalorder %s1405_s9, %s2761_s29 }
 0x186   : >> { %s2795_s10 = smov (%p1414_p0, %s1413_s10), 0  ;;  %1407 = sbr.rel (!%p1404_p1) target bundleno = 387 (0x183), region = 129 }
 0x187   : >> { %s1846_s11 = sshll.u32 %s2795_s10, 2  ;;  %s2238_s8 = smov %s2795_s10  }
 0x188   : >> { %s1418_s7 = scalar_lea.vmem %s1399_s4, %s1846_s11 [#allocation2]   ;;  %s1419_s6 = scalar_lea.vmem %s1401_s5, %s1846_s11  }
 0x18d PF: > { %p10_p2 = scmp.ge.s32.totalorder %s2280_s16, 9   ;;  %s2787_s12 = smov %s2207_s13 }
 0x18e   : > { %s2788_s13 = smov %s2288_s19  ;;  %s2789_s14 = smov %s2280_s16 }
 0x18f   :  { %12 = sbr.rel (!%p10_p2) target bundleno = 2 (0x2), region = 140 }

// kernel: encoder_forward.6
= control target key start
LH: loop header
LB: loop body
LE: loop exit
PB: predicated region body
PF: predicated region fallthrough
CT: control target
= control target key end

     0   :  { %s2228_s12 = smov 0   ;;  %s2230_s13 = smov 0   ;;  %s2722_s0 = inlined_call_operand.vmem [shape: bf16[968,128], index: 0, kind: input, shape index: {}]   ;;  %s2723_s1 = inlined_call_operand.vmem [shape: bf16[128,32], index: 1, kind: input, shape index: {}]   ;;  %s2724_s2 = inlined_call_operand.vmem [shape: f32[1,32], index: 2, kind: input, shape index: {}]   ;;  %s2725_s3 = inlined_call_operand.vmem [shape: bf16[968,32], index: 3, kind: output, shape index: {}]  }
   0x1   :  { %s2232_s14 = smov 0  }
   0x2 LB: > { %s2241_s15 = sadd.s32 4294967295, %s2174_s14   ;;  %s2243_s16 = sadd.s32 1, %s2174_s14   ;;  %s2174_s14 = sphi %s2232_s14, %s2732_s14   ;;  %s2170_s13 = sphi %s2230_s13, %s2731_s13   ;;  %s2166_s12 = sphi %s2228_s12, %s2730_s12  }
   0x3   : > { %s85_s17 = ssub.s32 %s2174_s14, %s2243_s16  ;;  %s88_s18 = sadd.s32 1, %s2170_s13 }
   0x4   : > { %p86_p0 = scmp.eq.s32.totalorder %s85_s17, 0  ;;  %p98_p1 = scmp.ne.s32.totalorder %s2170_s13, %s2166_s12 }
   0x5   : > { %p99_p2 = scmp.eq.s32.totalorder %s2241_s15, 1  ;;  %p1663_p3 = scmp.ge.s32.totalorder %s2174_s14, 1 }
   0x6   : > { %s2251_s19 = scalar_select %p86_p0, %s2170_s13, %s88_s18  }
   0x7   : > { %p2253_p4 = por %p99_p2, %p98_p1  ;;  %p146_p5 = scmp.lt.s32.totalorder %s2174_s14, 3 }
   0x9   : > { %p147_p6 = pnand %p1663_p3, %p146_p5 }
   0xa   : > { %v2080_v0 = vld [vmem:[%s2723_s1] sm:$0xff] (!%p147_p6)   ;;  %s2261_s23 = sshll.u32 (!%p147_p6), %s2241_s15, 6  ;;  %v2081_v1 = vld [vmem:[%s2723_s1 + $0x8] sm:$0xff] (!%p147_p6)   ;;  %v2082_v2 = vld [vmem:[%s2723_s1 + $0x10] sm:$0xff] (!%p147_p6)   ;;  %s170_s22 = sand.u32 (!%p147_p6), 1, %s2166_s12   ;;  %vm1129_vm0 = vcmask (!%p147_p6), 257024  }
   0xb   : > { %150 = sbr.rel (%p147_p6) target bundleno = 413 (0x19d), region = 32  ;;  %p178_p7 = scmp.lt.s32.totalorder (!%p147_p6), %s2261_s23, 120  ;;  %1896 = vmatprep.subr.bf16.mxu0 (!%p147_p6), %v2080_v0  ;;  %1976 = vmatprep.subr.bf16.mxu1 (!%p147_p6), %v2080_v0  ;;  %v2083_v3 = vld [vmem:[%s2723_s1 + $0x18] sm:$0xff] (!%p147_p6)   ;;  %v2084_v6 = vld [vmem:[%s2723_s1 + $0x20] sm:$0xff] (!%p147_p6)   ;;  %v2085_v7 = vld [vmem:[%s2723_s1 + $0x28] sm:$0xff] (!%p147_p6)  }
   0xc   : > { %1897 = vmatpush3.bf16.msra.mxu0 (!%p147_p6), %v2080_v0  ;;  %1984 = vmatpush3.bf16.msra.mxu1 (!%p147_p6), %v2080_v0  ;;  %v2086_v8 = vld [vmem:[%s2723_s1 + $0x30] sm:$0xff] (!%p147_p6)   ;;  %v2087_v9 = vld [vmem:[%s2723_s1 + $0x38] sm:$0xff] (!%p147_p6)   ;;  %v2327_v40 = vld [vmem:[%s2724_s2] ss:$0 sm:$0xff] (!%p147_p6) }
   0xd   : > { %1898 = vmatprep.subr.bf16.mxu0 (!%p147_p6), %v2081_v1  ;;  %1977 = vmatprep.subr.bf16.mxu1 (!%p147_p6), %v2081_v1 }
  0x10   : > { %1899 = vmatpush3.bf16.msra.mxu0 (!%p147_p6), %v2081_v1  ;;  %1985 = vmatpush3.bf16.msra.mxu1 (!%p147_p6), %v2081_v1 }
  0x11   : > { %1900 = vmatprep.subr.bf16.mxu0 (!%p147_p6), %v2082_v2  ;;  %1978 = vmatprep.subr.bf16.mxu1 (!%p147_p6), %v2082_v2 }
  0x12   : > { %s179_s26 = scalar_select %p178_p7, %s2261_s23, 120 }
  0x13   : > { %s1202_s27 = ssub.s32 (%p2253_p4), 121, %s2261_s23  ;;  %s1853_s28 = sshll.u32 (%p2253_p4), %s2241_s15, 8 }
  0x14   : > { %s1666_s29 = sshll.u32 %s179_s26, 2  ;;  %1901 = vmatpush3.bf16.msra.mxu0 %v2082_v2  ;;  %1986 = vmatpush3.bf16.msra.mxu1 %v2082_v2  ;;  %s1664_s26 = sshll.u32 %s170_s22, 8 }
  0x15   : > { %s2274_s5 = scalar_lea.vmem %s2722_s0, %s1666_s29  ;;  %1902 = vmatprep.subr.bf16.mxu0 %v2083_v3  ;;  %1979 = vmatprep.subr.bf16.mxu1 %v2083_v3  ;;  %s2337_s12 = scalar_lea.vmem [#allocation2], %s1664_s26  }
  0x16   : > { %v2088_v4 = vld [vmem:[%s2274_s5] sm:$0xff]   ;;  %v2090_v10 = vld [vmem:[%s2274_s5 + $0x8] sm:$0xff]   ;;  %v2092_v12 = vld [vmem:[%s2274_s5 + $0x10] sm:$0xff]   ;;  %p1203_p8 = scmp.lt.s32.totalorder (%p2253_p4), %s1202_s27, 64  ;;  %s2530_s4 = scalar_lea.vmem (%p2253_p4), %s2725_s3, %s1853_s28  }
  0x17   : > { %v2089_v5 = vld [vmem:[%s2274_s5 + $0x80] sm:$0xff]   ;;  %1912 = vmatprep.mubr.bf16.mxu0 %v2088_v4  ;;  %v2091_v11 = vld [vmem:[%s2274_s5 + $0x88] sm:$0xff]   ;;  %v2093_v13 = vld [vmem:[%s2274_s5 + $0x90] sm:$0xff]  }
  0x18   : > { %1944 = vmatprep.mubr.bf16.mxu1 %v2089_v5  ;;  %1903 = vmatpush3.bf16.msra.mxu0 %v2083_v3  ;;  %v2094_v14 = vld [vmem:[%s2274_s5 + $0x18] sm:$0xff]   ;;  %v2096_v16 = vld [vmem:[%s2274_s5 + $0x20] sm:$0xff]   ;;  %v2098_v18 = vld [vmem:[%s2274_s5 + $0x28] sm:$0xff]  }
  0x19   : > { %1987 = vmatpush3.bf16.msra.mxu1 %v2083_v3  ;;  %1904 = vmatprep.subr.bf16.mxu0 %v2084_v6  ;;  %v2095_v15 = vld [vmem:[%s2274_s5 + $0x98] sm:$0xff]   ;;  %v2097_v17 = vld [vmem:[%s2274_s5 + $0xa0] sm:$0xff]   ;;  %v2099_v19 = vld [vmem:[%s2274_s5 + $0xa8] sm:$0xff]  }
  0x1a   : > { %1980 = vmatprep.subr.bf16.mxu1 %v2084_v6  ;;  %v2100_v20 = vld [vmem:[%s2274_s5 + $0x30] sm:$0xff]   ;;  %v2102_v22 = vld [vmem:[%s2274_s5 + $0x38] sm:$0xff]   ;;  %v2104_v24 = vld [vmem:[%s2274_s5 + $0x40] sm:$0xff]  }
  0x1b   : > { %v2101_v21 = vld [vmem:[%s2274_s5 + $0xb0] sm:$0xff]   ;;  %v2103_v23 = vld [vmem:[%s2274_s5 + $0xb8] sm:$0xff]   ;;  %v2105_v25 = vld [vmem:[%s2274_s5 + $0xc0] sm:$0xff]  }
  0x1c   : > { %1905 = vmatpush3.bf16.msra.mxu0 %v2084_v6  ;;  %v2106_v26 = vld [vmem:[%s2274_s5 + $0x48] sm:$0xff]   ;;  %v2108_v28 = vld [vmem:[%s2274_s5 + $0x50] sm:$0xff]   ;;  %v2110_v30 = vld [vmem:[%s2274_s5 + $0x58] sm:$0xff]  }
  0x1d   : > { %1988 = vmatpush3.bf16.msra.mxu1 %v2084_v6  ;;  %1906 = vmatprep.subr.bf16.mxu0 %v2085_v7  ;;  %v2107_v27 = vld [vmem:[%s2274_s5 + $0xc8] sm:$0xff]   ;;  %v2109_v29 = vld [vmem:[%s2274_s5 + $0xd0] sm:$0xff]   ;;  %v2111_v31 = vld [vmem:[%s2274_s5 + $0xd8] sm:$0xff]  }
  0x1e   : > { %1981 = vmatprep.subr.bf16.mxu1 %v2085_v7  ;;  %v2112_v32 = vld [vmem:[%s2274_s5 + $0x60] sm:$0xff]   ;;  %v2114_v34 = vld [vmem:[%s2274_s5 + $0x68] sm:$0xff]   ;;  %v2116_v36 = vld [vmem:[%s2274_s5 + $0x70] sm:$0xff]  }
  0x1f   : > { %v2113_v33 = vld [vmem:[%s2274_s5 + $0xe0] sm:$0xff]   ;;  %v2115_v35 = vld [vmem:[%s2274_s5 + $0xe8] sm:$0xff]   ;;  %v2117_v37 = vld [vmem:[%s2274_s5 + $0xf0] sm:$0xff]  }
  0x20   : > { %1907 = vmatpush3.bf16.msra.mxu0 %v2085_v7  ;;  %v2118_v38 = vld [vmem:[%s2274_s5 + $0x78] sm:$0xff]  }
  0x21   : > { %1989 = vmatpush3.bf16.msra.mxu1 %v2085_v7  ;;  %1908 = vmatprep.subr.bf16.mxu0 %v2086_v8  ;;  %v2119_v39 = vld [vmem:[%s2274_s5 + $0xf8] sm:$0xff]  }
  0x22   : > { %1982 = vmatprep.subr.bf16.mxu1 %v2086_v8 }
  0x24   : > { %1909 = vmatpush3.bf16.msra.mxu0 %v2086_v8 }
  0x25   : > { %1990 = vmatpush3.bf16.msra.mxu1 %v2086_v8  ;;  %1910 = vmatprep.subr.bf16.mxu0 %v2087_v9 }
  0x26   : > { %1983 = vmatprep.subr.bf16.mxu1 %v2087_v9 }
  0x28   : > { %1911 = vmatpush3.bf16.msra.mxu0 %v2087_v9 }
  0x29   : > { %1991 = vmatpush3.bf16.msra.mxu1 %v2087_v9 }
  0x2b   : > { %1913 = vmatmul.mubr.bf16.vlgmr.msra.gmra.mrb[0].mxu0 %v2090_v10 }
  0x2c   : > { %1945 = vmatmul.mubr.bf16.vlgmr.msra.gmra.mrb[0].mxu1 %v2091_v11  ;;  %1916 = vmatprep.mubr.bf16.mxu0 %v2092_v12 }
  0x2d   : > { %1948 = vmatprep.mubr.bf16.mxu1 %v2093_v13 }
  0x33   : > { %1917 = vmatmul.mubr.bf16.gmra.mrb[4].mxu0 %v2094_v14 }
  0x34   : > { %1949 = vmatmul.mubr.bf16.gmra.mrb[4].mxu1 %v2095_v15  ;;  %1920 = vmatprep.mubr.bf16.mxu0 %v2096_v16 }
  0x35   : > { %1952 = vmatprep.mubr.bf16.mxu1 %v2097_v17 }
  0x3b   : > { %1921 = vmatmul.mubr.bf16.gmra.mrb[8].mxu0 %v2098_v18 }
  0x3c   : > { %1953 = vmatmul.mubr.bf16.gmra.mrb[8].mxu1 %v2099_v19  ;;  %1924 = vmatprep.mubr.bf16.mxu0 %v2100_v20 }
  0x3d   : > { %1956 = vmatprep.mubr.bf16.mxu1 %v2101_v21 }
  0x43   : > { %1925 = vmatmul.mubr.bf16.gmra.mrb[12].mxu0 %v2102_v22 }
  0x44   : > { %1957 = vmatmul.mubr.bf16.gmra.mrb[12].mxu1 %v2103_v23  ;;  %1928 = vmatprep.mubr.bf16.mxu0 %v2104_v24 }
  0x45   : > { %1960 = vmatprep.mubr.bf16.mxu1 %v2105_v25 }
  0x4b   : > { %1929 = vmatmul.mubr.bf16.gmra.mrb[16].mxu0 %v2106_v26 }
  0x4c   : > { %1961 = vmatmul.mubr.bf16.gmra.mrb[16].mxu1 %v2107_v27  ;;  %1932 = vmatprep.mubr.bf16.mxu0 %v2108_v28 }
  0x4d   : > { %1964 = vmatprep.mubr.bf16.mxu1 %v2109_v29 }
  0x53   : > { %1933 = vmatmul.mubr.bf16.gmra.mrb[20].mxu0 %v2110_v30 }
  0x54   : > { %1965 = vmatmul.mubr.bf16.gmra.mrb[20].mxu1 %v2111_v31  ;;  %1936 = vmatprep.mubr.bf16.mxu0 %v2112_v32 }
  0x55   : > { %1968 = vmatprep.mubr.bf16.mxu1 %v2113_v33 }
  0x5b   : > { %1937 = vmatmul.mubr.bf16.gmra.mrb[24].mxu0 %v2114_v34 }
  0x5c   : > { %1969 = vmatmul.mubr.bf16.gmra.mrb[24].mxu1 %v2115_v35  ;;  %1940 = vmatprep.mubr.bf16.mxu0 %v2116_v36 }
  0x5d   : > { %1972 = vmatprep.mubr.bf16.mxu1 %v2117_v37 }
  0x63   : > { %1941 = vmatmul.mubr.bf16.gmra.mrb[28].mxu0 %v2118_v38 }
  0x64   : > { %1973 = vmatmul.mubr.bf16.gmra.mrb[28].mxu1 %v2119_v39 }
  0xfe   : > { %v1914_v41 = vpop.f32.mrb[0].mxu0 }
  0xff   : > { %v1946_v42 = vpop.f32.mrb[0].mxu1  ;;  %v563_v43 = vadd.f32 %v1914_v41, %v2327_v40  ;;  %v554_v45 = vpop.f32.mrb[1].mxu0 }
 0x100   : > { %v691_v44 = vadd.f32 %v1946_v42, %v2327_v40  ;;  %v682_v46 = vpop.f32.mrb[1].mxu1  ;;  %v555_v47 = vadd.f32 %v2327_v40, %v554_v45  ;;  %v1915_v49 = vpop.f32.mrb[2].mxu0 }
 0x101   : > { %v683_v48 = vadd.f32 %v2327_v40, %v682_v46  ;;  %v1947_v50 = vpop.f32.mrb[2].mxu1  ;;  %v811_v51 = vmax.f32 %v563_v43, 0.0  ;;  %v566_v53 = vadd.f32 %v1915_v49, %v2327_v40  ;;  %v557_v55 = vpop.f32.mrb[3].mxu0 }
 0x102   : > { %v843_v52 = vmax.f32 %v691_v44, 0.0  ;;  %v694_v54 = vadd.f32 %v1947_v50, %v2327_v40  ;;  %v685_v56 = vpop.f32.mrb[3].mxu1  ;;  %v809_v57 = vmax.f32 %v555_v47, 0.0  ;;  %v558_v59 = vadd.f32 %v2327_v40, %v557_v55 }
 0x103   : > { %v841_v58 = vmax.f32 %v683_v48, 0.0  ;;  %v686_v60 = vadd.f32 %v2327_v40, %v685_v56  ;;  %v1791_v61 = vpack.c.bf16 %v811_v51, %v811_v51  ;;  %v812_v63 = vmax.f32 %v566_v53, 0.0 }
 0x104   : > { %v1823_v62 = vpack.c.bf16 %v843_v52, %v843_v52  ;;  %v844_v0 = vmax.f32 %v694_v54, 0.0  ;;  %v1789_v1 = vpack.c.bf16 %v809_v57, %v809_v57  ;;  %v810_v3 = vmax.f32 %v558_v59, 0.0 }
 0x105   : > { %v1821_v2 = vpack.c.bf16 %v841_v58, %v841_v58  ;;  %v842_v4 = vmax.f32 %v686_v60, 0.0  ;;  %1132 = vst.msk [vmem:[%s2337_s12 + $0x8] sm:$0xf] %vm1129_vm0, %v1791_v61  ;;  %v1792_v5 = vpack.c.bf16 %v812_v63, %v812_v63 }
 0x106   : > { %1164 = vst.msk [vmem:[%s2337_s12 + $0x88] sm:$0xf] %vm1129_vm0, %v1823_v62  ;;  %v1824_v6 = vpack.c.bf16 %v844_v0, %v844_v0  ;;  %1130 = vst.msk [vmem:[%s2337_s12] sm:$0xf] %vm1129_vm0, %v1789_v1  ;;  %v1790_v7 = vpack.c.bf16 %v810_v3, %v810_v3  ;;  %v1918_v9 = vpop.f32.mrb[4].mxu0 }
 0x107   : > { %1162 = vst.msk [vmem:[%s2337_s12 + $0x80] sm:$0xf] %vm1129_vm0, %v1821_v2  ;;  %v1822_v8 = vpack.c.bf16 %v842_v4, %v842_v4  ;;  %v1950_v10 = vpop.f32.mrb[4].mxu1  ;;  %1133 = vst.msk [vmem:[%s2337_s12 + $0xc] sm:$0xf] %vm1129_vm0, %v1792_v5  ;;  %v579_v11 = vadd.f32 %v1918_v9, %v2327_v40  ;;  %v570_v13 = vpop.f32.mrb[5].mxu0 }
 0x108   : > { %1165 = vst.msk [vmem:[%s2337_s12 + $0x8c] sm:$0xf] %vm1129_vm0, %v1824_v6  ;;  %v707_v12 = vadd.f32 %v1950_v10, %v2327_v40  ;;  %v698_v14 = vpop.f32.mrb[5].mxu1  ;;  %1131 = vst.msk [vmem:[%s2337_s12 + $0x4] sm:$0xf] %vm1129_vm0, %v1790_v7  ;;  %v571_v15 = vadd.f32 %v2327_v40, %v570_v13  ;;  %v1919_v17 = vpop.f32.mrb[6].mxu0 }
 0x109   : > { %1163 = vst.msk [vmem:[%s2337_s12 + $0x84] sm:$0xf] %vm1129_vm0, %v1822_v8  ;;  %v699_v16 = vadd.f32 %v2327_v40, %v698_v14  ;;  %v1951_v18 = vpop.f32.mrb[6].mxu1  ;;  %v815_v19 = vmax.f32 %v579_v11, 0.0  ;;  %v582_v21 = vadd.f32 %v1919_v17, %v2327_v40  ;;  %v573_v23 = vpop.f32.mrb[7].mxu0 }
 0x10a   : > { %v847_v20 = vmax.f32 %v707_v12, 0.0  ;;  %v710_v22 = vadd.f32 %v1951_v18, %v2327_v40  ;;  %v701_v24 = vpop.f32.mrb[7].mxu1  ;;  %v813_v25 = vmax.f32 %v571_v15, 0.0  ;;  %v574_v27 = vadd.f32 %v2327_v40, %v573_v23 }
 0x10b   : > { %v845_v26 = vmax.f32 %v699_v16, 0.0  ;;  %v702_v28 = vadd.f32 %v2327_v40, %v701_v24  ;;  %v1795_v29 = vpack.c.bf16 %v815_v19, %v815_v19  ;;  %v816_v31 = vmax.f32 %v582_v21, 0.0 }
 0x10c   : > { %v1827_v30 = vpack.c.bf16 %v847_v20, %v847_v20  ;;  %v848_v32 = vmax.f32 %v710_v22, 0.0  ;;  %v1793_v33 = vpack.c.bf16 %v813_v25, %v813_v25  ;;  %v814_v35 = vmax.f32 %v574_v27, 0.0 }
 0x10d   : > { %v1825_v34 = vpack.c.bf16 %v845_v26, %v845_v26  ;;  %v846_v36 = vmax.f32 %v702_v28, 0.0  ;;  %1136 = vst.msk [vmem:[%s2337_s12 + $0x18] sm:$0xf] %vm1129_vm0, %v1795_v29  ;;  %v1796_v37 = vpack.c.bf16 %v816_v31, %v816_v31 }
 0x10e   : > { %1168 = vst.msk [vmem:[%s2337_s12 + $0x98] sm:$0xf] %vm1129_vm0, %v1827_v30  ;;  %v1828_v38 = vpack.c.bf16 %v848_v32, %v848_v32  ;;  %1134 = vst.msk [vmem:[%s2337_s12 + $0x10] sm:$0xf] %vm1129_vm0, %v1793_v33  ;;  %v1794_v39 = vpack.c.bf16 %v814_v35, %v814_v35  ;;  %v1922_v42 = vpop.f32.mrb[8].mxu0 }
 0x10f   : > { %1166 = vst.msk [vmem:[%s2337_s12 + $0x90] sm:$0xf] %vm1129_vm0, %v1825_v34  ;;  %v1826_v41 = vpack.c.bf16 %v846_v36, %v846_v36  ;;  %v1954_v43 = vpop.f32.mrb[8].mxu1  ;;  %1137 = vst.msk [vmem:[%s2337_s12 + $0x1c] sm:$0xf] %vm1129_vm0, %v1796_v37  ;;  %v595_v44 = vadd.f32 %v1922_v42, %v2327_v40  ;;  %v586_v46 = vpop.f32.mrb[9].mxu0 }
 0x110   : > { %1169 = vst.msk [vmem:[%s2337_s12 + $0x9c] sm:$0xf] %vm1129_vm0, %v1828_v38  ;;  %v723_v45 = vadd.f32 %v1954_v43, %v2327_v40  ;;  %v714_v47 = vpop.f32.mrb[9].mxu1  ;;  %1135 = vst.msk [vmem:[%s2337_s12 + $0x14] sm:$0xf] %vm1129_vm0, %v1794_v39  ;;  %v587_v48 = vadd.f32 %v2327_v40, %v586_v46  ;;  %v1923_v50 = vpop.f32.mrb[10].mxu0 }
 0x111   : > { %1167 = vst.msk [vmem:[%s2337_s12 + $0x94] sm:$0xf] %vm1129_vm0, %v1826_v41  ;;  %v715_v49 = vadd.f32 %v2327_v40, %v714_v47  ;;  %v1955_v51 = vpop.f32.mrb[10].mxu1  ;;  %v819_v52 = vmax.f32 %v595_v44, 0.0  ;;  %v598_v54 = vadd.f32 %v1923_v50, %v2327_v40  ;;  %v589_v56 = vpop.f32.mrb[11].mxu0 }
 0x112   : > { %v851_v53 = vmax.f32 %v723_v45, 0.0  ;;  %v726_v55 = vadd.f32 %v1955_v51, %v2327_v40  ;;  %v717_v57 = vpop.f32.mrb[11].mxu1  ;;  %v817_v58 = vmax.f32 %v587_v48, 0.0  ;;  %v590_v60 = vadd.f32 %v2327_v40, %v589_v56 }
 0x113   : > { %v849_v59 = vmax.f32 %v715_v49, 0.0  ;;  %v718_v61 = vadd.f32 %v2327_v40, %v717_v57  ;;  %v1799_v62 = vpack.c.bf16 %v819_v52, %v819_v52  ;;  %v820_v0 = vmax.f32 %v598_v54, 0.0 }
 0x114   : > { %v1831_v63 = vpack.c.bf16 %v851_v53, %v851_v53  ;;  %v852_v1 = vmax.f32 %v726_v55, 0.0  ;;  %v1797_v2 = vpack.c.bf16 %v817_v58, %v817_v58  ;;  %v818_v4 = vmax.f32 %v590_v60, 0.0 }
 0x115   : > { %v1829_v3 = vpack.c.bf16 %v849_v59, %v849_v59  ;;  %v850_v5 = vmax.f32 %v718_v61, 0.0  ;;  %1140 = vst.msk [vmem:[%s2337_s12 + $0x28] sm:$0xf] %vm1129_vm0, %v1799_v62  ;;  %v1800_v6 = vpack.c.bf16 %v820_v0, %v820_v0 }
 0x116   : > { %1172 = vst.msk [vmem:[%s2337_s12 + $0xa8] sm:$0xf] %vm1129_vm0, %v1831_v63  ;;  %v1832_v7 = vpack.c.bf16 %v852_v1, %v852_v1  ;;  %1138 = vst.msk [vmem:[%s2337_s12 + $0x20] sm:$0xf] %vm1129_vm0, %v1797_v2  ;;  %v1798_v8 = vpack.c.bf16 %v818_v4, %v818_v4  ;;  %v1926_v10 = vpop.f32.mrb[12].mxu0 }
 0x117   : > { %1170 = vst.msk [vmem:[%s2337_s12 + $0xa0] sm:$0xf] %vm1129_vm0, %v1829_v3  ;;  %v1830_v9 = vpack.c.bf16 %v850_v5, %v850_v5  ;;  %v1958_v11 = vpop.f32.mrb[12].mxu1  ;;  %1141 = vst.msk [vmem:[%s2337_s12 + $0x2c] sm:$0xf] %vm1129_vm0, %v1800_v6  ;;  %v611_v12 = vadd.f32 %v1926_v10, %v2327_v40  ;;  %v602_v14 = vpop.f32.mrb[13].mxu0 }
 0x118   : > { %1173 = vst.msk [vmem:[%s2337_s12 + $0xac] sm:$0xf] %vm1129_vm0, %v1832_v7  ;;  %v739_v13 = vadd.f32 %v1958_v11, %v2327_v40  ;;  %v730_v15 = vpop.f32.mrb[13].mxu1  ;;  %1139 = vst.msk [vmem:[%s2337_s12 + $0x24] sm:$0xf] %vm1129_vm0, %v1798_v8  ;;  %v603_v16 = vadd.f32 %v2327_v40, %v602_v14  ;;  %v1927_v18 = vpop.f32.mrb[14].mxu0 }
 0x119   : > { %1171 = vst.msk [vmem:[%s2337_s12 + $0xa4] sm:$0xf] %vm1129_vm0, %v1830_v9  ;;  %v731_v17 = vadd.f32 %v2327_v40, %v730_v15  ;;  %v1959_v19 = vpop.f32.mrb[14].mxu1  ;;  %v823_v20 = vmax.f32 %v611_v12, 0.0  ;;  %v614_v22 = vadd.f32 %v1927_v18, %v2327_v40  ;;  %v605_v24 = vpop.f32.mrb[15].mxu0 }
 0x11a   : > { %v855_v21 = vmax.f32 %v739_v13, 0.0  ;;  %v742_v23 = vadd.f32 %v1959_v19, %v2327_v40  ;;  %v733_v25 = vpop.f32.mrb[15].mxu1  ;;  %v821_v26 = vmax.f32 %v603_v16, 0.0  ;;  %v606_v28 = vadd.f32 %v2327_v40, %v605_v24 }
 0x11b   : > { %v853_v27 = vmax.f32 %v731_v17, 0.0  ;;  %v734_v29 = vadd.f32 %v2327_v40, %v733_v25  ;;  %v1803_v30 = vpack.c.bf16 %v823_v20, %v823_v20  ;;  %v824_v32 = vmax.f32 %v614_v22, 0.0 }
 0x11c   : > { %v1835_v31 = vpack.c.bf16 %v855_v21, %v855_v21  ;;  %v856_v33 = vmax.f32 %v742_v23, 0.0  ;;  %v1801_v34 = vpack.c.bf16 %v821_v26, %v821_v26  ;;  %v822_v36 = vmax.f32 %v606_v28, 0.0 }
 0x11d   : > { %v1833_v35 = vpack.c.bf16 %v853_v27, %v853_v27  ;;  %v854_v37 = vmax.f32 %v734_v29, 0.0  ;;  %1144 = vst.msk [vmem:[%s2337_s12 + $0x38] sm:$0xf] %vm1129_vm0, %v1803_v30  ;;  %v1804_v38 = vpack.c.bf16 %v824_v32, %v824_v32 }
 0x11e   : > { %1176 = vst.msk [vmem:[%s2337_s12 + $0xb8] sm:$0xf] %vm1129_vm0, %v1835_v31  ;;  %v1836_v39 = vpack.c.bf16 %v856_v33, %v856_v33  ;;  %1142 = vst.msk [vmem:[%s2337_s12 + $0x30] sm:$0xf] %vm1129_vm0, %v1801_v34  ;;  %v1802_v41 = vpack.c.bf16 %v822_v36, %v822_v36  ;;  %v1930_v43 = vpop.f32.mrb[16].mxu0 }
 0x11f   : > { %1174 = vst.msk [vmem:[%s2337_s12 + $0xb0] sm:$0xf] %vm1129_vm0, %v1833_v35  ;;  %v1834_v42 = vpack.c.bf16 %v854_v37, %v854_v37  ;;  %v1962_v44 = vpop.f32.mrb[16].mxu1  ;;  %1145 = vst.msk [vmem:[%s2337_s12 + $0x3c] sm:$0xf] %vm1129_vm0, %v1804_v38  ;;  %v627_v45 = vadd.f32 %v1930_v43, %v2327_v40  ;;  %v618_v47 = vpop.f32.mrb[17].mxu0 }
 0x120   : > { %1177 = vst.msk [vmem:[%s2337_s12 + $0xbc] sm:$0xf] %vm1129_vm0, %v1836_v39  ;;  %v755_v46 = vadd.f32 %v1962_v44, %v2327_v40  ;;  %v746_v48 = vpop.f32.mrb[17].mxu1  ;;  %1143 = vst.msk [vmem:[%s2337_s12 + $0x34] sm:$0xf] %vm1129_vm0, %v1802_v41  ;;  %v619_v49 = vadd.f32 %v2327_v40, %v618_v47  ;;  %v1931_v51 = vpop.f32.mrb[18].mxu0 }
 0x121   : > { %1175 = vst.msk [vmem:[%s2337_s12 + $0xb4] sm:$0xf] %vm1129_vm0, %v1834_v42  ;;  %v747_v50 = vadd.f32 %v2327_v40, %v746_v48  ;;  %v1963_v52 = vpop.f32.mrb[18].mxu1  ;;  %v827_v53 = vmax.f32 %v627_v45, 0.0  ;;  %v630_v55 = vadd.f32 %v1931_v51, %v2327_v40  ;;  %v621_v57 = vpop.f32.mrb[19].mxu0 }
 0x122   : > { %v859_v54 = vmax.f32 %v755_v46, 0.0  ;;  %v758_v56 = vadd.f32 %v1963_v52, %v2327_v40  ;;  %v749_v58 = vpop.f32.mrb[19].mxu1  ;;  %v825_v59 = vmax.f32 %v619_v49, 0.0  ;;  %v622_v61 = vadd.f32 %v2327_v40, %v621_v57 }
 0x123   : > { %v857_v60 = vmax.f32 %v747_v50, 0.0  ;;  %v750_v62 = vadd.f32 %v2327_v40, %v749_v58  ;;  %v1807_v63 = vpack.c.bf16 %v827_v53, %v827_v53  ;;  %v828_v1 = vmax.f32 %v630_v55, 0.0 }
 0x124   : > { %v1839_v0 = vpack.c.bf16 %v859_v54, %v859_v54  ;;  %v860_v2 = vmax.f32 %v758_v56, 0.0  ;;  %v1805_v3 = vpack.c.bf16 %v825_v59, %v825_v59  ;;  %v826_v5 = vmax.f32 %v622_v61, 0.0 }
 0x125   : > { %v1837_v4 = vpack.c.bf16 %v857_v60, %v857_v60  ;;  %v858_v6 = vmax.f32 %v750_v62, 0.0  ;;  %1148 = vst.msk [vmem:[%s2337_s12 + $0x48] sm:$0xf] %vm1129_vm0, %v1807_v63  ;;  %v1808_v7 = vpack.c.bf16 %v828_v1, %v828_v1 }
 0x126   : > { %1180 = vst.msk [vmem:[%s2337_s12 + $0xc8] sm:$0xf] %vm1129_vm0, %v1839_v0  ;;  %v1840_v8 = vpack.c.bf16 %v860_v2, %v860_v2  ;;  %1146 = vst.msk [vmem:[%s2337_s12 + $0x40] sm:$0xf] %vm1129_vm0, %v1805_v3  ;;  %v1806_v9 = vpack.c.bf16 %v826_v5, %v826_v5  ;;  %v1934_v11 = vpop.f32.mrb[20].mxu0 }
 0x127   : > { %1178 = vst.msk [vmem:[%s2337_s12 + $0xc0] sm:$0xf] %vm1129_vm0, %v1837_v4  ;;  %v1838_v10 = vpack.c.bf16 %v858_v6, %v858_v6  ;;  %v1966_v12 = vpop.f32.mrb[20].mxu1  ;;  %1149 = vst.msk [vmem:[%s2337_s12 + $0x4c] sm:$0xf] %vm1129_vm0, %v1808_v7  ;;  %v643_v13 = vadd.f32 %v1934_v11, %v2327_v40  ;;  %v634_v15 = vpop.f32.mrb[21].mxu0 }
 0x128   : > { %1181 = vst.msk [vmem:[%s2337_s12 + $0xcc] sm:$0xf] %vm1129_vm0, %v1840_v8  ;;  %v771_v14 = vadd.f32 %v1966_v12, %v2327_v40  ;;  %v762_v16 = vpop.f32.mrb[21].mxu1  ;;  %1147 = vst.msk [vmem:[%s2337_s12 + $0x44] sm:$0xf] %vm1129_vm0, %v1806_v9  ;;  %v635_v17 = vadd.f32 %v2327_v40, %v634_v15  ;;  %v1935_v19 = vpop.f32.mrb[22].mxu0 }
 0x129   : > { %1179 = vst.msk [vmem:[%s2337_s12 + $0xc4] sm:$0xf] %vm1129_vm0, %v1838_v10  ;;  %v763_v18 = vadd.f32 %v2327_v40, %v762_v16  ;;  %v1967_v20 = vpop.f32.mrb[22].mxu1  ;;  %v831_v21 = vmax.f32 %v643_v13, 0.0  ;;  %v646_v23 = vadd.f32 %v1935_v19, %v2327_v40  ;;  %v637_v25 = vpop.f32.mrb[23].mxu0 }
 0x12a   : > { %v863_v22 = vmax.f32 %v771_v14, 0.0  ;;  %v774_v24 = vadd.f32 %v1967_v20, %v2327_v40  ;;  %v765_v26 = vpop.f32.mrb[23].mxu1  ;;  %v829_v27 = vmax.f32 %v635_v17, 0.0  ;;  %v638_v29 = vadd.f32 %v2327_v40, %v637_v25 }
 0x12b   : > { %v861_v28 = vmax.f32 %v763_v18, 0.0  ;;  %v766_v30 = vadd.f32 %v2327_v40, %v765_v26  ;;  %v1811_v31 = vpack.c.bf16 %v831_v21, %v831_v21  ;;  %v832_v33 = vmax.f32 %v646_v23, 0.0 }
 0x12c   : > { %v1843_v32 = vpack.c.bf16 %v863_v22, %v863_v22  ;;  %v864_v34 = vmax.f32 %v774_v24, 0.0  ;;  %v1809_v35 = vpack.c.bf16 %v829_v27, %v829_v27  ;;  %v830_v37 = vmax.f32 %v638_v29, 0.0 }
 0x12d   : > { %v1841_v36 = vpack.c.bf16 %v861_v28, %v861_v28  ;;  %v862_v38 = vmax.f32 %v766_v30, 0.0  ;;  %1152 = vst.msk [vmem:[%s2337_s12 + $0x58] sm:$0xf] %vm1129_vm0, %v1811_v31  ;;  %v1812_v39 = vpack.c.bf16 %v832_v33, %v832_v33 }
 0x12e   : > { %1184 = vst.msk [vmem:[%s2337_s12 + $0xd8] sm:$0xf] %vm1129_vm0, %v1843_v32  ;;  %v1844_v41 = vpack.c.bf16 %v864_v34, %v864_v34  ;;  %1150 = vst.msk [vmem:[%s2337_s12 + $0x50] sm:$0xf] %vm1129_vm0, %v1809_v35  ;;  %v1810_v42 = vpack.c.bf16 %v830_v37, %v830_v37  ;;  %v1938_v44 = vpop.f32.mrb[24].mxu0 }
 0x12f   : > { %1182 = vst.msk [vmem:[%s2337_s12 + $0xd0] sm:$0xf] %vm1129_vm0, %v1841_v36  ;;  %v1842_v43 = vpack.c.bf16 %v862_v38, %v862_v38  ;;  %v1970_v45 = vpop.f32.mrb[24].mxu1  ;;  %1153 = vst.msk [vmem:[%s2337_s12 + $0x5c] sm:$0xf] %vm1129_vm0, %v1812_v39  ;;  %v659_v46 = vadd.f32 %v1938_v44, %v2327_v40  ;;  %v650_v48 = vpop.f32.mrb[25].mxu0 }
 0x130   : > { %1185 = vst.msk [vmem:[%s2337_s12 + $0xdc] sm:$0xf] %vm1129_vm0, %v1844_v41  ;;  %v787_v47 = vadd.f32 %v1970_v45, %v2327_v40  ;;  %v778_v49 = vpop.f32.mrb[25].mxu1  ;;  %1151 = vst.msk [vmem:[%s2337_s12 + $0x54] sm:$0xf] %vm1129_vm0, %v1810_v42  ;;  %v651_v50 = vadd.f32 %v2327_v40, %v650_v48  ;;  %v1939_v52 = vpop.f32.mrb[26].mxu0 }
 0x131   : > { %1183 = vst.msk [vmem:[%s2337_s12 + $0xd4] sm:$0xf] %vm1129_vm0, %v1842_v43  ;;  %v779_v51 = vadd.f32 %v2327_v40, %v778_v49  ;;  %v1971_v53 = vpop.f32.mrb[26].mxu1  ;;  %v835_v54 = vmax.f32 %v659_v46, 0.0  ;;  %v662_v56 = vadd.f32 %v1939_v52, %v2327_v40  ;;  %v653_v58 = vpop.f32.mrb[27].mxu0 }
 0x132   : > { %v867_v55 = vmax.f32 %v787_v47, 0.0  ;;  %v790_v57 = vadd.f32 %v1971_v53, %v2327_v40  ;;  %v781_v59 = vpop.f32.mrb[27].mxu1  ;;  %v833_v60 = vmax.f32 %v651_v50, 0.0  ;;  %v654_v62 = vadd.f32 %v2327_v40, %v653_v58 }
 0x133   : > { %v865_v61 = vmax.f32 %v779_v51, 0.0  ;;  %v782_v63 = vadd.f32 %v2327_v40, %v781_v59  ;;  %v1815_v0 = vpack.c.bf16 %v835_v54, %v835_v54  ;;  %v836_v2 = vmax.f32 %v662_v56, 0.0 }
 0x134   : > { %v1847_v1 = vpack.c.bf16 %v867_v55, %v867_v55  ;;  %v868_v3 = vmax.f32 %v790_v57, 0.0  ;;  %v1813_v4 = vpack.c.bf16 %v833_v60, %v833_v60  ;;  %v834_v6 = vmax.f32 %v654_v62, 0.0 }
 0x135   : > { %v1845_v5 = vpack.c.bf16 %v865_v61, %v865_v61  ;;  %v866_v7 = vmax.f32 %v782_v63, 0.0  ;;  %1156 = vst.msk [vmem:[%s2337_s12 + $0x68] sm:$0xf] %vm1129_vm0, %v1815_v0  ;;  %v1816_v8 = vpack.c.bf16 %v836_v2, %v836_v2 }
 0x136   : > { %1188 = vst.msk [vmem:[%s2337_s12 + $0xe8] sm:$0xf] %vm1129_vm0, %v1847_v1  ;;  %v1848_v9 = vpack.c.bf16 %v868_v3, %v868_v3  ;;  %1154 = vst.msk [vmem:[%s2337_s12 + $0x60] sm:$0xf] %vm1129_vm0, %v1813_v4  ;;  %v1814_v10 = vpack.c.bf16 %v834_v6, %v834_v6  ;;  %v1942_v12 = vpop.f32.mrb[28].mxu0 }
 0x137   : > { %1186 = vst.msk [vmem:[%s2337_s12 + $0xe0] sm:$0xf] %vm1129_vm0, %v1845_v5  ;;  %v1846_v11 = vpack.c.bf16 %v866_v7, %v866_v7  ;;  %v1974_v13 = vpop.f32.mrb[28].mxu1  ;;  %1157 = vst.msk [vmem:[%s2337_s12 + $0x6c] sm:$0xf] %vm1129_vm0, %v1816_v8  ;;  %v675_v14 = vadd.f32 %v1942_v12, %v2327_v40  ;;  %v666_v16 = vpop.f32.mrb[29].mxu0 }
 0x138   : > { %1189 = vst.msk [vmem:[%s2337_s12 + $0xec] sm:$0xf] %vm1129_vm0, %v1848_v9  ;;  %v803_v15 = vadd.f32 %v1974_v13, %v2327_v40  ;;  %v794_v17 = vpop.f32.mrb[29].mxu1  ;;  %1155 = vst.msk [vmem:[%s2337_s12 + $0x64] sm:$0xf] %vm1129_vm0, %v1814_v10  ;;  %v667_v18 = vadd.f32 %v2327_v40, %v666_v16  ;;  %v1943_v20 = vpop.f32.mrb[30].mxu0 }
 0x139   : > { %1187 = vst.msk [vmem:[%s2337_s12 + $0xe4] sm:$0xf] %vm1129_vm0, %v1846_v11  ;;  %v795_v19 = vadd.f32 %v2327_v40, %v794_v17  ;;  %v1975_v21 = vpop.f32.mrb[30].mxu1  ;;  %v839_v22 = vmax.f32 %v675_v14, 0.0  ;;  %v678_v24 = vadd.f32 %v1943_v20, %v2327_v40  ;;  %v669_v26 = vpop.f32.mrb[31].mxu0 }
 0x13a   : > { %v871_v23 = vmax.f32 %v803_v15, 0.0  ;;  %v806_v25 = vadd.f32 %v1975_v21, %v2327_v40  ;;  %v797_v27 = vpop.f32.mrb[31].mxu1  ;;  %v837_v28 = vmax.f32 %v667_v18, 0.0  ;;  %v670_v30 = vadd.f32 %v2327_v40, %v669_v26 }
 0x13b   : > { %v869_v29 = vmax.f32 %v795_v19, 0.0  ;;  %v798_v31 = vadd.f32 %v2327_v40, %v797_v27  ;;  %v1819_v32 = vpack.c.bf16 %v839_v22, %v839_v22  ;;  %v840_v34 = vmax.f32 %v678_v24, 0.0  ;;  %1200 = sbr.rel (!%p2253_p4) target bundleno = 413 (0x19d), region = 36 }
 0x13c   : > { %v1851_v33 = vpack.c.bf16 %v871_v23, %v871_v23  ;;  %v872_v35 = vmax.f32 %v806_v25, 0.0  ;;  %v1817_v36 = vpack.c.bf16 %v837_v28, %v837_v28  ;;  %v838_v38 = vmax.f32 %v670_v30, 0.0 }
 0x13d   : > { %v1849_v37 = vpack.c.bf16 %v869_v29, %v869_v29  ;;  %v870_v39 = vmax.f32 %v798_v31, 0.0  ;;  %1160 = vst.msk [vmem:[%s2337_s12 + $0x78] sm:$0xf] %vm1129_vm0, %v1819_v32  ;;  %v1820_v41 = vpack.c.bf16 %v840_v34, %v840_v34 }
 0x13e   : > { %1192 = vst.msk [vmem:[%s2337_s12 + $0xf8] sm:$0xf] %vm1129_vm0, %v1851_v33  ;;  %v1852_v42 = vpack.c.bf16 %v872_v35, %v872_v35  ;;  %1158 = vst.msk [vmem:[%s2337_s12 + $0x70] sm:$0xf] %vm1129_vm0, %v1817_v36  ;;  %v1818_v40 = vpack.c.bf16 %v838_v38, %v838_v38 }
 0x13f   : > { %1190 = vst.msk [vmem:[%s2337_s12 + $0xf0] sm:$0xf] %vm1129_vm0, %v1849_v37  ;;  %v1850_v43 = vpack.c.bf16 %v870_v39, %v870_v39  ;;  %1161 = vst.msk [vmem:[%s2337_s12 + $0x7c] sm:$0xf] %vm1129_vm0, %v1820_v41 }
 0x140   : > { %1193 = vst.msk [vmem:[%s2337_s12 + $0xfc] sm:$0xf] %vm1129_vm0, %v1852_v42  ;;  %1159 = vst.msk [vmem:[%s2337_s12 + $0x74] sm:$0xf] %vm1129_vm0, %v1818_v40 }
 0x141   : > { %1191 = vst.msk [vmem:[%s2337_s12 + $0xf4] sm:$0xf] %vm1129_vm0, %v1850_v43 }
 0x142   : > { %s2734_s27 = smov (!%p1203_p8, %s1202_s27), 64 }
 0x143   : > { %s1774_s5 = sshll.u32 %s2734_s27, 6 }
 0x144   : > { %p1777_p9 = scmp.eq.s32.totalorder %s1774_s5, 0 }
 0x145   : > { %s2536_s6 = sshrl.u32 (!%p1777_p9), %s2734_s27, 6 }
 0x146   : > { %1211 = sbr.rel (%p1777_p9) target bundleno = 413 (0x19d), region = 40  ;;  %p1778_p10 = scmp.le.s32.totalorder (!%p1777_p9), %s2536_s6, 0 }
 0x14d   : > { %1616 = sbr.rel (%p1778_p10) target bundleno = 392 (0x188), region = 112  ;;  %s2727_s15 = smov (!%p1778_p10), %s2530_s4 }
 0x14e   : > { %s2728_s20 = smov (!%p1778_p10), %s2337_s12  ;;  %s2545_s23 = smov (!%p1778_p10), 0  }
 0x14f   : > { %s2547_s7 = smov (!%p1778_p10), 0  }
 0x154 LB: >> { %v1227_v44 = vld [vmem:[%s2182_s20] sm:$0xf]  ;;  %v1229_v45 = vld [vmem:[%s2182_s20 + $0x4] sm:$0xf]  ;;  %v1231_v46 = vld [vmem:[%s2182_s20 + $0x8] sm:$0xf]  ;;  %s2190_s7 = sphi %s2547_s7, %s1221_s7   ;;  %s2186_s23 = sphi %s2545_s23, %s2729_s23   ;;  %s2182_s20 = sphi %s2728_s20, %s1360_s20   ;;  %s2178_s15 = sphi %s2727_s15, %s1361_s15  }
 0x155   : >> { %1228 = vst [vmem:[%s2178_s15] sm:$0xf] %v1227_v44  ;;  %1230 = vst [vmem:[%s2178_s15 + $0x4] sm:$0xf] %v1229_v45  ;;  %v1233_v47 = vld [vmem:[%s2182_s20 + $0xc] sm:$0xf]  ;;  %s1355_s8 = sadd.s32 1, %s2186_s23 }
 0x156   : >> { %1232 = vst [vmem:[%s2178_s15 + $0x8] sm:$0xf] %v1231_v46  ;;  %v1235_v48 = vld [vmem:[%s2182_s20 + $0x10] sm:$0xf]  ;;  %v1237_v49 = vld [vmem:[%s2182_s20 + $0x14] sm:$0xf]  ;;  %p1356_p11 = scmp.ge.s32.totalorder %s1355_s8, %s2536_s6 }
 0x157   : >> { %1234 = vst [vmem:[%s2178_s15 + $0xc] sm:$0xf] %v1233_v47  ;;  %1236 = vst [vmem:[%s2178_s15 + $0x10] sm:$0xf] %v1235_v48  ;;  %v1239_v50 = vld [vmem:[%s2182_s20 + $0x18] sm:$0xf] }
 0x158   : >> { %1238 = vst [vmem:[%s2178_s15 + $0x14] sm:$0xf] %v1237_v49  ;;  %v1241_v51 = vld [vmem:[%s2182_s20 + $0x1c] sm:$0xf]  ;;  %v1243_v52 = vld [vmem:[%s2182_s20 + $0x20] sm:$0xf] }
 0x159   : >> { %1240 = vst [vmem:[%s2178_s15 + $0x18] sm:$0xf] %v1239_v50  ;;  %1242 = vst [vmem:[%s2178_s15 + $0x1c] sm:$0xf] %v1241_v51  ;;  %v1245_v53 = vld [vmem:[%s2182_s20 + $0x24] sm:$0xf] }
 0x15a   : >> { %1244 = vst [vmem:[%s2178_s15 + $0x20] sm:$0xf] %v1243_v52  ;;  %v1247_v54 = vld [vmem:[%s2182_s20 + $0x28] sm:$0xf]  ;;  %v1249_v55 = vld [vmem:[%s2182_s20 + $0x2c] sm:$0xf] }
 0x15b   : >> { %1246 = vst [vmem:[%s2178_s15 + $0x24] sm:$0xf] %v1245_v53  ;;  %1248 = vst [vmem:[%s2178_s15 + $0x28] sm:$0xf] %v1247_v54  ;;  %v1251_v56 = vld [vmem:[%s2182_s20 + $0x30] sm:$0xf] }
 0x15c   : >> { %1250 = vst [vmem:[%s2178_s15 + $0x2c] sm:$0xf] %v1249_v55  ;;  %v1253_v57 = vld [vmem:[%s2182_s20 + $0x34] sm:$0xf]  ;;  %v1255_v58 = vld [vmem:[%s2182_s20 + $0x38] sm:$0xf] }
 0x15d   : >> { %1252 = vst [vmem:[%s2178_s15 + $0x30] sm:$0xf] %v1251_v56  ;;  %1254 = vst [vmem:[%s2178_s15 + $0x34] sm:$0xf] %v1253_v57  ;;  %v1257_v59 = vld [vmem:[%s2182_s20 + $0x3c] sm:$0xf] }
 0x15e   : >> { %1256 = vst [vmem:[%s2178_s15 + $0x38] sm:$0xf] %v1255_v58  ;;  %v1259_v60 = vld [vmem:[%s2182_s20 + $0x40] sm:$0xf]  ;;  %v1261_v61 = vld [vmem:[%s2182_s20 + $0x44] sm:$0xf] }
 0x15f   : >> { %1258 = vst [vmem:[%s2178_s15 + $0x3c] sm:$0xf] %v1257_v59  ;;  %1260 = vst [vmem:[%s2178_s15 + $0x40] sm:$0xf] %v1259_v60  ;;  %v1263_v62 = vld [vmem:[%s2182_s20 + $0x48] sm:$0xf] }
 0x160   : >> { %1262 = vst [vmem:[%s2178_s15 + $0x44] sm:$0xf] %v1261_v61  ;;  %v1265_v63 = vld [vmem:[%s2182_s20 + $0x4c] sm:$0xf]  ;;  %v1267_v0 = vld [vmem:[%s2182_s20 + $0x50] sm:$0xf] }
 0x161   : >> { %1264 = vst [vmem:[%s2178_s15 + $0x48] sm:$0xf] %v1263_v62  ;;  %1266 = vst [vmem:[%s2178_s15 + $0x4c] sm:$0xf] %v1265_v63  ;;  %v1269_v1 = vld [vmem:[%s2182_s20 + $0x54] sm:$0xf] }
 0x162   : >> { %1268 = vst [vmem:[%s2178_s15 + $0x50] sm:$0xf] %v1267_v0  ;;  %v1271_v2 = vld [vmem:[%s2182_s20 + $0x58] sm:$0xf]  ;;  %v1273_v3 = vld [vmem:[%s2182_s20 + $0x5c] sm:$0xf] }
 0x163   : >> { %1270 = vst [vmem:[%s2178_s15 + $0x54] sm:$0xf] %v1269_v1  ;;  %1272 = vst [vmem:[%s2178_s15 + $0x58] sm:$0xf] %v1271_v2  ;;  %v1275_v4 = vld [vmem:[%s2182_s20 + $0x60] sm:$0xf] }
 0x164   : >> { %1274 = vst [vmem:[%s2178_s15 + $0x5c] sm:$0xf] %v1273_v3  ;;  %v1277_v5 = vld [vmem:[%s2182_s20 + $0x64] sm:$0xf]  ;;  %v1279_v6 = vld [vmem:[%s2182_s20 + $0x68] sm:$0xf] }
 0x165   : >> { %1276 = vst [vmem:[%s2178_s15 + $0x60] sm:$0xf] %v1275_v4  ;;  %1278 = vst [vmem:[%s2178_s15 + $0x64] sm:$0xf] %v1277_v5  ;;  %v1281_v7 = vld [vmem:[%s2182_s20 + $0x6c] sm:$0xf] }
 0x166   : >> { %1280 = vst [vmem:[%s2178_s15 + $0x68] sm:$0xf] %v1279_v6  ;;  %v1283_v8 = vld [vmem:[%s2182_s20 + $0x70] sm:$0xf]  ;;  %v1285_v9 = vld [vmem:[%s2182_s20 + $0x74] sm:$0xf] }
 0x167   : >> { %1282 = vst [vmem:[%s2178_s15 + $0x6c] sm:$0xf] %v1281_v7  ;;  %1284 = vst [vmem:[%s2178_s15 + $0x70] sm:$0xf] %v1283_v8  ;;  %v1287_v10 = vld [vmem:[%s2182_s20 + $0x78] sm:$0xf] }
 0x168   : >> { %1286 = vst [vmem:[%s2178_s15 + $0x74] sm:$0xf] %v1285_v9  ;;  %v1289_v11 = vld [vmem:[%s2182_s20 + $0x7c] sm:$0xf]  ;;  %v1291_v12 = vld [vmem:[%s2182_s20 + $0x80] sm:$0xf] }
 0x169   : >> { %1288 = vst [vmem:[%s2178_s15 + $0x78] sm:$0xf] %v1287_v10  ;;  %1290 = vst [vmem:[%s2178_s15 + $0x7c] sm:$0xf] %v1289_v11  ;;  %v1293_v13 = vld [vmem:[%s2182_s20 + $0x84] sm:$0xf] }
 0x16a   : >> { %1292 = vst [vmem:[%s2178_s15 + $0x80] sm:$0xf] %v1291_v12  ;;  %v1295_v14 = vld [vmem:[%s2182_s20 + $0x88] sm:$0xf]  ;;  %v1297_v15 = vld [vmem:[%s2182_s20 + $0x8c] sm:$0xf] }
 0x16b   : >> { %1294 = vst [vmem:[%s2178_s15 + $0x84] sm:$0xf] %v1293_v13  ;;  %1296 = vst [vmem:[%s2178_s15 + $0x88] sm:$0xf] %v1295_v14  ;;  %v1299_v16 = vld [vmem:[%s2182_s20 + $0x90] sm:$0xf] }
 0x16c   : >> { %1298 = vst [vmem:[%s2178_s15 + $0x8c] sm:$0xf] %v1297_v15  ;;  %v1301_v17 = vld [vmem:[%s2182_s20 + $0x94] sm:$0xf]  ;;  %v1303_v18 = vld [vmem:[%s2182_s20 + $0x98] sm:$0xf] }
 0x16d   : >> { %1300 = vst [vmem:[%s2178_s15 + $0x90] sm:$0xf] %v1299_v16  ;;  %1302 = vst [vmem:[%s2178_s15 + $0x94] sm:$0xf] %v1301_v17  ;;  %v1305_v19 = vld [vmem:[%s2182_s20 + $0x9c] sm:$0xf] }
 0x16e   : >> { %1304 = vst [vmem:[%s2178_s15 + $0x98] sm:$0xf] %v1303_v18  ;;  %v1307_v20 = vld [vmem:[%s2182_s20 + $0xa0] sm:$0xf]  ;;  %v1309_v21 = vld [vmem:[%s2182_s20 + $0xa4] sm:$0xf] }
 0x16f   : >> { %1306 = vst [vmem:[%s2178_s15 + $0x9c] sm:$0xf] %v1305_v19  ;;  %1308 = vst [vmem:[%s2178_s15 + $0xa0] sm:$0xf] %v1307_v20  ;;  %v1311_v22 = vld [vmem:[%s2182_s20 + $0xa8] sm:$0xf] }
 0x170   : >> { %1310 = vst [vmem:[%s2178_s15 + $0xa4] sm:$0xf] %v1309_v21  ;;  %v1313_v23 = vld [vmem:[%s2182_s20 + $0xac] sm:$0xf]  ;;  %v1315_v24 = vld [vmem:[%s2182_s20 + $0xb0] sm:$0xf] }
 0x171   : >> { %1312 = vst [vmem:[%s2178_s15 + $0xa8] sm:$0xf] %v1311_v22  ;;  %1314 = vst [vmem:[%s2178_s15 + $0xac] sm:$0xf] %v1313_v23  ;;  %v1317_v25 = vld [vmem:[%s2182_s20 + $0xb4] sm:$0xf] }
 0x172   : >> { %1316 = vst [vmem:[%s2178_s15 + $0xb0] sm:$0xf] %v1315_v24  ;;  %v1319_v26 = vld [vmem:[%s2182_s20 + $0xb8] sm:$0xf]  ;;  %v1321_v27 = vld [vmem:[%s2182_s20 + $0xbc] sm:$0xf] }
 0x173   : >> { %1318 = vst [vmem:[%s2178_s15 + $0xb4] sm:$0xf] %v1317_v25  ;;  %1320 = vst [vmem:[%s2178_s15 + $0xb8] sm:$0xf] %v1319_v26  ;;  %v1323_v28 = vld [vmem:[%s2182_s20 + $0xc0] sm:$0xf] }
 0x174   : >> { %1322 = vst [vmem:[%s2178_s15 + $0xbc] sm:$0xf] %v1321_v27  ;;  %v1325_v29 = vld [vmem:[%s2182_s20 + $0xc4] sm:$0xf]  ;;  %v1327_v30 = vld [vmem:[%s2182_s20 + $0xc8] sm:$0xf] }
 0x175   : >> { %1324 = vst [vmem:[%s2178_s15 + $0xc0] sm:$0xf] %v1323_v28  ;;  %1326 = vst [vmem:[%s2178_s15 + $0xc4] sm:$0xf] %v1325_v29  ;;  %v1329_v31 = vld [vmem:[%s2182_s20 + $0xcc] sm:$0xf] }
 0x176   : >> { %1328 = vst [vmem:[%s2178_s15 + $0xc8] sm:$0xf] %v1327_v30  ;;  %v1331_v32 = vld [vmem:[%s2182_s20 + $0xd0] sm:$0xf]  ;;  %v1333_v33 = vld [vmem:[%s2182_s20 + $0xd4] sm:$0xf] }
 0x177   : >> { %1330 = vst [vmem:[%s2178_s15 + $0xcc] sm:$0xf] %v1329_v31  ;;  %1332 = vst [vmem:[%s2178_s15 + $0xd0] sm:$0xf] %v1331_v32  ;;  %v1335_v34 = vld [vmem:[%s2182_s20 + $0xd8] sm:$0xf] }
 0x178   : >> { %1334 = vst [vmem:[%s2178_s15 + $0xd4] sm:$0xf] %v1333_v33  ;;  %v1337_v35 = vld [vmem:[%s2182_s20 + $0xdc] sm:$0xf]  ;;  %v1339_v36 = vld [vmem:[%s2182_s20 + $0xe0] sm:$0xf] }
 0x179   : >> { %1336 = vst [vmem:[%s2178_s15 + $0xd8] sm:$0xf] %v1335_v34  ;;  %1338 = vst [vmem:[%s2178_s15 + $0xdc] sm:$0xf] %v1337_v35  ;;  %v1341_v37 = vld [vmem:[%s2182_s20 + $0xe4] sm:$0xf] }
 0x17a   : >> { %1340 = vst [vmem:[%s2178_s15 + $0xe0] sm:$0xf] %v1339_v36  ;;  %v1343_v38 = vld [vmem:[%s2182_s20 + $0xe8] sm:$0xf]  ;;  %v1345_v39 = vld [vmem:[%s2182_s20 + $0xec] sm:$0xf] }
 0x17b   : >> { %1342 = vst [vmem:[%s2178_s15 + $0xe4] sm:$0xf] %v1341_v37  ;;  %1344 = vst [vmem:[%s2178_s15 + $0xe8] sm:$0xf] %v1343_v38  ;;  %v1347_v41 = vld [vmem:[%s2182_s20 + $0xf0] sm:$0xf] }
 0x17c   : >> { %1346 = vst [vmem:[%s2178_s15 + $0xec] sm:$0xf] %v1345_v39  ;;  %v1349_v42 = vld [vmem:[%s2182_s20 + $0xf4] sm:$0xf]  ;;  %v1351_v40 = vld [vmem:[%s2182_s20 + $0xf8] sm:$0xf] }
 0x17d   : >> { %1348 = vst [vmem:[%s2178_s15 + $0xf0] sm:$0xf] %v1347_v41  ;;  %1350 = vst [vmem:[%s2178_s15 + $0xf4] sm:$0xf] %v1349_v42  ;;  %v1353_v43 = vld [vmem:[%s2182_s20 + $0xfc] sm:$0xf] }
 0x17e   : >> { %1352 = vst [vmem:[%s2178_s15 + $0xf8] sm:$0xf] %v1351_v40  ;;  %1354 = vst [vmem:[%s2178_s15 + $0xfc] sm:$0xf] %v1353_v43  ;;  %s2736_s8 = smov (%p1356_p11, %s1355_s8), 0  ;;  %s1221_s7 = sadd.s32 1, %s2190_s7  }
 0x17f   : >> { %s1779_s9 = sshll.u32 %s2736_s8, 8  ;;  %p1220_p12 = scmp.ge.s32.totalorder %s1221_s7, %s2536_s6 }
 0x180   : >> { %s1360_s20 = scalar_lea.vmem %s2337_s12, %s1779_s9 [#allocation2]   ;;  %s1361_s15 = scalar_lea.vmem %s2530_s4, %s1779_s9  }
 0x181   : >> { %s2729_s23 = smov %s2736_s8  ;;  %1223 = sbr.rel (!%p1220_p12) target bundleno = 340 (0x154), region = 118 }
 0x188 PF: > { %s2704_s10 = sand.u32 63, %s2734_s27   ;;  %s1854_s11 = sshll.u32 %s2536_s6, 8 }
 0x189   : > { %s1366_s14 = scalar_lea.vmem %s2337_s12, %s1854_s11 [#allocation2]   ;;  %s1368_s17 = scalar_lea.vmem %s2530_s4, %s1854_s11  }
 0x18a   : > { %p1784_p13 = scmp.le.s32.totalorder %s2704_s10, 0 }
 0x18b   : > { %s2192_s18 = smov (!%p1784_p13), %s1368_s17   ;;  %s2196_s21 = smov (!%p1784_p13), %s1366_s14  }
 0x18c   : > { %1630 = sbr.rel (%p1784_p13) target bundleno = 413 (0x19d), region = 123  ;;  %s2200_s22 = smov (!%p1784_p13), 0  }
 0x18d   : > { %s2204_s24 = smov (!%p1784_p13), 0  }
 0x193 LB: >> { %v1378_v44 = vld [vmem:[%s2198_s21] sm:$0xf]  ;;  %s1380_s25 = sadd.s32 1, %s2202_s22  ;;  %s1372_s24 = sadd.s32 1, %s2206_s24   ;;  %s2206_s24 = sphi %s2204_s24, %s1372_s24   ;;  %s2202_s22 = sphi %s2200_s22, %s2201_s22   ;;  %s2198_s21 = sphi %s2196_s21, %s1385_s21   ;;  %s2194_s18 = sphi %s2192_s18, %s1386_s18  }
 0x194   : >> { %1379 = vst [vmem:[%s2194_s18] sm:$0xf] %v1378_v44  ;;  %p1381_p0 = scmp.ge.s32.totalorder %s1380_s25, %s2704_s10  ;;  %p1371_p1 = scmp.ge.s32.totalorder %s1372_s24, %s2704_s10 }
 0x196   : >> { %s2738_s25 = smov (%p1381_p0, %s1380_s25), 0  ;;  %1374 = sbr.rel (!%p1371_p1) target bundleno = 403 (0x193), region = 129 }
 0x197   : >> { %s1785_s26 = sshll.u32 %s2738_s25, 2  ;;  %s2201_s22 = smov %s2738_s25  }
 0x198   : >> { %s1385_s21 = scalar_lea.vmem %s1366_s14, %s1785_s26 [#allocation2]   ;;  %s1386_s18 = scalar_lea.vmem %s1368_s17, %s1785_s26  }
 0x19d PF: > { %p10_p2 = scmp.ge.s32.totalorder %s2243_s16, 4   ;;  %s2730_s12 = smov %s2170_s13 }
 0x19e   : > { %s2731_s13 = smov %s2251_s19  ;;  %s2732_s14 = smov %s2243_s16 }
 0x19f   :  { %12 = sbr.rel (!%p10_p2) target bundleno = 2 (0x2), region = 140 }

// kernel: encoder_forward.7
= control target key start
LH: loop header
LB: loop body
LE: loop exit
PB: predicated region body
PF: predicated region fallthrough
CT: control target
= control target key end

     0   :  { %s1327_s12 = smov 0   ;;  %s1329_s13 = smov 0   ;;  %s1596_s0 = inlined_call_operand.vmem [shape: bf16[288,128], index: 0, kind: input, shape index: {}]   ;;  %s1597_s1 = inlined_call_operand.vmem [shape: bf16[128,64], index: 1, kind: input, shape index: {}]   ;;  %s1598_s2 = inlined_call_operand.vmem [shape: f32[1,64], index: 2, kind: input, shape index: {}]   ;;  %s1599_s3 = inlined_call_operand.vmem [shape: bf16[288,64], index: 3, kind: output, shape index: {}]  }
   0x1   :  { %s1331_s14 = smov 0  }
   0x2 LB: > { %s1340_s15 = sadd.s32 4294967295, %s1273_s14   ;;  %s1342_s16 = sadd.s32 1, %s1273_s14   ;;  %s1273_s14 = sphi %s1331_s14, %s1606_s14   ;;  %s1269_s13 = sphi %s1329_s13, %s1605_s13   ;;  %s1265_s12 = sphi %s1327_s12, %s1604_s12  }
   0x3   : > { %s85_s17 = ssub.s32 %s1273_s14, %s1342_s16  ;;  %s88_s18 = sadd.s32 1, %s1269_s13 }
   0x4   : > { %p86_p0 = scmp.eq.s32.totalorder %s85_s17, 0  ;;  %p98_p1 = scmp.ne.s32.totalorder %s1269_s13, %s1265_s12 }
   0x5   : > { %p99_p2 = scmp.eq.s32.totalorder %s1340_s15, 1  ;;  %p945_p3 = scmp.ge.s32.totalorder %s1273_s14, 1 }
   0x6   : > { %s1350_s19 = scalar_select %p86_p0, %s1269_s13, %s88_s18  }
   0x7   : > { %p1352_p4 = por %p99_p2, %p98_p1  ;;  %p146_p5 = scmp.lt.s32.totalorder %s1273_s14, 3 }
   0x9   : > { %p147_p6 = pnand %p945_p3, %p146_p5 }
   0xa   : > { %v1195_v0 = vld [vmem:[%s1597_s1] sm:$0xff] (!%p147_p6)   ;;  %s1360_s23 = smul.u32 (!%p147_p6), 24, %s1340_s15  ;;  %v1196_v1 = vld [vmem:[%s1597_s1 + $0x8] sm:$0xff] (!%p147_p6)   ;;  %v1197_v2 = vld [vmem:[%s1597_s1 + $0x10] sm:$0xff] (!%p147_p6)   ;;  %s170_s22 = sand.u32 (!%p147_p6), 1, %s1265_s12   ;;  %vm609_vm0 = vcmask (!%p147_p6), 519168  }
   0xb   : > { %150 = sbr.rel (%p147_p6) target bundleno = 358 (0x166), region = 32  ;;  %1049 = vmatprep.subr.bf16.mxu0 (!%p147_p6), %v1195_v0  ;;  %1089 = vmatprep.subr.bf16.mxu1 (!%p147_p6), %v1195_v0  ;;  %v1198_v3 = vld [vmem:[%s1597_s1 + $0x18] sm:$0xff] (!%p147_p6)   ;;  %v1199_v6 = vld [vmem:[%s1597_s1 + $0x20] sm:$0xff] (!%p147_p6)   ;;  %v1200_v7 = vld [vmem:[%s1597_s1 + $0x28] sm:$0xff] (!%p147_p6)  }
   0xc   : > { %p178_p7 = scmp.lt.s32.totalorder (!%p147_p6), %s1360_s23, 35  ;;  %1050 = vmatpush3.bf16.msra.mxu0 (!%p147_p6), %v1195_v0  ;;  %1097 = vmatpush3.bf16.msra.mxu1 (!%p147_p6), %v1195_v0  ;;  %v1201_v8 = vld [vmem:[%s1597_s1 + $0x30] sm:$0xff] (!%p147_p6)   ;;  %v1202_v9 = vld [vmem:[%s1597_s1 + $0x38] sm:$0xff] (!%p147_p6)   ;;  %v1406_v20 = vld [vmem:[%s1598_s2] ss:$0 sm:$0xff] (!%p147_p6)  ;;  %s1105_s26 = smul.u32 (!%p147_p6), 96, %s170_s22 }
   0xd   : > { %1051 = vmatprep.subr.bf16.mxu0 (!%p147_p6), %v1196_v1  ;;  %1090 = vmatprep.subr.bf16.mxu1 (!%p147_p6), %v1196_v1 }
   0xe   : > { %s1416_s12 = scalar_lea.vmem (!%p147_p6), [#allocation2], %s1105_s26  }
  0x10   : > { %1052 = vmatpush3.bf16.msra.mxu0 (!%p147_p6), %v1196_v1  ;;  %1098 = vmatpush3.bf16.msra.mxu1 (!%p147_p6), %v1196_v1 }
  0x11   : > { %1053 = vmatprep.subr.bf16.mxu0 (!%p147_p6), %v1197_v2  ;;  %1091 = vmatprep.subr.bf16.mxu1 (!%p147_p6), %v1197_v2 }
  0x12   : > { %s179_s28 = scalar_select %p178_p7, %s1360_s23, 35 }
  0x13   : > { %s642_s27 = ssub.s32 (%p1352_p4), 36, %s1360_s23 }
  0x14   : > { %s946_s29 = sshll.u32 %s179_s28, 2  ;;  %1054 = vmatpush3.bf16.msra.mxu0 %v1197_v2  ;;  %1099 = vmatpush3.bf16.msra.mxu1 %v1197_v2  ;;  %s1028_s28 = smul.u32 (%p1352_p4), 96, %s1340_s15 }
  0x15   : > { %s1376_s7 = scalar_lea.vmem %s1596_s0, %s946_s29  ;;  %1055 = vmatprep.subr.bf16.mxu0 %v1198_v3  ;;  %1092 = vmatprep.subr.bf16.mxu1 %v1198_v3  ;;  %p643_p8 = scmp.lt.s32.totalorder (%p1352_p4), %s642_s27, 24 }
  0x16   : > { %v1203_v4 = vld [vmem:[%s1376_s7] sm:$0xff]   ;;  %v1204_v5 = vld [vmem:[%s1376_s7 + $0x30] sm:$0xff]   ;;  %v1205_v10 = vld [vmem:[%s1376_s7 + $0x8] sm:$0xff]   ;;  %s1489_s4 = scalar_lea.vmem (%p1352_p4), %s1599_s3, %s1028_s28  }
  0x17   : > { %1065 = vmatprep.mubr.bf16.mxu0 %v1203_v4  ;;  %1077 = vmatprep.mubr.bf16.mxu1 %v1204_v5  ;;  %v1206_v11 = vld [vmem:[%s1376_s7 + $0x38] sm:$0xff]   ;;  %v1207_v12 = vld [vmem:[%s1376_s7 + $0x10] sm:$0xff]   ;;  %v1208_v13 = vld [vmem:[%s1376_s7 + $0x40] sm:$0xff]  }
  0x18   : > { %1056 = vmatpush3.bf16.msra.mxu0 %v1198_v3  ;;  %1100 = vmatpush3.bf16.msra.mxu1 %v1198_v3  ;;  %v1209_v14 = vld [vmem:[%s1376_s7 + $0x18] sm:$0xff]   ;;  %v1210_v15 = vld [vmem:[%s1376_s7 + $0x48] sm:$0xff]   ;;  %v1211_v16 = vld [vmem:[%s1376_s7 + $0x20] sm:$0xff]  }
  0x19   : > { %1057 = vmatprep.subr.bf16.mxu0 %v1199_v6  ;;  %1093 = vmatprep.subr.bf16.mxu1 %v1199_v6  ;;  %v1212_v17 = vld [vmem:[%s1376_s7 + $0x50] sm:$0xff]   ;;  %v1213_v18 = vld [vmem:[%s1376_s7 + $0x28] sm:$0xff]   ;;  %v1214_v19 = vld [vmem:[%s1376_s7 + $0x58] sm:$0xff]  }
  0x1c   : > { %1058 = vmatpush3.bf16.msra.mxu0 %v1199_v6  ;;  %1101 = vmatpush3.bf16.msra.mxu1 %v1199_v6 }
  0x1d   : > { %1059 = vmatprep.subr.bf16.mxu0 %v1200_v7  ;;  %1094 = vmatprep.subr.bf16.mxu1 %v1200_v7 }
  0x20   : > { %1060 = vmatpush3.bf16.msra.mxu0 %v1200_v7  ;;  %1102 = vmatpush3.bf16.msra.mxu1 %v1200_v7 }
  0x21   : > { %1061 = vmatprep.subr.bf16.mxu0 %v1201_v8  ;;  %1095 = vmatprep.subr.bf16.mxu1 %v1201_v8 }
  0x24   : > { %1062 = vmatpush3.bf16.msra.mxu0 %v1201_v8  ;;  %1103 = vmatpush3.bf16.msra.mxu1 %v1201_v8 }
  0x25   : > { %1063 = vmatprep.subr.bf16.mxu0 %v1202_v9  ;;  %1096 = vmatprep.subr.bf16.mxu1 %v1202_v9 }
  0x28   : > { %1064 = vmatpush3.bf16.msra.mxu0 %v1202_v9  ;;  %1104 = vmatpush3.bf16.msra.mxu1 %v1202_v9 }
  0x2b   : > { %1066 = vmatmul.mubr.bf16.vlgmr.msra.gmra.mrb[0].mxu0 %v1205_v10  ;;  %1078 = vmatmul.mubr.bf16.vlgmr.msra.gmra.mrb[0].mxu1 %v1206_v11 }
  0x2c   : > { %1069 = vmatprep.mubr.bf16.mxu0 %v1207_v12  ;;  %1081 = vmatprep.mubr.bf16.mxu1 %v1208_v13 }
  0x33   : > { %1070 = vmatmul.mubr.bf16.gmra.mrb[4].mxu0 %v1209_v14  ;;  %1082 = vmatmul.mubr.bf16.gmra.mrb[4].mxu1 %v1210_v15 }
  0x34   : > { %1073 = vmatprep.mubr.bf16.mxu0 %v1211_v16  ;;  %1085 = vmatprep.mubr.bf16.mxu1 %v1212_v17 }
  0x3b   : > { %1074 = vmatmul.mubr.bf16.gmra.mrb[8].mxu0 %v1213_v18  ;;  %1086 = vmatmul.mubr.bf16.gmra.mrb[8].mxu1 %v1214_v19 }
  0xfe   : > { %v1067_v21 = vpop.f32.mrb[0].mxu0  ;;  %v1079_v22 = vpop.f32.mrb[0].mxu1 }
  0xff   : > { %v403_v23 = vadd.f32 %v1067_v21, %v1406_v20  ;;  %v451_v24 = vadd.f32 %v1079_v22, %v1406_v20  ;;  %v394_v25 = vpop.f32.mrb[1].mxu0  ;;  %v442_v26 = vpop.f32.mrb[1].mxu1 }
 0x100   : > { %v395_v27 = vadd.f32 %v1406_v20, %v394_v25  ;;  %v443_v28 = vadd.f32 %v1406_v20, %v442_v26  ;;  %v1068_v29 = vpop.f32.mrb[2].mxu0  ;;  %v1080_v30 = vpop.f32.mrb[2].mxu1 }
 0x101   : > { %v491_v31 = vmax.f32 %v403_v23, 0.0  ;;  %v503_v32 = vmax.f32 %v451_v24, 0.0  ;;  %v406_v33 = vadd.f32 %v1068_v29, %v1406_v20  ;;  %v454_v34 = vadd.f32 %v1080_v30, %v1406_v20  ;;  %v397_v35 = vpop.f32.mrb[3].mxu0  ;;  %v445_v36 = vpop.f32.mrb[3].mxu1 }
 0x102   : > { %v489_v37 = vmax.f32 %v395_v27, 0.0  ;;  %v501_v38 = vmax.f32 %v443_v28, 0.0  ;;  %v398_v39 = vadd.f32 %v1406_v20, %v397_v35  ;;  %v446_v40 = vadd.f32 %v1406_v20, %v445_v36 }
 0x103   : > { %v1006_v41 = vpack.c.bf16 %v491_v31, %v491_v31  ;;  %v1018_v42 = vpack.c.bf16 %v503_v32, %v503_v32  ;;  %v492_v43 = vmax.f32 %v406_v33, 0.0  ;;  %v504_v44 = vmax.f32 %v454_v34, 0.0 }
 0x104   : > { %v1004_v45 = vpack.c.bf16 %v489_v37, %v489_v37  ;;  %v1016_v46 = vpack.c.bf16 %v501_v38, %v501_v38  ;;  %v490_v47 = vmax.f32 %v398_v39, 0.0  ;;  %v502_v48 = vmax.f32 %v446_v40, 0.0 }
 0x105   : > { %612 = vst.msk [vmem:[%s1416_s12 + $0x8] sm:$0xf] %vm609_vm0, %v1006_v41  ;;  %624 = vst.msk [vmem:[%s1416_s12 + $0x38] sm:$0xf] %vm609_vm0, %v1018_v42  ;;  %v1007_v49 = vpack.c.bf16 %v492_v43, %v492_v43  ;;  %v1019_v50 = vpack.c.bf16 %v504_v44, %v504_v44 }
 0x106   : > { %610 = vst.msk [vmem:[%s1416_s12] sm:$0xf] %vm609_vm0, %v1004_v45  ;;  %622 = vst.msk [vmem:[%s1416_s12 + $0x30] sm:$0xf] %vm609_vm0, %v1016_v46  ;;  %v1005_v51 = vpack.c.bf16 %v490_v47, %v490_v47  ;;  %v1017_v52 = vpack.c.bf16 %v502_v48, %v502_v48  ;;  %v1071_v53 = vpop.f32.mrb[4].mxu0  ;;  %v1083_v54 = vpop.f32.mrb[4].mxu1 }
 0x107   : > { %613 = vst.msk [vmem:[%s1416_s12 + $0xc] sm:$0xf] %vm609_vm0, %v1007_v49  ;;  %625 = vst.msk [vmem:[%s1416_s12 + $0x3c] sm:$0xf] %vm609_vm0, %v1019_v50  ;;  %v419_v55 = vadd.f32 %v1071_v53, %v1406_v20  ;;  %v467_v56 = vadd.f32 %v1083_v54, %v1406_v20  ;;  %v410_v57 = vpop.f32.mrb[5].mxu0  ;;  %v458_v58 = vpop.f32.mrb[5].mxu1 }
 0x108   : > { %611 = vst.msk [vmem:[%s1416_s12 + $0x4] sm:$0xf] %vm609_vm0, %v1005_v51  ;;  %623 = vst.msk [vmem:[%s1416_s12 + $0x34] sm:$0xf] %vm609_vm0, %v1017_v52  ;;  %v411_v59 = vadd.f32 %v1406_v20, %v410_v57  ;;  %v459_v60 = vadd.f32 %v1406_v20, %v458_v58  ;;  %v1072_v61 = vpop.f32.mrb[6].mxu0  ;;  %v1084_v62 = vpop.f32.mrb[6].mxu1 }
 0x109   : > { %v495_v63 = vmax.f32 %v419_v55, 0.0  ;;  %v507_v0 = vmax.f32 %v467_v56, 0.0  ;;  %v422_v1 = vadd.f32 %v1072_v61, %v1406_v20  ;;  %v470_v2 = vadd.f32 %v1084_v62, %v1406_v20  ;;  %v413_v3 = vpop.f32.mrb[7].mxu0  ;;  %v461_v4 = vpop.f32.mrb[7].mxu1 }
 0x10a   : > { %v493_v5 = vmax.f32 %v411_v59, 0.0  ;;  %v505_v6 = vmax.f32 %v459_v60, 0.0  ;;  %v414_v7 = vadd.f32 %v1406_v20, %v413_v3  ;;  %v462_v8 = vadd.f32 %v1406_v20, %v461_v4 }
 0x10b   : > { %v1010_v9 = vpack.c.bf16 %v495_v63, %v495_v63  ;;  %v1022_v10 = vpack.c.bf16 %v507_v0, %v507_v0  ;;  %v496_v11 = vmax.f32 %v422_v1, 0.0  ;;  %v508_v12 = vmax.f32 %v470_v2, 0.0 }
 0x10c   : > { %v1008_v13 = vpack.c.bf16 %v493_v5, %v493_v5  ;;  %v1020_v14 = vpack.c.bf16 %v505_v6, %v505_v6  ;;  %v494_v15 = vmax.f32 %v414_v7, 0.0  ;;  %v506_v16 = vmax.f32 %v462_v8, 0.0 }
 0x10d   : > { %616 = vst.msk [vmem:[%s1416_s12 + $0x18] sm:$0xf] %vm609_vm0, %v1010_v9  ;;  %628 = vst.msk [vmem:[%s1416_s12 + $0x48] sm:$0xf] %vm609_vm0, %v1022_v10  ;;  %v1011_v17 = vpack.c.bf16 %v496_v11, %v496_v11  ;;  %v1023_v18 = vpack.c.bf16 %v508_v12, %v508_v12 }
 0x10e   : > { %614 = vst.msk [vmem:[%s1416_s12 + $0x10] sm:$0xf] %vm609_vm0, %v1008_v13  ;;  %626 = vst.msk [vmem:[%s1416_s12 + $0x40] sm:$0xf] %vm609_vm0, %v1020_v14  ;;  %v1009_v19 = vpack.c.bf16 %v494_v15, %v494_v15  ;;  %v1021_v21 = vpack.c.bf16 %v506_v16, %v506_v16  ;;  %v1075_v22 = vpop.f32.mrb[8].mxu0  ;;  %v1087_v23 = vpop.f32.mrb[8].mxu1 }
 0x10f   : > { %617 = vst.msk [vmem:[%s1416_s12 + $0x1c] sm:$0xf] %vm609_vm0, %v1011_v17  ;;  %629 = vst.msk [vmem:[%s1416_s12 + $0x4c] sm:$0xf] %vm609_vm0, %v1023_v18  ;;  %v435_v24 = vadd.f32 %v1075_v22, %v1406_v20  ;;  %v483_v25 = vadd.f32 %v1087_v23, %v1406_v20  ;;  %v426_v26 = vpop.f32.mrb[9].mxu0  ;;  %v474_v27 = vpop.f32.mrb[9].mxu1 }
 0x110   : > { %615 = vst.msk [vmem:[%s1416_s12 + $0x14] sm:$0xf] %vm609_vm0, %v1009_v19  ;;  %627 = vst.msk [vmem:[%s1416_s12 + $0x44] sm:$0xf] %vm609_vm0, %v1021_v21  ;;  %v427_v28 = vadd.f32 %v1406_v20, %v426_v26  ;;  %v475_v29 = vadd.f32 %v1406_v20, %v474_v27  ;;  %v1076_v30 = vpop.f32.mrb[10].mxu0  ;;  %v1088_v31 = vpop.f32.mrb[10].mxu1 }
 0x111   : > { %v499_v32 = vmax.f32 %v435_v24, 0.0  ;;  %v511_v33 = vmax.f32 %v483_v25, 0.0  ;;  %v438_v34 = vadd.f32 %v1076_v30, %v1406_v20  ;;  %v486_v35 = vadd.f32 %v1088_v31, %v1406_v20  ;;  %v429_v36 = vpop.f32.mrb[11].mxu0  ;;  %v477_v37 = vpop.f32.mrb[11].mxu1 }
 0x112   : > { %v497_v38 = vmax.f32 %v427_v28, 0.0  ;;  %v509_v39 = vmax.f32 %v475_v29, 0.0  ;;  %v430_v40 = vadd.f32 %v1406_v20, %v429_v36  ;;  %v478_v41 = vadd.f32 %v1406_v20, %v477_v37  ;;  %640 = sbr.rel (!%p1352_p4) target bundleno = 358 (0x166), region = 36 }
 0x113   : > { %v1014_v42 = vpack.c.bf16 %v499_v32, %v499_v32  ;;  %v1026_v43 = vpack.c.bf16 %v511_v33, %v511_v33  ;;  %v500_v44 = vmax.f32 %v438_v34, 0.0  ;;  %v512_v45 = vmax.f32 %v486_v35, 0.0 }
 0x114   : > { %v1012_v46 = vpack.c.bf16 %v497_v38, %v497_v38  ;;  %v1024_v47 = vpack.c.bf16 %v509_v39, %v509_v39  ;;  %v498_v48 = vmax.f32 %v430_v40, 0.0  ;;  %v510_v49 = vmax.f32 %v478_v41, 0.0 }
 0x115   : > { %620 = vst.msk [vmem:[%s1416_s12 + $0x28] sm:$0xf] %vm609_vm0, %v1014_v42  ;;  %632 = vst.msk [vmem:[%s1416_s12 + $0x58] sm:$0xf] %vm609_vm0, %v1026_v43  ;;  %v1015_v50 = vpack.c.bf16 %v500_v44, %v500_v44  ;;  %v1027_v51 = vpack.c.bf16 %v512_v45, %v512_v45 }
 0x116   : > { %618 = vst.msk [vmem:[%s1416_s12 + $0x20] sm:$0xf] %vm609_vm0, %v1012_v46  ;;  %630 = vst.msk [vmem:[%s1416_s12 + $0x50] sm:$0xf] %vm609_vm0, %v1024_v47  ;;  %v1013_v20 = vpack.c.bf16 %v498_v48, %v498_v48  ;;  %v1025_v52 = vpack.c.bf16 %v510_v49, %v510_v49 }
 0x117   : > { %621 = vst.msk [vmem:[%s1416_s12 + $0x2c] sm:$0xf] %vm609_vm0, %v1015_v50  ;;  %633 = vst.msk [vmem:[%s1416_s12 + $0x5c] sm:$0xf] %vm609_vm0, %v1027_v51 }
 0x118   : > { %619 = vst.msk [vmem:[%s1416_s12 + $0x24] sm:$0xf] %vm609_vm0, %v1013_v20  ;;  %631 = vst.msk [vmem:[%s1416_s12 + $0x54] sm:$0xf] %vm609_vm0, %v1025_v52 }
 0x119   : > { %s1608_s27 = smov (!%p643_p8, %s642_s27), 24 }
 0x11a   : > { %s992_s5 = sshll.u32 %s1608_s27, 6 }
 0x11b   : > { %p995_p9 = scmp.eq.s32.totalorder %s992_s5, 0 }
 0x11c   : > { %1215 = sdivrem.u32 (!%p995_p9), %s1608_s27, 24 }
 0x11d   : > { %651 = sbr.rel (%p995_p9) target bundleno = 358 (0x166), region = 40 }
 0x125   : > { %s1495_s20 = spop.drf %1215 }
 0x126   : > { %p996_p10 = scmp.le.s32.totalorder %s1495_s20, 0 }
 0x127   : > { %s1601_s15 = smov (!%p996_p10), %s1489_s4  ;;  %s1602_s23 = smov (!%p996_p10), %s1416_s12 }
 0x128   : > { %898 = sbr.rel (%p996_p10) target bundleno = 329 (0x149), region = 112  ;;  %s1504_s6 = smov (!%p996_p10), 0  }
 0x129   : > { %s1506_s7 = smov (!%p996_p10), 0  }
 0x12f LB: >> { %v668_v53 = vld [vmem:[%s1281_s23] sm:$0xf]  ;;  %v670_v54 = vld [vmem:[%s1281_s23 + $0x4] sm:$0xf]  ;;  %v672_v55 = vld [vmem:[%s1281_s23 + $0x8] sm:$0xf]  ;;  %s1289_s7 = sphi %s1506_s7, %s662_s7   ;;  %s1285_s6 = sphi %s1504_s6, %s1603_s6   ;;  %s1281_s23 = sphi %s1602_s23, %s721_s23   ;;  %s1277_s15 = sphi %s1601_s15, %s722_s15  }
 0x130   : >> { %669 = vst [vmem:[%s1277_s15] sm:$0xf] %v668_v53  ;;  %671 = vst [vmem:[%s1277_s15 + $0x4] sm:$0xf] %v670_v54  ;;  %v674_v56 = vld [vmem:[%s1281_s23 + $0xc] sm:$0xf]  ;;  %s716_s8 = sadd.s32 1, %s1285_s6 }
 0x131   : >> { %673 = vst [vmem:[%s1277_s15 + $0x8] sm:$0xf] %v672_v55  ;;  %v676_v57 = vld [vmem:[%s1281_s23 + $0x10] sm:$0xf]  ;;  %v678_v58 = vld [vmem:[%s1281_s23 + $0x14] sm:$0xf]  ;;  %p717_p11 = scmp.ge.s32.totalorder %s716_s8, %s1495_s20 }
 0x132   : >> { %675 = vst [vmem:[%s1277_s15 + $0xc] sm:$0xf] %v674_v56  ;;  %677 = vst [vmem:[%s1277_s15 + $0x10] sm:$0xf] %v676_v57  ;;  %v680_v59 = vld [vmem:[%s1281_s23 + $0x18] sm:$0xf] }
 0x133   : >> { %679 = vst [vmem:[%s1277_s15 + $0x14] sm:$0xf] %v678_v58  ;;  %v682_v60 = vld [vmem:[%s1281_s23 + $0x1c] sm:$0xf]  ;;  %v684_v61 = vld [vmem:[%s1281_s23 + $0x20] sm:$0xf] }
 0x134   : >> { %681 = vst [vmem:[%s1277_s15 + $0x18] sm:$0xf] %v680_v59  ;;  %683 = vst [vmem:[%s1277_s15 + $0x1c] sm:$0xf] %v682_v60  ;;  %v686_v62 = vld [vmem:[%s1281_s23 + $0x24] sm:$0xf] }
 0x135   : >> { %685 = vst [vmem:[%s1277_s15 + $0x20] sm:$0xf] %v684_v61  ;;  %v688_v63 = vld [vmem:[%s1281_s23 + $0x28] sm:$0xf]  ;;  %v690_v0 = vld [vmem:[%s1281_s23 + $0x2c] sm:$0xf] }
 0x136   : >> { %687 = vst [vmem:[%s1277_s15 + $0x24] sm:$0xf] %v686_v62  ;;  %689 = vst [vmem:[%s1277_s15 + $0x28] sm:$0xf] %v688_v63  ;;  %v692_v1 = vld [vmem:[%s1281_s23 + $0x30] sm:$0xf] }
 0x137   : >> { %691 = vst [vmem:[%s1277_s15 + $0x2c] sm:$0xf] %v690_v0  ;;  %v694_v2 = vld [vmem:[%s1281_s23 + $0x34] sm:$0xf]  ;;  %v696_v3 = vld [vmem:[%s1281_s23 + $0x38] sm:$0xf] }
 0x138   : >> { %693 = vst [vmem:[%s1277_s15 + $0x30] sm:$0xf] %v692_v1  ;;  %695 = vst [vmem:[%s1277_s15 + $0x34] sm:$0xf] %v694_v2  ;;  %v698_v4 = vld [vmem:[%s1281_s23 + $0x3c] sm:$0xf] }
 0x139   : >> { %697 = vst [vmem:[%s1277_s15 + $0x38] sm:$0xf] %v696_v3  ;;  %v700_v5 = vld [vmem:[%s1281_s23 + $0x40] sm:$0xf]  ;;  %v702_v6 = vld [vmem:[%s1281_s23 + $0x44] sm:$0xf] }
 0x13a   : >> { %699 = vst [vmem:[%s1277_s15 + $0x3c] sm:$0xf] %v698_v4  ;;  %701 = vst [vmem:[%s1277_s15 + $0x40] sm:$0xf] %v700_v5  ;;  %v704_v7 = vld [vmem:[%s1281_s23 + $0x48] sm:$0xf] }
 0x13b   : >> { %703 = vst [vmem:[%s1277_s15 + $0x44] sm:$0xf] %v702_v6  ;;  %v706_v8 = vld [vmem:[%s1281_s23 + $0x4c] sm:$0xf]  ;;  %v708_v9 = vld [vmem:[%s1281_s23 + $0x50] sm:$0xf] }
 0x13c   : >> { %705 = vst [vmem:[%s1277_s15 + $0x48] sm:$0xf] %v704_v7  ;;  %707 = vst [vmem:[%s1277_s15 + $0x4c] sm:$0xf] %v706_v8  ;;  %v710_v10 = vld [vmem:[%s1281_s23 + $0x54] sm:$0xf] }
 0x13d   : >> { %709 = vst [vmem:[%s1277_s15 + $0x50] sm:$0xf] %v708_v9  ;;  %v712_v11 = vld [vmem:[%s1281_s23 + $0x58] sm:$0xf]  ;;  %v714_v12 = vld [vmem:[%s1281_s23 + $0x5c] sm:$0xf] }
 0x13e   : >> { %711 = vst [vmem:[%s1277_s15 + $0x54] sm:$0xf] %v710_v10  ;;  %713 = vst [vmem:[%s1277_s15 + $0x58] sm:$0xf] %v712_v11  ;;  %s1610_s8 = smov (%p717_p11, %s716_s8), 0  ;;  %s662_s7 = sadd.s32 1, %s1289_s7  }
 0x13f   : >> { %715 = vst [vmem:[%s1277_s15 + $0x5c] sm:$0xf] %v714_v12  ;;  %s719_s9 = smul.u32 96, %s1610_s8  ;;  %p661_p12 = scmp.ge.s32.totalorder %s662_s7, %s1495_s20 }
 0x140   : >> { %s1603_s6 = smov %s1610_s8 }
 0x141   : >> { %s721_s23 = scalar_lea.vmem %s1416_s12, %s719_s9 [#allocation2]   ;;  %s722_s15 = scalar_lea.vmem %s1489_s4, %s719_s9  }
 0x142   : > { %664 = sbr.rel (!%p661_p12) target bundleno = 303 (0x12f), region = 118 }
 0x149 PF: > { %1217 = sdivrem.u32 %s1608_s27, 24 }
 0x14a   : > { %s997_s10 = smul.u32 96, %s1495_s20 }
 0x14c   : > { %s727_s11 = scalar_lea.vmem %s1416_s12, %s997_s10 [#allocation2]   ;;  %s729_s14 = scalar_lea.vmem %s1489_s4, %s997_s10  }
 0x152   : > { %s1218_s17 = spop.drf %1217 }
 0x153   : > { %p999_p13 = scmp.le.s32.totalorder %s1218_s17, 0 }
 0x154   : > { %s1291_s18 = smov (!%p999_p13), %s729_s14   ;;  %s1295_s21 = smov (!%p999_p13), %s727_s11  }
 0x155   : > { %912 = sbr.rel (%p999_p13) target bundleno = 358 (0x166), region = 123  ;;  %s1299_s22 = smov (!%p999_p13), 0  }
 0x156   : > { %s1303_s24 = smov (!%p999_p13), 0  }
 0x15c LB: >> { %v739_v13 = vld [vmem:[%s1297_s21] sm:$0xf]  ;;  %s741_s25 = sadd.s32 1, %s1301_s22  ;;  %s733_s24 = sadd.s32 1, %s1305_s24   ;;  %s1305_s24 = sphi %s1303_s24, %s733_s24   ;;  %s1301_s22 = sphi %s1299_s22, %s1300_s22   ;;  %s1297_s21 = sphi %s1295_s21, %s746_s21   ;;  %s1293_s18 = sphi %s1291_s18, %s747_s18  }
 0x15d   : >> { %740 = vst [vmem:[%s1293_s18] sm:$0xf] %v739_v13  ;;  %p742_p0 = scmp.ge.s32.totalorder %s741_s25, %s1218_s17  ;;  %p732_p1 = scmp.ge.s32.totalorder %s733_s24, %s1218_s17 }
 0x15f   : >> { %s1612_s25 = smov (%p742_p0, %s741_s25), 0  ;;  %735 = sbr.rel (!%p732_p1) target bundleno = 348 (0x15c), region = 129 }
 0x160   : >> { %s1000_s26 = sshll.u32 %s1612_s25, 2  ;;  %s1300_s22 = smov %s1612_s25  }
 0x161   : >> { %s746_s21 = scalar_lea.vmem %s727_s11, %s1000_s26 [#allocation2]   ;;  %s747_s18 = scalar_lea.vmem %s729_s14, %s1000_s26  }
 0x166 PF: > { %p10_p2 = scmp.ge.s32.totalorder %s1342_s16, 4   ;;  %s1604_s12 = smov %s1269_s13 }
 0x167   : > { %s1605_s13 = smov %s1350_s19  ;;  %s1606_s14 = smov %s1342_s16 }
 0x168   :  { %12 = sbr.rel (!%p10_p2) target bundleno = 2 (0x2), region = 140 }

// kernel: encoder_forward.8
= control target key start
LH: loop header
LB: loop body
LE: loop exit
PB: predicated region body
PF: predicated region fallthrough
CT: control target
= control target key end

     0   :  { %s1090_s12 = smov 0   ;;  %s1092_s13 = smov 0   ;;  %s1268_s0 = inlined_call_operand.vmem [shape: bf16[98,256], index: 0, kind: input, shape index: {}]   ;;  %s1269_s1 = inlined_call_operand.vmem [shape: bf16[256,64], index: 1, kind: input, shape index: {}]   ;;  %s1270_s2 = inlined_call_operand.vmem [shape: f32[1,64], index: 2, kind: input, shape index: {}]   ;;  %s1271_s3 = inlined_call_operand.vmem [shape: bf16[98,64], index: 3, kind: output, shape index: {}]  }
   0x1   :  { %s1094_s14 = smov 0  }
   0x2 LB: > { %s1103_s15 = sadd.s32 4294967295, %s1036_s14   ;;  %s1105_s16 = sadd.s32 1, %s1036_s14   ;;  %s1036_s14 = sphi %s1094_s14, %s1278_s14   ;;  %s1032_s13 = sphi %s1092_s13, %s1277_s13   ;;  %s1028_s12 = sphi %s1090_s12, %s1276_s12  }
   0x3   : > { %s85_s17 = ssub.s32 %s1036_s14, %s1105_s16  ;;  %s88_s18 = sadd.s32 1, %s1032_s13 }
   0x4   : > { %p86_p0 = scmp.eq.s32.totalorder %s85_s17, 0  ;;  %p98_p1 = scmp.ne.s32.totalorder %s1032_s13, %s1028_s12 }
   0x5   : > { %p99_p2 = scmp.eq.s32.totalorder %s1103_s15, 1  ;;  %p743_p3 = scmp.ge.s32.totalorder %s1036_s14, 1 }
   0x6   : > { %s1113_s19 = scalar_select %p86_p0, %s1032_s13, %s88_s18  }
   0x7   : > { %p1115_p4 = por %p99_p2, %p98_p1  ;;  %p149_p5 = scmp.lt.s32.totalorder %s1036_s14, 3 }
   0x9   : > { %p150_p6 = pnand %p743_p3, %p149_p5 }
   0xa   : > { %v954_v0 = vld [vmem:[%s1269_s1 + $0x40] sm:$0xff] (!%p150_p6)   ;;  %s1123_s23 = sshll.u32 (!%p150_p6), %s1103_s15, 3  ;;  %v956_v2 = vld [vmem:[%s1269_s1 + $0x48] sm:$0xff] (!%p150_p6)   ;;  %v958_v4 = vld [vmem:[%s1269_s1 + $0x50] sm:$0xff] (!%p150_p6)   ;;  %vm489_vm0 = vcmask (!%p150_p6), 519168  }
   0xb   : > { %153 = sbr.rel (%p150_p6) target bundleno = 329 (0x149), region = 32  ;;  %v955_v1 = vld [vmem:[%s1269_s1] sm:$0xff] (!%p150_p6)   ;;  %810 = vmatprep.subr.bf16.mxu0 (!%p150_p6), %v954_v0  ;;  %850 = vmatprep.subr.bf16.mxu1 (!%p150_p6), %v954_v0  ;;  %v957_v3 = vld [vmem:[%s1269_s1 + $0x8] sm:$0xff] (!%p150_p6)   ;;  %p184_p7 = scmp.lt.s32.totalorder (!%p150_p6), %s1123_s23, 12  ;;  %v959_v5 = vld [vmem:[%s1269_s1 + $0x10] sm:$0xff] (!%p150_p6)  }
   0xc   : > { %811 = vmatpush3.bf16.msra.mxu0 (!%p150_p6), %v955_v1  ;;  %858 = vmatpush3.bf16.msra.mxu1 (!%p150_p6), %v955_v1  ;;  %v960_v6 = vld [vmem:[%s1269_s1 + $0x58] sm:$0xff] (!%p150_p6)   ;;  %v962_v8 = vld [vmem:[%s1269_s1 + $0x60] sm:$0xff] (!%p150_p6)   ;;  %v964_v10 = vld [vmem:[%s1269_s1 + $0x68] sm:$0xff] (!%p150_p6)  }
   0xd   : > { %812 = vmatprep.subr.bf16.mxu0 (!%p150_p6), %v956_v2  ;;  %851 = vmatprep.subr.bf16.mxu1 (!%p150_p6), %v956_v2  ;;  %v961_v7 = vld [vmem:[%s1269_s1 + $0x18] sm:$0xff] (!%p150_p6)   ;;  %v963_v9 = vld [vmem:[%s1269_s1 + $0x20] sm:$0xff] (!%p150_p6)   ;;  %v965_v13 = vld [vmem:[%s1269_s1 + $0x28] sm:$0xff] (!%p150_p6)  }
   0xe   : > { %v966_v14 = vld [vmem:[%s1269_s1 + $0x70] sm:$0xff] (!%p150_p6)   ;;  %v968_v16 = vld [vmem:[%s1269_s1 + $0x78] sm:$0xff] (!%p150_p6)   ;;  %v748_v26 = vld [vmem:[%s1270_s2] ss:$0 sm:$0xff] (!%p150_p6) }
   0xf   : > { %v967_v15 = vld [vmem:[%s1269_s1 + $0x30] sm:$0xff] (!%p150_p6)   ;;  %v969_v17 = vld [vmem:[%s1269_s1 + $0x38] sm:$0xff] (!%p150_p6)  }
  0x10   : > { %813 = vmatpush3.bf16.msra.mxu0 (!%p150_p6), %v957_v3  ;;  %859 = vmatpush3.bf16.msra.mxu1 (!%p150_p6), %v957_v3 }
  0x11   : > { %814 = vmatprep.subr.bf16.mxu0 (!%p150_p6), %v958_v4  ;;  %852 = vmatprep.subr.bf16.mxu1 (!%p150_p6), %v958_v4 }
  0x12   : > { %s185_s7 = scalar_select %p184_p7, %s1123_s23, 12 }
  0x13   : > { %s506_s22 = ssub.s32 (%p1115_p4), 13, %s1123_s23 }
  0x14   : > { %815 = vmatpush3.bf16.msra.mxu0 %v959_v5  ;;  %860 = vmatpush3.bf16.msra.mxu1 %v959_v5  ;;  %s798_s14 = sshll.u32 %s185_s7, 3  ;;  %p507_p8 = scmp.lt.s32.totalorder (%p1115_p4), %s506_s22, 8 }
  0x15   : > { %816 = vmatprep.subr.bf16.mxu0 %v960_v6  ;;  %853 = vmatprep.subr.bf16.mxu1 %v960_v6  ;;  %s1154_s24 = scalar_lea.vmem %s1268_s0, %s798_s14  ;;  %s175_s14 = sand.u32 1, %s1028_s12  }
  0x16   : > { %v972_v11 = vld [vmem:[%s1154_s24 + $0x4] ss:$8 sps:$4 sm:$0xff]   ;;  %v970_v18 = vld [vmem:[%s1154_s24] ss:$8 sps:$4 sm:$0xff]   ;;  %v976_v20 = vld [vmem:[%s1154_s24 + $0x14] ss:$8 sps:$4 sm:$0xff]  }
  0x17   : > { %v975_v12 = vld [vmem:[%s1154_s24 + $0x24] ss:$8 sps:$4 sm:$0xff]   ;;  %416 = vmatprep.mubr.bf16.mxu0 %v972_v11  ;;  %v973_v19 = vld [vmem:[%s1154_s24 + $0x20] ss:$8 sps:$4 sm:$0xff]   ;;  %v978_v21 = vld [vmem:[%s1154_s24 + $0x34] ss:$8 sps:$4 sm:$0xff]  }
  0x18   : > { %817 = vmatpush3.bf16.msra.mxu0 %v961_v7  ;;  %861 = vmatpush3.bf16.msra.mxu1 %v961_v7  ;;  %v980_v22 = vld [vmem:[%s1154_s24 + $0x10] ss:$8 sps:$4 sm:$0xff]   ;;  %s744_s21 = sshll.u32 %s175_s14, 5 }
  0x19   : > { %818 = vmatprep.subr.bf16.mxu0 %v962_v8  ;;  %854 = vmatprep.subr.bf16.mxu1 %v962_v8  ;;  %v981_v23 = vld [vmem:[%s1154_s24 + $0x30] ss:$8 sps:$4 sm:$0xff]   ;;  %s1189_s12 = scalar_lea.vmem [#allocation2], %s744_s21   ;;  %s807_s24 = sshll.u32 (%p1115_p4), %s1103_s15, 5 }
  0x1a   : > { %432 = vmatprep.mubr.bf16.mxu1 %v975_v12  ;;  %s1214_s27 = scalar_lea.vmem (%p1115_p4), %s1271_s3, %s807_s24  }
  0x1c   : > { %819 = vmatpush3.bf16.msra.mxu0 %v963_v9  ;;  %862 = vmatpush3.bf16.msra.mxu1 %v963_v9 }
  0x1d   : > { %820 = vmatprep.subr.bf16.mxu0 %v964_v10  ;;  %855 = vmatprep.subr.bf16.mxu1 %v964_v10 }
  0x20   : > { %821 = vmatpush3.bf16.msra.mxu0 %v965_v13  ;;  %863 = vmatpush3.bf16.msra.mxu1 %v965_v13 }
  0x21   : > { %822 = vmatprep.subr.bf16.mxu0 %v966_v14  ;;  %856 = vmatprep.subr.bf16.mxu1 %v966_v14 }
  0x24   : > { %823 = vmatpush3.bf16.msra.mxu0 %v967_v15  ;;  %864 = vmatpush3.bf16.msra.mxu1 %v967_v15 }
  0x25   : > { %824 = vmatprep.subr.bf16.mxu0 %v968_v16  ;;  %857 = vmatprep.subr.bf16.mxu1 %v968_v16 }
  0x28   : > { %825 = vmatpush3.bf16.msra.mxu0 %v969_v17  ;;  %865 = vmatpush3.bf16.msra.mxu1 %v969_v17 }
  0x2b   : > { %417 = vmatmul.mubr.bf16.vlgmr.msra.gmra.mrb[0].mxu0 %v970_v18  ;;  %433 = vmatmul.mubr.bf16.vlgmr.msra.gmra.mrb[0].mxu1 %v973_v19 }
  0x2c   : > { %424 = vmatprep.mubr.bf16.mxu0 %v976_v20  ;;  %440 = vmatprep.mubr.bf16.mxu1 %v978_v21 }
  0x33   : > { %425 = vmatmul.mubr.bf16.gmra.mrb[4].mxu0 %v980_v22  ;;  %441 = vmatmul.mubr.bf16.gmra.mrb[4].mxu1 %v981_v23 }
  0xfe   : > { %v826_v24 = vpop.f32.mrb[0].mxu0  ;;  %v838_v25 = vpop.f32.mrb[0].mxu1 }
  0xff   : > { %v827_v27 = vpop.f32.mrb[1].mxu0  ;;  %v839_v28 = vpop.f32.mrb[1].mxu1 }
 0x100   : > { %v828_v29 = vadd.f32 %v827_v27, %v826_v24  ;;  %v840_v30 = vadd.f32 %v839_v28, %v838_v25  ;;  %v829_v31 = vpop.f32.mrb[2].mxu0  ;;  %v841_v32 = vpop.f32.mrb[2].mxu1 }
 0x101   : > { %v830_v33 = vpop.f32.mrb[3].mxu0  ;;  %v842_v34 = vpop.f32.mrb[3].mxu1 }
 0x102   : > { %v419_v35 = vadd.f32 %v828_v29, %v748_v26  ;;  %v435_v36 = vadd.f32 %v840_v30, %v748_v26  ;;  %v831_v37 = vadd.f32 %v830_v33, %v829_v31  ;;  %v843_v38 = vadd.f32 %v842_v34, %v841_v32 }
 0x104   : > { %v449_v39 = vmax.f32 %v419_v35, 0.0  ;;  %v453_v40 = vmax.f32 %v435_v36, 0.0  ;;  %v422_v41 = vadd.f32 %v831_v37, %v748_v26  ;;  %v438_v42 = vadd.f32 %v843_v38, %v748_v26 }
 0x106   : > { %v799_v43 = vpack.c.bf16 %v449_v39, %v449_v39  ;;  %v803_v44 = vpack.c.bf16 %v453_v40, %v453_v40  ;;  %v450_v45 = vmax.f32 %v422_v41, 0.0  ;;  %v454_v46 = vmax.f32 %v438_v42, 0.0  ;;  %v832_v47 = vpop.f32.mrb[4].mxu0  ;;  %v844_v48 = vpop.f32.mrb[4].mxu1 }
 0x107   : > { %v833_v49 = vpop.f32.mrb[5].mxu0  ;;  %v845_v50 = vpop.f32.mrb[5].mxu1 }
 0x108   : > { %490 = vst.msk [vmem:[%s1189_s12] sm:$0xf] %vm489_vm0, %v799_v43  ;;  %494 = vst.msk [vmem:[%s1189_s12 + $0x10] sm:$0xf] %vm489_vm0, %v803_v44  ;;  %v800_v51 = vpack.c.bf16 %v450_v45, %v450_v45  ;;  %v804_v52 = vpack.c.bf16 %v454_v46, %v454_v46  ;;  %v834_v53 = vadd.f32 %v833_v49, %v832_v47  ;;  %v835_v55 = vpop.f32.mrb[6].mxu0  ;;  %v847_v56 = vpop.f32.mrb[6].mxu1 }
 0x109   : > { %v846_v54 = vadd.f32 %v845_v50, %v844_v48  ;;  %v836_v57 = vpop.f32.mrb[7].mxu0  ;;  %v848_v58 = vpop.f32.mrb[7].mxu1 }
 0x10a   : > { %491 = vst.msk [vmem:[%s1189_s12 + $0x4] sm:$0xf] %vm489_vm0, %v800_v51  ;;  %495 = vst.msk [vmem:[%s1189_s12 + $0x14] sm:$0xf] %vm489_vm0, %v804_v52  ;;  %v427_v59 = vadd.f32 %v834_v53, %v748_v26  ;;  %v837_v61 = vadd.f32 %v836_v57, %v835_v55  ;;  %v849_v62 = vadd.f32 %v848_v58, %v847_v56 }
 0x10b   : > { %v443_v60 = vadd.f32 %v846_v54, %v748_v26 }
 0x10c   : > { %v451_v63 = vmax.f32 %v427_v59, 0.0  ;;  %v430_v1 = vadd.f32 %v837_v61, %v748_v26  ;;  %v446_v2 = vadd.f32 %v849_v62, %v748_v26  ;;  %504 = sbr.rel (!%p1115_p4) target bundleno = 329 (0x149), region = 36 }
 0x10d   : > { %v455_v0 = vmax.f32 %v443_v60, 0.0 }
 0x10e   : > { %v801_v3 = vpack.c.bf16 %v451_v63, %v451_v63  ;;  %v452_v5 = vmax.f32 %v430_v1, 0.0  ;;  %v456_v6 = vmax.f32 %v446_v2, 0.0 }
 0x10f   : > { %v805_v4 = vpack.c.bf16 %v455_v0, %v455_v0 }
 0x110   : > { %492 = vst.msk [vmem:[%s1189_s12 + $0x8] sm:$0xf] %vm489_vm0, %v801_v3  ;;  %v802_v7 = vpack.c.bf16 %v452_v5, %v452_v5  ;;  %v806_v8 = vpack.c.bf16 %v456_v6, %v456_v6 }
 0x111   : > { %496 = vst.msk [vmem:[%s1189_s12 + $0x18] sm:$0xf] %vm489_vm0, %v805_v4 }
 0x112   : > { %493 = vst.msk [vmem:[%s1189_s12 + $0xc] sm:$0xf] %vm489_vm0, %v802_v7  ;;  %497 = vst.msk [vmem:[%s1189_s12 + $0x1c] sm:$0xf] %vm489_vm0, %v806_v8 }
 0x113   : > { %s1280_s22 = smov (!%p507_p8, %s506_s22), 8 }
 0x114   : > { %s783_s28 = sshll.u32 %s1280_s22, 6 }
 0x115   : > { %p786_p9 = scmp.eq.s32.totalorder %s783_s28, 0 }
 0x116   : > { %s1220_s29 = sshrl.u32 (!%p786_p9), %s1280_s22, 3 }
 0x117   : > { %515 = sbr.rel (%p786_p9) target bundleno = 329 (0x149), region = 40  ;;  %p787_p10 = scmp.le.s32.totalorder (!%p786_p9), %s1220_s29, 0 }
 0x11e   : > { %696 = sbr.rel (%p787_p10) target bundleno = 308 (0x134), region = 112  ;;  %s1273_s15 = smov (!%p787_p10), %s1214_s27 }
 0x11f   : > { %s1274_s20 = smov (!%p787_p10), %s1189_s12  ;;  %s1229_s23 = smov (!%p787_p10), 0  }
 0x120   : > { %s1231_s30 = smov (!%p787_p10), 0  }
 0x125 LB: >> { %v531_v9 = vld [vmem:[%s1044_s20] sm:$0xf]  ;;  %v533_v10 = vld [vmem:[%s1044_s20 + $0x4] sm:$0xf]  ;;  %v535_v11 = vld [vmem:[%s1044_s20 + $0x8] sm:$0xf]  ;;  %s1052_s30 = sphi %s1231_s30, %s525_s30   ;;  %s1048_s23 = sphi %s1229_s23, %s1275_s23   ;;  %s1044_s20 = sphi %s1274_s20, %s552_s20   ;;  %s1040_s15 = sphi %s1273_s15, %s553_s15  }
 0x126   : >> { %532 = vst [vmem:[%s1040_s15] sm:$0xf] %v531_v9  ;;  %534 = vst [vmem:[%s1040_s15 + $0x4] sm:$0xf] %v533_v10  ;;  %v537_v12 = vld [vmem:[%s1044_s20 + $0xc] sm:$0xf]  ;;  %s547_s4 = sadd.s32 1, %s1048_s23 }
 0x127   : >> { %536 = vst [vmem:[%s1040_s15 + $0x8] sm:$0xf] %v535_v11  ;;  %v539_v13 = vld [vmem:[%s1044_s20 + $0x10] sm:$0xf]  ;;  %v541_v14 = vld [vmem:[%s1044_s20 + $0x14] sm:$0xf]  ;;  %p548_p11 = scmp.ge.s32.totalorder %s547_s4, %s1220_s29 }
 0x128   : >> { %538 = vst [vmem:[%s1040_s15 + $0xc] sm:$0xf] %v537_v12  ;;  %540 = vst [vmem:[%s1040_s15 + $0x10] sm:$0xf] %v539_v13  ;;  %v543_v15 = vld [vmem:[%s1044_s20 + $0x18] sm:$0xf] }
 0x129   : >> { %542 = vst [vmem:[%s1040_s15 + $0x14] sm:$0xf] %v541_v14  ;;  %v545_v16 = vld [vmem:[%s1044_s20 + $0x1c] sm:$0xf]  ;;  %544 = vst [vmem:[%s1040_s15 + $0x18] sm:$0xf] %v543_v15 }
 0x12a   : >> { %546 = vst [vmem:[%s1040_s15 + $0x1c] sm:$0xf] %v545_v16  ;;  %s1282_s4 = smov (%p548_p11, %s547_s4), 0  ;;  %s525_s30 = sadd.s32 1, %s1052_s30  }
 0x12b   : >> { %s788_s5 = sshll.u32 %s1282_s4, 5  ;;  %p524_p12 = scmp.ge.s32.totalorder %s525_s30, %s1220_s29 }
 0x12c   : >> { %s552_s20 = scalar_lea.vmem %s1189_s12, %s788_s5 [#allocation2]   ;;  %s553_s15 = scalar_lea.vmem %s1214_s27, %s788_s5  }
 0x12d   : >> { %s1275_s23 = smov %s1282_s4  ;;  %527 = sbr.rel (!%p524_p12) target bundleno = 293 (0x125), region = 118 }
 0x134 PF: > { %s1250_s6 = sand.u32 7, %s1280_s22   ;;  %s808_s7 = sshll.u32 %s1220_s29, 5 }
 0x135   : > { %s558_s8 = scalar_lea.vmem %s1189_s12, %s808_s7 [#allocation2]   ;;  %s560_s9 = scalar_lea.vmem %s1214_s27, %s808_s7  }
 0x136   : > { %p793_p13 = scmp.le.s32.totalorder %s1250_s6, 0 }
 0x137   : > { %s1054_s10 = smov (!%p793_p13), %s560_s9   ;;  %s1058_s11 = smov (!%p793_p13), %s558_s8  }
 0x138   : > { %710 = sbr.rel (%p793_p13) target bundleno = 329 (0x149), region = 123  ;;  %s1062_s14 = smov (!%p793_p13), 0  }
 0x139   : > { %s1066_s17 = smov (!%p793_p13), 0  }
 0x13f LB: >> { %v570_v17 = vld [vmem:[%s1060_s11] sm:$0xf]  ;;  %s572_s18 = sadd.s32 1, %s1064_s14  ;;  %s564_s17 = sadd.s32 1, %s1068_s17   ;;  %s1068_s17 = sphi %s1066_s17, %s564_s17   ;;  %s1064_s14 = sphi %s1062_s14, %s1063_s14   ;;  %s1060_s11 = sphi %s1058_s11, %s577_s11   ;;  %s1056_s10 = sphi %s1054_s10, %s578_s10  }
 0x140   : >> { %571 = vst [vmem:[%s1056_s10] sm:$0xf] %v570_v17  ;;  %p573_p0 = scmp.ge.s32.totalorder %s572_s18, %s1250_s6  ;;  %p563_p1 = scmp.ge.s32.totalorder %s564_s17, %s1250_s6 }
 0x142   : >> { %s1284_s18 = smov (%p573_p0, %s572_s18), 0  ;;  %566 = sbr.rel (!%p563_p1) target bundleno = 319 (0x13f), region = 129 }
 0x143   : >> { %s794_s21 = sshll.u32 %s1284_s18, 2  ;;  %s1063_s14 = smov %s1284_s18  }
 0x144   : >> { %s577_s11 = scalar_lea.vmem %s558_s8, %s794_s21 [#allocation2]   ;;  %s578_s10 = scalar_lea.vmem %s560_s9, %s794_s21  }
 0x149 PF: > { %p10_p2 = scmp.ge.s32.totalorder %s1105_s16, 4   ;;  %s1276_s12 = smov %s1032_s13 }
 0x14a   : > { %s1277_s13 = smov %s1113_s19  ;;  %s1278_s14 = smov %s1105_s16 }
 0x14b   :  { %12 = sbr.rel (!%p10_p2) target bundleno = 2 (0x2), region = 140 }

// kernel: encoder_forward.9
= control target key start
LH: loop header
LB: loop body
LE: loop exit
PB: predicated region body
PF: predicated region fallthrough
CT: control target
= control target key end

     0   :  { %10 = vsyncpa [#allocation3], 0  ;;  %s6234_s0 = inlined_call_operand.vmem [shape: bf16[2,1,3136], index: 0, kind: input, shape index: {}]   ;;  %s6235_s1 = inlined_call_operand.vmem [shape: bf16[3136,256], index: 1, kind: input, shape index: {}]   ;;  %s6236_s2 = inlined_call_operand.vmem [shape: f32[1,256], index: 2, kind: input, shape index: {}]   ;;  %s6237_s3 = inlined_call_operand.vmem [shape: bf16[256,64], index: 3, kind: input, shape index: {}]   ;;  %s6238_s4 = inlined_call_operand.vmem [shape: f32[1,64], index: 4, kind: input, shape index: {}]   ;;  %s6239_s5 = inlined_call_operand.hbm [shape: f32[2,1,64], index: 5, kind: output, shape index: {}]  }
   0x1   :  { %12 = vsyncpa [#allocation3 + $0x1], 0  ;;  %s4792_s18 = smov 0   ;;  %s4794_s19 = smov 0  }
   0x2   :  { %s4796_s20 = smov 0   ;;  %s4798_s21 = smov 0  }
   0x3 LB: > { %s4813_s22 = sadd.s32 4294967295, %s4757_s21   ;;  %s3557_s23 = sadd.s32 4294967294, %s4757_s21   ;;  %s4757_s21 = sphi %s4798_s21, %s6245_s21   ;;  %s4753_s20 = sphi %s4796_s20, %s6244_s20   ;;  %s4749_s19 = sphi %s4794_s19, %s6243_s19   ;;  %s4745_s18 = sphi %s4792_s18, %s6242_s18  }
   0x4   : > { %s4817_s24 = sadd.s32 1, %s4757_s21   ;;  %s135_s25 = sadd.s32 1, %s4753_s20 }
   0x5   : > { %s132_s26 = ssub.s32 %s4757_s21, %s4817_s24  ;;  %p145_p0 = scmp.ne.s32.totalorder %s4753_s20, %s4749_s19 }
   0x6   : > { %p133_p1 = scmp.eq.s32.totalorder %s132_s26, 0  ;;  %p146_p2 = scmp.eq.s32.totalorder %s4813_s22, 1 }
   0x7   : > { %p151_p3 = scmp.ne.s32.totalorder %s4749_s19, %s4745_s18  ;;  %p152_p4 = scmp.eq.s32.totalorder %s3557_s23, 1 }
   0x8   : > { %s4828_s27 = scalar_select %p133_p1, %s4753_s20, %s135_s25  }
   0x9   : > { %p4830_p5 = por %p146_p2, %p145_p0  ;;  %p4834_p6 = por %p152_p4, %p151_p3 }
   0xa   : > { %p3560_p7 = scmp.ge.s32.totalorder %s4757_s21, 1  ;;  %p189_p8 = scmp.lt.s32.totalorder %s4757_s21, 3 }
   0xc   : > { %p190_p9 = pnand %p3560_p7, %p189_p8 }
   0xd   : > { %v4086_v0 = vld [vmem:[%s6235_s1 + $0x4] ss:$8 sps:$4 sm:$0xff] (!%p190_p9)   ;;  %v4090_v2 = vld [vmem:[%s6235_s1] ss:$8 sps:$4 sm:$0xff] (!%p190_p9)   ;;  %v4092_v4 = vld [vmem:[%s6235_s1 + $0x14] ss:$8 sps:$4 sm:$0xff] (!%p190_p9)   ;;  %v625_v38 = vlaneseq (!%p190_p9) }
   0xe   : > { %193 = sbr.rel (%p190_p9) target bundleno = 866 (0x362), region = 40  ;;  %v4088_v1 = vld [vmem:[%s6235_s1 + $0x604] ss:$8 sps:$4 sm:$0xff] (!%p190_p9)   ;;  %2781 = vmatprep.subr.bf16.mxu1 (!%p190_p9), %v4086_v0  ;;  %v4091_v3 = vld [vmem:[%s6235_s1 + $0x600] ss:$8 sps:$4 sm:$0xff] (!%p190_p9)   ;;  %p215_p10 = scmp.lt.s32.totalorder (!%p190_p9), %s4813_s22, 1 }
   0xf   : > { %3027 = vmatprep.subr.bf16.mxu0 (!%p190_p9), %v4088_v1  ;;  %2782 = vmatpush1.bf16.msra.mxu1 (!%p190_p9), %v4090_v2  ;;  %v4094_v5 = vld [vmem:[%s6235_s1 + $0x614] ss:$8 sps:$4 sm:$0xff] (!%p190_p9)   ;;  %v4096_v6 = vld [vmem:[%s6235_s1 + $0x10] ss:$8 sps:$4 sm:$0xff] (!%p190_p9)   ;;  %v4098_v8 = vld [vmem:[%s6235_s1 + $0x24] ss:$8 sps:$4 sm:$0xff] (!%p190_p9)  }
  0x10   : > { %3028 = vmatpush1.bf16.msra.mxu0 (!%p190_p9), %v4091_v3  ;;  %2783 = vmatprep.subr.bf16.mxu1 (!%p190_p9), %v4092_v4  ;;  %v4097_v7 = vld [vmem:[%s6235_s1 + $0x610] ss:$8 sps:$4 sm:$0xff] (!%p190_p9)   ;;  %v4100_v9 = vld [vmem:[%s6235_s1 + $0x624] ss:$8 sps:$4 sm:$0xff] (!%p190_p9)   ;;  %v4102_v10 = vld [vmem:[%s6235_s1 + $0x20] ss:$8 sps:$4 sm:$0xff] (!%p190_p9)  }
  0x11   : > { %3029 = vmatprep.subr.bf16.mxu0 (!%p190_p9), %v4094_v5  ;;  %v4103_v11 = vld [vmem:[%s6235_s1 + $0x620] ss:$8 sps:$4 sm:$0xff] (!%p190_p9)   ;;  %v4104_v12 = vld [vmem:[%s6235_s1 + $0x34] ss:$8 sps:$4 sm:$0xff] (!%p190_p9)   ;;  %v4108_v14 = vld [vmem:[%s6235_s1 + $0x30] ss:$8 sps:$4 sm:$0xff] (!%p190_p9)  }
  0x12   : > { %v4106_v13 = vld [vmem:[%s6235_s1 + $0x634] ss:$8 sps:$4 sm:$0xff] (!%p190_p9)   ;;  %v4109_v15 = vld [vmem:[%s6235_s1 + $0x630] ss:$8 sps:$4 sm:$0xff] (!%p190_p9)   ;;  %v4110_v16 = vld [vmem:[%s6235_s1 + $0x44] ss:$8 sps:$4 sm:$0xff] (!%p190_p9)  }
  0x13   : > { %2784 = vmatpush1.bf16.msra.mxu1 (!%p190_p9), %v4096_v6  ;;  %v4112_v17 = vld [vmem:[%s6235_s1 + $0x644] ss:$8 sps:$4 sm:$0xff] (!%p190_p9)   ;;  %v4114_v18 = vld [vmem:[%s6235_s1 + $0x40] ss:$8 sps:$4 sm:$0xff] (!%p190_p9)   ;;  %v4116_v20 = vld [vmem:[%s6235_s1 + $0x54] ss:$8 sps:$4 sm:$0xff] (!%p190_p9)  }
  0x14   : > { %3030 = vmatpush1.bf16.msra.mxu0 (!%p190_p9), %v4097_v7  ;;  %2785 = vmatprep.subr.bf16.mxu1 (!%p190_p9), %v4098_v8  ;;  %v4115_v19 = vld [vmem:[%s6235_s1 + $0x640] ss:$8 sps:$4 sm:$0xff] (!%p190_p9)   ;;  %v4118_v21 = vld [vmem:[%s6235_s1 + $0x654] ss:$8 sps:$4 sm:$0xff] (!%p190_p9)   ;;  %v4120_v22 = vld [vmem:[%s6235_s1 + $0x50] ss:$8 sps:$4 sm:$0xff] (!%p190_p9)  }
  0x15   : > { %3031 = vmatprep.subr.bf16.mxu0 %v4100_v9  ;;  %v4121_v23 = vld [vmem:[%s6235_s1 + $0x650] ss:$8 sps:$4 sm:$0xff]   ;;  %v4122_v24 = vld [vmem:[%s6235_s1 + $0x64] ss:$8 sps:$4 sm:$0xff]   ;;  %v4126_v26 = vld [vmem:[%s6235_s1 + $0x60] ss:$8 sps:$4 sm:$0xff]  }
  0x16   : > { %v4124_v25 = vld [vmem:[%s6235_s1 + $0x664] ss:$8 sps:$4 sm:$0xff]   ;;  %v4127_v27 = vld [vmem:[%s6235_s1 + $0x660] ss:$8 sps:$4 sm:$0xff]   ;;  %v4128_v28 = vld [vmem:[%s6235_s1 + $0x74] ss:$8 sps:$4 sm:$0xff]  }
  0x17   : > { %2786 = vmatpush1.bf16.msra.mxu1 %v4102_v10  ;;  %v4130_v29 = vld [vmem:[%s6235_s1 + $0x674] ss:$8 sps:$4 sm:$0xff]   ;;  %v4132_v30 = vld [vmem:[%s6235_s1 + $0x70] ss:$8 sps:$4 sm:$0xff]   ;;  %v4134_v32 = vld [vmem:[%s6235_s1 + $0x84] ss:$8 sps:$4 sm:$0xff]  }
  0x18   : > { %3032 = vmatpush1.bf16.msra.mxu0 %v4103_v11  ;;  %2787 = vmatprep.subr.bf16.mxu1 %v4104_v12  ;;  %v4133_v31 = vld [vmem:[%s6235_s1 + $0x670] ss:$8 sps:$4 sm:$0xff]   ;;  %v4136_v33 = vld [vmem:[%s6235_s1 + $0x684] ss:$8 sps:$4 sm:$0xff]   ;;  %v4138_v34 = vld [vmem:[%s6235_s1 + $0x80] ss:$8 sps:$4 sm:$0xff]  }
  0x19   : > { %3033 = vmatprep.subr.bf16.mxu0 %v4106_v13  ;;  %v4139_v35 = vld [vmem:[%s6235_s1 + $0x680] ss:$8 sps:$4 sm:$0xff]   ;;  %v4759_v36 = vmov 1966171168   ;;  %v4140_v39 = vld [vmem:[%s6235_s1 + $0x94] ss:$8 sps:$4 sm:$0xff]  }
  0x1a   : > { %v623_v37 = vunpack.c.l.s4 %v4759_v36  ;;  %v4142_v40 = vld [vmem:[%s6235_s1 + $0x694] ss:$8 sps:$4 sm:$0xff]   ;;  %s216_s17 = scalar_select %p215_p10, %s4813_s22, 1  ;;  %v4144_v41 = vld [vmem:[%s6235_s1 + $0x90] ss:$8 sps:$4 sm:$0xff]   ;;  %v4959_v43 = vshrl.u32 %v625_v38, 7 }
  0x1b   : > { %2788 = vmatpush1.bf16.msra.mxu1 %v4108_v14  ;;  %v4145_v44 = vld [vmem:[%s6235_s1 + $0x690] ss:$8 sps:$4 sm:$0xff]   ;;  %v4146_v45 = vld [vmem:[%s6235_s1 + $0xa4] ss:$8 sps:$4 sm:$0xff]   ;;  %v4150_v47 = vld [vmem:[%s6235_s1 + $0xa0] ss:$8 sps:$4 sm:$0xff]  }
  0x1c   : > { %3034 = vmatpush1.bf16.msra.mxu0 %v4109_v15  ;;  %2789 = vmatprep.subr.bf16.mxu1 %v4110_v16  ;;  %v624_v42 = vunpack.c.0.s8 %v623_v37  ;;  %v4148_v46 = vld [vmem:[%s6235_s1 + $0x6a4] ss:$8 sps:$4 sm:$0xff]   ;;  %s4044_s10 = smul.u32 25, %s216_s17  ;;  %v4151_v48 = vld [vmem:[%s6235_s1 + $0x6a0] ss:$8 sps:$4 sm:$0xff]   ;;  %vm2777_vm0 = vcmask 523264  }
  0x1d   : > { %3035 = vmatprep.subr.bf16.mxu0 %v4112_v17  ;;  %v4152_v50 = vld [vmem:[%s6235_s1 + $0xb4] ss:$8 sps:$4 sm:$0xff]   ;;  %v4156_v53 = vld [vmem:[%s6235_s1 + $0xb0] ss:$8 sps:$4 sm:$0xff]   ;;  %v4158_v57 = vld [vmem:[%s6235_s1 + $0xc4] ss:$8 sps:$4 sm:$0xff]  }
  0x1e   : > { %v4977_v49 = vsub.s32 %v624_v42, %v4959_v43  ;;  %v4154_v51 = vld [vmem:[%s6235_s1 + $0x6b4] ss:$8 sps:$4 sm:$0xff]   ;;  %s4988_s30 = scalar_lea.vmem %s6234_s0, %s4044_s10  ;;  %v4157_v55 = vld [vmem:[%s6235_s1 + $0x6b0] ss:$8 sps:$4 sm:$0xff]   ;;  %v4160_v58 = vld [vmem:[%s6235_s1 + $0x6c4] ss:$8 sps:$4 sm:$0xff]  }
  0x1f   : > { %2790 = vmatpush1.bf16.msra.mxu1 %v4114_v18  ;;  %v4991_v52 = vld [vmem:[%s4988_s30] sm:$0xff]  ;;  %v221_v56 = vld [vmem:[%s4988_s30 + $0x8] sm:$0xff]  ;;  %v4164_v1 = vld [vmem:[%s6235_s1 + $0xd4] ss:$8 sps:$4 sm:$0xff]   ;;  %s213_s10 = sand.u32 1, %s4749_s19   ;;  %s3971_s13 = sshll.u32 %s4813_s22, 4 }
  0x20   : > { %3036 = vmatpush1.bf16.msra.mxu0 %v4115_v19  ;;  %2791 = vmatprep.subr.bf16.mxu1 %v4116_v20  ;;  %v628_v54 = vrot.slane %v4991_v52, %v4977_v49  ;;  %v670_v60 = vcombine.high %v221_v56, %v221_v56  ;;  %v4162_v63 = vld [vmem:[%s6235_s1 + $0xc0] ss:$8 sps:$4 sm:$0xff]   ;;  %v4166_v2 = vld [vmem:[%s6235_s1 + $0x6d4] ss:$8 sps:$4 sm:$0xff]   ;;  %v4168_v5 = vld [vmem:[%s6235_s1 + $0xd0] ss:$8 sps:$4 sm:$0xff]   ;;  %s6192_s23 = scalar_lea.hbm %s6239_s5, %s3971_s13 }
  0x21   : > { %3037 = vmatprep.subr.bf16.mxu0 %v4118_v21  ;;  %v4163_v0 = vld [vmem:[%s6235_s1 + $0x6c0] ss:$8 sps:$4 sm:$0xff]   ;;  %v4169_v6 = vld [vmem:[%s6235_s1 + $0x6d0] ss:$8 sps:$4 sm:$0xff]   ;;  %v4170_v7 = vld [vmem:[%s6235_s1 + $0xe4] ss:$8 sps:$4 sm:$0xff]  }
  0x22   : > { %v636_v59 = vcombine.high %v628_v54, %v628_v54  ;;  %v684_v62 = vrot.slane %v670_v60, %v4977_v49  ;;  %v4172_v8 = vld [vmem:[%s6235_s1 + $0x6e4] ss:$8 sps:$4 sm:$0xff]   ;;  %v4174_v9 = vld [vmem:[%s6235_s1 + $0xe0] ss:$8 sps:$4 sm:$0xff]   ;;  %v4176_v11 = vld [vmem:[%s6235_s1 + $0xf4] ss:$8 sps:$4 sm:$0xff]   ;;  %v5060_v17 = vrot.slane %v628_v54, %v4977_v49 }
  0x23   : > { %2792 = vmatpush1.bf16.msra.mxu1 %v4120_v22  ;;  %v4175_v10 = vld [vmem:[%s6235_s1 + $0x6e0] ss:$8 sps:$4 sm:$0xff]   ;;  %v4178_v12 = vld [vmem:[%s6235_s1 + $0x6f4] ss:$8 sps:$4 sm:$0xff]   ;;  %v4180_v13 = vld [vmem:[%s6235_s1 + $0xf0] ss:$8 sps:$4 sm:$0xff]  }
  0x24   : > { %3038 = vmatpush1.bf16.msra.mxu0 %v4121_v23  ;;  %2793 = vmatprep.subr.bf16.mxu1 %v4122_v24  ;;  %v658_v61 = vrot.slane %v636_v59, %v4977_v49  ;;  %v686_v3 = vcombine.high %v684_v62, %v684_v62  ;;  %v4181_v14 = vld [vmem:[%s6235_s1 + $0x6f0] ss:$8 sps:$4 sm:$0xff]   ;;  %v4185_v15 = vld [vmem:[%s6235_s1 + $0x104] ss:$8 sps:$4 sm:$0xff]   ;;  %v5063_v18 = vrot.slane %v684_v62, %v4977_v49  ;;  %v4183_v19 = vld [vmem:[%s6235_s1 + $0x100] ss:$8 sps:$4 sm:$0xff]  }
  0x25   : > { %3039 = vmatprep.subr.bf16.mxu0 %v4124_v25  ;;  %v4189_v16 = vld [vmem:[%s6235_s1 + $0x704] ss:$8 sps:$4 sm:$0xff]   ;;  %v4187_v20 = vld [vmem:[%s6235_s1 + $0x700] ss:$8 sps:$4 sm:$0xff]   ;;  %v4192_v21 = vld [vmem:[%s6235_s1 + $0x114] ss:$8 sps:$4 sm:$0xff]  }
  0x26   : > { %2813 = vmatprep.mubr.bf16.mxu1 %v658_v61  ;;  %v714_v4 = vrot.slane %v686_v3, %v4977_v49  ;;  %v4195_v22 = vld [vmem:[%s6235_s1 + $0x714] ss:$8 sps:$4 sm:$0xff]   ;;  %v668_v23 = vcombine.high %v658_v61, %v658_v61  ;;  %v4190_v25 = vld [vmem:[%s6235_s1 + $0x110] ss:$8 sps:$4 sm:$0xff]   ;;  %v4213_v36 = vld [vmem:[%s6235_s1 + $0x744] ss:$8 sps:$4 sm:$0xff]  }
  0x27   : > { %2794 = vmatpush1.bf16.msra.mxu1 %v4126_v26  ;;  %v4193_v26 = vld [vmem:[%s6235_s1 + $0x710] ss:$8 sps:$4 sm:$0xff]   ;;  %v4208_v37 = vld [vmem:[%s6235_s1 + $0x140] ss:$8 sps:$4 sm:$0xff]   ;;  %v4234_v54 = vld [vmem:[%s6235_s1 + $0x184] ss:$8 sps:$4 sm:$0xff]  }
  0x28   : > { %3040 = vmatpush1.bf16.msra.mxu0 %v4127_v27  ;;  %2795 = vmatprep.subr.bf16.mxu1 %v4128_v28  ;;  %v718_v24 = vcombine.high %v714_v4, %v714_v4  ;;  %v4198_v27 = vld [vmem:[%s6235_s1 + $0x124] ss:$8 sps:$4 sm:$0xff]   ;;  %v4211_v38 = vld [vmem:[%s6235_s1 + $0x740] ss:$8 sps:$4 sm:$0xff]   ;;  %v4217_v42 = vld [vmem:[%s6235_s1 + $0x750] ss:$8 sps:$4 sm:$0xff]  }
  0x29   : > { %3041 = vmatprep.subr.bf16.mxu0 %v4130_v29  ;;  %3059 = vmatprep.mubr.bf16.mxu0 %v714_v4  ;;  %v4201_v28 = vld [vmem:[%s6235_s1 + $0x724] ss:$8 sps:$4 sm:$0xff]   ;;  %v4196_v29 = vld [vmem:[%s6235_s1 + $0x120] ss:$8 sps:$4 sm:$0xff]   ;;  %v4243_v59 = vld [vmem:[%s6235_s1 + $0x794] ss:$8 sps:$4 sm:$0xff]  }
  0x2a   : > { %v4232_v56 = vld [vmem:[%s6235_s1 + $0x180] ss:$8 sps:$4 sm:$0xff]   ;;  %v4238_v60 = vld [vmem:[%s6235_s1 + $0x190] ss:$8 sps:$4 sm:$0xff]   ;;  %v4246_v62 = vld [vmem:[%s6235_s1 + $0x1a4] ss:$8 sps:$4 sm:$0xff]  }
  0x2b   : > { %2796 = vmatpush1.bf16.msra.mxu1 %v4132_v30  ;;  %v4199_v30 = vld [vmem:[%s6235_s1 + $0x720] ss:$8 sps:$4 sm:$0xff]   ;;  %v4241_v61 = vld [vmem:[%s6235_s1 + $0x790] ss:$8 sps:$4 sm:$0xff]   ;;  %v4255_v3 = vld [vmem:[%s6235_s1 + $0x7b4] ss:$8 sps:$4 sm:$0xff]  }
  0x2c   : > { %3042 = vmatpush1.bf16.msra.mxu0 %v4133_v31  ;;  %2797 = vmatprep.subr.bf16.mxu1 %v4134_v32  ;;  %v4204_v31 = vld [vmem:[%s6235_s1 + $0x134] ss:$8 sps:$4 sm:$0xff]   ;;  %v4250_v4 = vld [vmem:[%s6235_s1 + $0x1b0] ss:$8 sps:$4 sm:$0xff]   ;;  %s214_s14 = scalar_lea.vmem [#allocation2], %s213_s10  ;;  %vm3487_vm1 = vcmask 516096  }
  0x2d   : > { %3043 = vmatprep.subr.bf16.mxu0 %v4136_v33  ;;  %v4207_v32 = vld [vmem:[%s6235_s1 + $0x734] ss:$8 sps:$4 sm:$0xff]   ;;  %v4202_v33 = vld [vmem:[%s6235_s1 + $0x130] ss:$8 sps:$4 sm:$0xff]   ;;  %s3502_s15 = sshll.u32 %s214_s14, 4  ;;  %s3490_s25 = scalar_lea.sflag [#allocation3], %s213_s10  ;;  %s6194_s15 = int_to_ptr.vmem [resolvable:$true] %s3502_s15 }
  0x2e   : > { %s4695_s22 = scalar_lea.vmem %s6194_s15, 16  ;;  %s4761_s26 = smov [#allocation2]  }
  0x2f   : > { %2798 = vmatpush1.bf16.msra.mxu1 %v4138_v34  ;;  %v4205_v34 = vld [vmem:[%s6235_s1 + $0x730] ss:$8 sps:$4 sm:$0xff]   ;;  %p4696_p11 = scmp.ne.s32.totalorder %s6194_s15, %s4695_s22  ;;  %s4699_s6 = sshll.u32 %s4761_s26, 4  ;;  %s4700_s6 = int_to_ptr.vmem [resolvable:$false] %s4699_s6 }
  0x30   : > { %3044 = vmatpush1.bf16.msra.mxu0 %v4139_v35  ;;  %2799 = vmatprep.subr.bf16.mxu1 %v4140_v39  ;;  %v4210_v35 = vld [vmem:[%s6235_s1 + $0x144] ss:$8 sps:$4 sm:$0xff]   ;;  %v4216_v39 = vld [vmem:[%s6235_s1 + $0x154] ss:$8 sps:$4 sm:$0xff]   ;;  %p4702_p0 = scmp.lt.s32.totalorder %s6194_s15, %s4700_s6 }
  0x31   : > { %3045 = vmatprep.subr.bf16.mxu0 %v4142_v40  ;;  %v4219_v40 = vld [vmem:[%s6235_s1 + $0x754] ss:$8 sps:$4 sm:$0xff]   ;;  %p4697_p12 = pnand %p4696_p11, %p4830_p5 }
  0x33   : > { %2800 = vmatpush1.bf16.msra.mxu1 %v4144_v41  ;;  %v4214_v41 = vld [vmem:[%s6235_s1 + $0x150] ss:$8 sps:$4 sm:$0xff]   ;;  %p4698_p13 = pneg %p4697_p12 }
  0x34   : > { %3046 = vmatpush1.bf16.msra.mxu0 %v4145_v44  ;;  %2801 = vmatprep.subr.bf16.mxu1 %v4146_v45  ;;  %v4222_v44 = vld [vmem:[%s6235_s1 + $0x164] ss:$8 sps:$4 sm:$0xff]  }
  0x35   : > { %3047 = vmatprep.subr.bf16.mxu0 %v4148_v46  ;;  %v4225_v45 = vld [vmem:[%s6235_s1 + $0x764] ss:$8 sps:$4 sm:$0xff]   ;;  %v4220_v46 = vld [vmem:[%s6235_s1 + $0x160] ss:$8 sps:$4 sm:$0xff]  }
  0x37   : > { %2802 = vmatpush1.bf16.msra.mxu1 %v4150_v47  ;;  %v4223_v47 = vld [vmem:[%s6235_s1 + $0x760] ss:$8 sps:$4 sm:$0xff]  }
  0x38   : > { %3048 = vmatpush1.bf16.msra.mxu0 %v4151_v48  ;;  %2803 = vmatprep.subr.bf16.mxu1 %v4152_v50  ;;  %v4228_v48 = vld [vmem:[%s6235_s1 + $0x174] ss:$8 sps:$4 sm:$0xff]  }
  0x39   : > { %3049 = vmatprep.subr.bf16.mxu0 %v4154_v51  ;;  %v4231_v50 = vld [vmem:[%s6235_s1 + $0x774] ss:$8 sps:$4 sm:$0xff]   ;;  %v4226_v51 = vld [vmem:[%s6235_s1 + $0x170] ss:$8 sps:$4 sm:$0xff]  }
  0x3b   : > { %2804 = vmatpush1.bf16.msra.mxu1 %v4156_v53  ;;  %v4229_v53 = vld [vmem:[%s6235_s1 + $0x770] ss:$8 sps:$4 sm:$0xff]  }
  0x3c   : > { %3050 = vmatpush1.bf16.msra.mxu0 %v4157_v55  ;;  %2805 = vmatprep.subr.bf16.mxu1 %v4158_v57  ;;  %v4237_v55 = vld [vmem:[%s6235_s1 + $0x784] ss:$8 sps:$4 sm:$0xff]   ;;  %v4235_v57 = vld [vmem:[%s6235_s1 + $0x780] ss:$8 sps:$4 sm:$0xff]  }
  0x3d   : > { %3051 = vmatprep.subr.bf16.mxu0 %v4160_v58  ;;  %v4240_v58 = vld [vmem:[%s6235_s1 + $0x194] ss:$8 sps:$4 sm:$0xff]  }
  0x3f   : > { %2806 = vmatpush1.bf16.msra.mxu1 %v4162_v63  ;;  %v4249_v63 = vld [vmem:[%s6235_s1 + $0x7a4] ss:$8 sps:$4 sm:$0xff]  }
  0x40   : > { %3052 = vmatpush1.bf16.msra.mxu0 %v4163_v0  ;;  %2807 = vmatprep.subr.bf16.mxu1 %v4164_v1  ;;  %v4244_v0 = vld [vmem:[%s6235_s1 + $0x1a0] ss:$8 sps:$4 sm:$0xff]  }
  0x41   : > { %3053 = vmatprep.subr.bf16.mxu0 %v4166_v2  ;;  %v4247_v1 = vld [vmem:[%s6235_s1 + $0x7a0] ss:$8 sps:$4 sm:$0xff]   ;;  %v4252_v2 = vld [vmem:[%s6235_s1 + $0x1b4] ss:$8 sps:$4 sm:$0xff]  }
  0x43   : > { %2808 = vmatpush1.bf16.msra.mxu1 %v4168_v5  ;;  %v4253_v5 = vld [vmem:[%s6235_s1 + $0x7b0] ss:$8 sps:$4 sm:$0xff]  }
  0x44   : > { %3054 = vmatpush1.bf16.msra.mxu0 %v4169_v6  ;;  %2809 = vmatprep.subr.bf16.mxu1 %v4170_v7  ;;  %v4258_v6 = vld [vmem:[%s6235_s1 + $0x1c4] ss:$8 sps:$4 sm:$0xff]  }
  0x45   : > { %3055 = vmatprep.subr.bf16.mxu0 %v4172_v8  ;;  %v4261_v7 = vld [vmem:[%s6235_s1 + $0x7c4] ss:$8 sps:$4 sm:$0xff]   ;;  %v4256_v8 = vld [vmem:[%s6235_s1 + $0x1c0] ss:$8 sps:$4 sm:$0xff]  }
  0x47   : > { %2810 = vmatpush1.bf16.msra.mxu1 %v4174_v9  ;;  %v4259_v9 = vld [vmem:[%s6235_s1 + $0x7c0] ss:$8 sps:$4 sm:$0xff]  }
  0x48   : > { %3056 = vmatpush1.bf16.msra.mxu0 %v4175_v10  ;;  %2811 = vmatprep.subr.bf16.mxu1 %v4176_v11  ;;  %v4264_v10 = vld [vmem:[%s6235_s1 + $0x1d4] ss:$8 sps:$4 sm:$0xff]  }
  0x49   : > { %3057 = vmatprep.subr.bf16.mxu0 %v4178_v12  ;;  %v4267_v11 = vld [vmem:[%s6235_s1 + $0x7d4] ss:$8 sps:$4 sm:$0xff]   ;;  %v4262_v12 = vld [vmem:[%s6235_s1 + $0x1d0] ss:$8 sps:$4 sm:$0xff]  }
  0x4b   : > { %2812 = vmatpush1.bf16.msra.mxu1 %v4180_v13  ;;  %v4265_v13 = vld [vmem:[%s6235_s1 + $0x7d0] ss:$8 sps:$4 sm:$0xff]  }
  0x4c   : > { %3058 = vmatpush1.bf16.msra.mxu0 %v4181_v14  ;;  %2822 = vmatprep.subr.bf16.mxu1 %v4185_v15  ;;  %v4270_v14 = vld [vmem:[%s6235_s1 + $0x1e4] ss:$8 sps:$4 sm:$0xff]  }
  0x4d   : > { %3068 = vmatprep.subr.bf16.mxu0 %v4189_v16  ;;  %v4273_v15 = vld [vmem:[%s6235_s1 + $0x7e4] ss:$8 sps:$4 sm:$0xff]   ;;  %v621_v16 = vcombine.high %v4991_v52, %v4991_v52  ;;  %v4279_v52 = vld [vmem:[%s6235_s1 + $0x7f4] ss:$8 sps:$4 sm:$0xff]  }
  0x4e   : > { %2814 = vmatmul.mubr.bf16.vlgmr.msra.gmra.mrb[0].mxu1 %v5060_v17 }
  0x4f   : > { %3060 = vmatmul.mubr.bf16.vlgmr.msra.gmra.mrb[0].mxu0 %v5063_v18  ;;  %2823 = vmatpush1.bf16.msra.mxu1 %v4183_v19  ;;  %v4268_v19 = vld [vmem:[%s6235_s1 + $0x1e0] ss:$8 sps:$4 sm:$0xff]  }
  0x50   : > { %3069 = vmatpush1.bf16.msra.mxu0 %v4187_v20  ;;  %2824 = vmatprep.subr.bf16.mxu1 %v4192_v21  ;;  %v4271_v20 = vld [vmem:[%s6235_s1 + $0x7e0] ss:$8 sps:$4 sm:$0xff]   ;;  %v4276_v21 = vld [vmem:[%s6235_s1 + $0x1f4] ss:$8 sps:$4 sm:$0xff]  }
  0x51   : > { %3070 = vmatprep.subr.bf16.mxu0 %v4195_v22  ;;  %2854 = vmatprep.mubr.bf16.mxu1 %v668_v23  ;;  %v5250_v22 = vrot.slane %v621_v16, %v4977_v49  ;;  %v4274_v23 = vld [vmem:[%s6235_s1 + $0x1f0] ss:$8 sps:$4 sm:$0xff]  }
  0x52   : > { %3100 = vmatprep.mubr.bf16.mxu0 %v718_v24  ;;  %v4277_v24 = vld [vmem:[%s6235_s1 + $0x7f0] ss:$8 sps:$4 sm:$0xff]  }
  0x53   : > { %2825 = vmatpush1.bf16.msra.mxu1 %v4190_v25  ;;  %v4282_v25 = vld [vmem:[%s6235_s1 + $0x204] ss:$8 sps:$4 sm:$0xff]   ;;  %v4346_v16 = vld [vmem:[%s6235_s1 + $0x2b0] ss:$8 sps:$4 sm:$0xff]  }
  0x54   : > { %3071 = vmatpush1.bf16.msra.mxu0 %v4193_v26  ;;  %2826 = vmatprep.subr.bf16.mxu1 %v4198_v27  ;;  %v4285_v26 = vld [vmem:[%s6235_s1 + $0x804] ss:$8 sps:$4 sm:$0xff]   ;;  %v637_v27 = vcombine.high %v5250_v22, %v5250_v22 }
  0x55   : > { %3072 = vmatprep.subr.bf16.mxu0 %v4201_v28  ;;  %v666_v28 = vcombine.high %v5060_v17, %v5060_v17  ;;  %v4291_v17 = vld [vmem:[%s6235_s1 + $0x814] ss:$8 sps:$4 sm:$0xff]  }
  0x57   : > { %2827 = vmatpush1.bf16.msra.mxu1 %v4196_v29  ;;  %v716_v29 = vcombine.high %v5063_v18, %v5063_v18  ;;  %v5283_v18 = vrot.slane %v637_v27, %v4977_v49  ;;  %v4361_v27 = vld [vmem:[%s6235_s1 + $0x8d0] ss:$8 sps:$4 sm:$0xff]  }
  0x58   : > { %3073 = vmatpush1.bf16.msra.mxu0 %v4199_v30  ;;  %2828 = vmatprep.subr.bf16.mxu1 %v4204_v31  ;;  %v4280_v30 = vld [vmem:[%s6235_s1 + $0x200] ss:$8 sps:$4 sm:$0xff]  }
  0x59   : > { %3074 = vmatprep.subr.bf16.mxu0 %v4207_v32  ;;  %v4283_v31 = vld [vmem:[%s6235_s1 + $0x800] ss:$8 sps:$4 sm:$0xff]   ;;  %v4288_v32 = vld [vmem:[%s6235_s1 + $0x214] ss:$8 sps:$4 sm:$0xff]  }
  0x5b   : > { %2829 = vmatpush1.bf16.msra.mxu1 %v4202_v33  ;;  %v5286_v33 = vld [vmem:[%s4988_s30 + $0x10] sm:$0xff] }
  0x5c   : > { %3075 = vmatpush1.bf16.msra.mxu0 %v4205_v34  ;;  %2830 = vmatprep.subr.bf16.mxu1 %v4210_v35  ;;  %v4286_v34 = vld [vmem:[%s6235_s1 + $0x210] ss:$8 sps:$4 sm:$0xff]   ;;  %v5293_v35 = vrot.slane %v5286_v33, %v4977_v49 }
  0x5d   : > { %3076 = vmatprep.subr.bf16.mxu0 %v4213_v36  ;;  %v4289_v36 = vld [vmem:[%s6235_s1 + $0x810] ss:$8 sps:$4 sm:$0xff]  }
  0x5f   : > { %2831 = vmatpush1.bf16.msra.mxu1 %v4208_v37  ;;  %v4294_v37 = vld [vmem:[%s6235_s1 + $0x224] ss:$8 sps:$4 sm:$0xff]  }
  0x60   : > { %3077 = vmatpush1.bf16.msra.mxu0 %v4211_v38  ;;  %2832 = vmatprep.subr.bf16.mxu1 %v4216_v39  ;;  %v4297_v38 = vld [vmem:[%s6235_s1 + $0x824] ss:$8 sps:$4 sm:$0xff]   ;;  %v734_v39 = vcombine.high %v5293_v35, %v5293_v35 }
  0x61   : > { %3078 = vmatprep.subr.bf16.mxu0 %v4219_v40  ;;  %v4292_v40 = vld [vmem:[%s6235_s1 + $0x220] ss:$8 sps:$4 sm:$0xff]  }
  0x63   : > { %2833 = vmatpush1.bf16.msra.mxu1 %v4214_v41  ;;  %v5311_v41 = vrot.slane %v734_v39, %v4977_v49  ;;  %v4376_v39 = vld [vmem:[%s6235_s1 + $0x300] ss:$8 sps:$4 sm:$0xff]  }
  0x64   : > { %3079 = vmatpush1.bf16.msra.mxu0 %v4217_v42  ;;  %2834 = vmatprep.subr.bf16.mxu1 %v4222_v44  ;;  %v4295_v42 = vld [vmem:[%s6235_s1 + $0x820] ss:$8 sps:$4 sm:$0xff]   ;;  %v4300_v44 = vld [vmem:[%s6235_s1 + $0x234] ss:$8 sps:$4 sm:$0xff]  }
  0x65   : > { %3080 = vmatprep.subr.bf16.mxu0 %v4225_v45  ;;  %v4303_v45 = vld [vmem:[%s6235_s1 + $0x834] ss:$8 sps:$4 sm:$0xff]  }
  0x67   : > { %2835 = vmatpush1.bf16.msra.mxu1 %v4220_v46  ;;  %v4298_v46 = vld [vmem:[%s6235_s1 + $0x230] ss:$8 sps:$4 sm:$0xff]  }
  0x68   : > { %3081 = vmatpush1.bf16.msra.mxu0 %v4223_v47  ;;  %2836 = vmatprep.subr.bf16.mxu1 %v4228_v48  ;;  %v4301_v47 = vld [vmem:[%s6235_s1 + $0x830] ss:$8 sps:$4 sm:$0xff]   ;;  %v4306_v48 = vld [vmem:[%s6235_s1 + $0x244] ss:$8 sps:$4 sm:$0xff]  }
  0x69   : > { %3082 = vmatprep.subr.bf16.mxu0 %v4231_v50  ;;  %v4309_v50 = vld [vmem:[%s6235_s1 + $0x844] ss:$8 sps:$4 sm:$0xff]  }
  0x6b   : > { %2837 = vmatpush1.bf16.msra.mxu1 %v4226_v51  ;;  %v4304_v51 = vld [vmem:[%s6235_s1 + $0x240] ss:$8 sps:$4 sm:$0xff]  }
  0x6c   : > { %3083 = vmatpush1.bf16.msra.mxu0 %v4229_v53  ;;  %2838 = vmatprep.subr.bf16.mxu1 %v4234_v54  ;;  %v4307_v53 = vld [vmem:[%s6235_s1 + $0x840] ss:$8 sps:$4 sm:$0xff]   ;;  %v4312_v54 = vld [vmem:[%s6235_s1 + $0x254] ss:$8 sps:$4 sm:$0xff]  }
  0x6d   : > { %3084 = vmatprep.subr.bf16.mxu0 %v4237_v55  ;;  %v4315_v55 = vld [vmem:[%s6235_s1 + $0x854] ss:$8 sps:$4 sm:$0xff]  }
  0x6f   : > { %2839 = vmatpush1.bf16.msra.mxu1 %v4232_v56  ;;  %v4310_v56 = vld [vmem:[%s6235_s1 + $0x250] ss:$8 sps:$4 sm:$0xff]  }
  0x70   : > { %3085 = vmatpush1.bf16.msra.mxu0 %v4235_v57  ;;  %2840 = vmatprep.subr.bf16.mxu1 %v4240_v58  ;;  %v4313_v57 = vld [vmem:[%s6235_s1 + $0x850] ss:$8 sps:$4 sm:$0xff]   ;;  %v4318_v58 = vld [vmem:[%s6235_s1 + $0x264] ss:$8 sps:$4 sm:$0xff]  }
  0x71   : > { %3086 = vmatprep.subr.bf16.mxu0 %v4243_v59  ;;  %v4321_v59 = vld [vmem:[%s6235_s1 + $0x864] ss:$8 sps:$4 sm:$0xff]  }
  0x73   : > { %2841 = vmatpush1.bf16.msra.mxu1 %v4238_v60  ;;  %v4316_v60 = vld [vmem:[%s6235_s1 + $0x260] ss:$8 sps:$4 sm:$0xff]  }
  0x74   : > { %3087 = vmatpush1.bf16.msra.mxu0 %v4241_v61  ;;  %2842 = vmatprep.subr.bf16.mxu1 %v4246_v62  ;;  %v4319_v61 = vld [vmem:[%s6235_s1 + $0x860] ss:$8 sps:$4 sm:$0xff]   ;;  %v4324_v62 = vld [vmem:[%s6235_s1 + $0x274] ss:$8 sps:$4 sm:$0xff]  }
  0x75   : > { %3088 = vmatprep.subr.bf16.mxu0 %v4249_v63  ;;  %v4327_v63 = vld [vmem:[%s6235_s1 + $0x874] ss:$8 sps:$4 sm:$0xff]  }
  0x77   : > { %2843 = vmatpush1.bf16.msra.mxu1 %v4244_v0  ;;  %v4322_v0 = vld [vmem:[%s6235_s1 + $0x270] ss:$8 sps:$4 sm:$0xff]  }
  0x78   : > { %3089 = vmatpush1.bf16.msra.mxu0 %v4247_v1  ;;  %2844 = vmatprep.subr.bf16.mxu1 %v4252_v2  ;;  %v4325_v1 = vld [vmem:[%s6235_s1 + $0x870] ss:$8 sps:$4 sm:$0xff]   ;;  %v4330_v2 = vld [vmem:[%s6235_s1 + $0x284] ss:$8 sps:$4 sm:$0xff]  }
  0x79   : > { %3090 = vmatprep.subr.bf16.mxu0 %v4255_v3  ;;  %v4333_v3 = vld [vmem:[%s6235_s1 + $0x884] ss:$8 sps:$4 sm:$0xff]  }
  0x7b   : > { %2845 = vmatpush1.bf16.msra.mxu1 %v4250_v4  ;;  %v4328_v4 = vld [vmem:[%s6235_s1 + $0x280] ss:$8 sps:$4 sm:$0xff]  }
  0x7c   : > { %3091 = vmatpush1.bf16.msra.mxu0 %v4253_v5  ;;  %2846 = vmatprep.subr.bf16.mxu1 %v4258_v6  ;;  %v4331_v5 = vld [vmem:[%s6235_s1 + $0x880] ss:$8 sps:$4 sm:$0xff]   ;;  %v4336_v6 = vld [vmem:[%s6235_s1 + $0x294] ss:$8 sps:$4 sm:$0xff]  }
  0x7d   : > { %3092 = vmatprep.subr.bf16.mxu0 %v4261_v7  ;;  %v4339_v7 = vld [vmem:[%s6235_s1 + $0x894] ss:$8 sps:$4 sm:$0xff]  }
  0x7f   : > { %2847 = vmatpush1.bf16.msra.mxu1 %v4256_v8  ;;  %v4334_v8 = vld [vmem:[%s6235_s1 + $0x290] ss:$8 sps:$4 sm:$0xff]  }
  0x80   : > { %3093 = vmatpush1.bf16.msra.mxu0 %v4259_v9  ;;  %2848 = vmatprep.subr.bf16.mxu1 %v4264_v10  ;;  %v4337_v9 = vld [vmem:[%s6235_s1 + $0x890] ss:$8 sps:$4 sm:$0xff]   ;;  %v4342_v10 = vld [vmem:[%s6235_s1 + $0x2a4] ss:$8 sps:$4 sm:$0xff]  }
  0x81   : > { %3094 = vmatprep.subr.bf16.mxu0 %v4267_v11  ;;  %v4345_v11 = vld [vmem:[%s6235_s1 + $0x8a4] ss:$8 sps:$4 sm:$0xff]  }
  0x83   : > { %2849 = vmatpush1.bf16.msra.mxu1 %v4262_v12  ;;  %v4340_v12 = vld [vmem:[%s6235_s1 + $0x2a0] ss:$8 sps:$4 sm:$0xff]  }
  0x84   : > { %3095 = vmatpush1.bf16.msra.mxu0 %v4265_v13  ;;  %2850 = vmatprep.subr.bf16.mxu1 %v4270_v14  ;;  %v4343_v13 = vld [vmem:[%s6235_s1 + $0x8a0] ss:$8 sps:$4 sm:$0xff]   ;;  %v4348_v14 = vld [vmem:[%s6235_s1 + $0x2b4] ss:$8 sps:$4 sm:$0xff]  }
  0x85   : > { %3096 = vmatprep.subr.bf16.mxu0 %v4273_v15  ;;  %v4351_v15 = vld [vmem:[%s6235_s1 + $0x8b4] ss:$8 sps:$4 sm:$0xff]  }
  0x87   : > { %2851 = vmatpush1.bf16.msra.mxu1 %v4268_v19  ;;  %v4349_v19 = vld [vmem:[%s6235_s1 + $0x8b0] ss:$8 sps:$4 sm:$0xff]  }
  0x88   : > { %3097 = vmatpush1.bf16.msra.mxu0 %v4271_v20  ;;  %2852 = vmatprep.subr.bf16.mxu1 %v4276_v21  ;;  %v4354_v20 = vld [vmem:[%s6235_s1 + $0x2c4] ss:$8 sps:$4 sm:$0xff]  }
  0x89   : > { %3098 = vmatprep.subr.bf16.mxu0 %v4279_v52  ;;  %v4357_v21 = vld [vmem:[%s6235_s1 + $0x8c4] ss:$8 sps:$4 sm:$0xff]   ;;  %v4352_v52 = vld [vmem:[%s6235_s1 + $0x2c0] ss:$8 sps:$4 sm:$0xff]  }
  0x8b   : > { %2853 = vmatpush1.bf16.msra.mxu1 %v4274_v23  ;;  %v4355_v23 = vld [vmem:[%s6235_s1 + $0x8c0] ss:$8 sps:$4 sm:$0xff]  }
  0x8c   : > { %3099 = vmatpush1.bf16.msra.mxu0 %v4277_v24  ;;  %2863 = vmatprep.subr.bf16.mxu1 %v4282_v25  ;;  %v4360_v24 = vld [vmem:[%s6235_s1 + $0x2d4] ss:$8 sps:$4 sm:$0xff]  }
  0x8d   : > { %3109 = vmatprep.subr.bf16.mxu0 %v4285_v26  ;;  %v4363_v25 = vld [vmem:[%s6235_s1 + $0x8d4] ss:$8 sps:$4 sm:$0xff]   ;;  %v4358_v26 = vld [vmem:[%s6235_s1 + $0x2d0] ss:$8 sps:$4 sm:$0xff]  }
  0x8e   : > { %2855 = vmatmul.mubr.bf16.vlgmr.msra.gmra.mrb[0].mxu1 %v666_v28  ;;  %v4366_v28 = vld [vmem:[%s6235_s1 + $0x2e4] ss:$8 sps:$4 sm:$0xff]  }
  0x8f   : > { %3101 = vmatmul.mubr.bf16.vlgmr.msra.gmra.mrb[0].mxu0 %v716_v29  ;;  %2864 = vmatpush1.bf16.msra.mxu1 %v4280_v30  ;;  %v4369_v29 = vld [vmem:[%s6235_s1 + $0x8e4] ss:$8 sps:$4 sm:$0xff]   ;;  %v4364_v30 = vld [vmem:[%s6235_s1 + $0x2e0] ss:$8 sps:$4 sm:$0xff]  }
  0x90   : > { %3110 = vmatpush1.bf16.msra.mxu0 %v4283_v31  ;;  %2865 = vmatprep.subr.bf16.mxu1 %v4288_v32  ;;  %v4367_v31 = vld [vmem:[%s6235_s1 + $0x8e0] ss:$8 sps:$4 sm:$0xff]   ;;  %v4372_v32 = vld [vmem:[%s6235_s1 + $0x2f4] ss:$8 sps:$4 sm:$0xff]  }
  0x91   : > { %3111 = vmatprep.subr.bf16.mxu0 %v4291_v17  ;;  %2895 = vmatprep.mubr.bf16.mxu1 %v5283_v18  ;;  %v4375_v17 = vld [vmem:[%s6235_s1 + $0x8f4] ss:$8 sps:$4 sm:$0xff]  }
  0x92   : > { %3141 = vmatprep.mubr.bf16.mxu0 %v5311_v41 }
  0x93   : > { %2866 = vmatpush1.bf16.msra.mxu1 %v4286_v34  ;;  %v4370_v34 = vld [vmem:[%s6235_s1 + $0x2f0] ss:$8 sps:$4 sm:$0xff]  }
  0x94   : > { %3112 = vmatpush1.bf16.msra.mxu0 %v4289_v36  ;;  %2867 = vmatprep.subr.bf16.mxu1 %v4294_v37  ;;  %v4373_v36 = vld [vmem:[%s6235_s1 + $0x8f0] ss:$8 sps:$4 sm:$0xff]   ;;  %v4378_v37 = vld [vmem:[%s6235_s1 + $0x304] ss:$8 sps:$4 sm:$0xff]  }
  0x95   : > { %3113 = vmatprep.subr.bf16.mxu0 %v4297_v38  ;;  %v4381_v38 = vld [vmem:[%s6235_s1 + $0x904] ss:$8 sps:$4 sm:$0xff]  }
  0x97   : > { %2868 = vmatpush1.bf16.msra.mxu1 %v4292_v40  ;;  %v5484_v40 = vrot.slane %v5250_v22, %v4977_v49  ;;  %v4387_v22 = vld [vmem:[%s6235_s1 + $0x914] ss:$8 sps:$4 sm:$0xff]  }
  0x98   : > { %3114 = vmatpush1.bf16.msra.mxu0 %v4295_v42  ;;  %2869 = vmatprep.subr.bf16.mxu1 %v4300_v44  ;;  %v5488_v42 = vrot.slane %v5293_v35, %v4977_v49  ;;  %v4379_v44 = vld [vmem:[%s6235_s1 + $0x900] ss:$8 sps:$4 sm:$0xff]   ;;  %v669_v35 = vcombine.high %v5283_v18, %v5283_v18  ;;  %v4390_v18 = vld [vmem:[%s6235_s1 + $0x324] ss:$8 sps:$4 sm:$0xff]  }
  0x99   : > { %3115 = vmatprep.subr.bf16.mxu0 %v4303_v45  ;;  %v4384_v45 = vld [vmem:[%s6235_s1 + $0x314] ss:$8 sps:$4 sm:$0xff]  }
  0x9b   : > { %2870 = vmatpush1.bf16.msra.mxu1 %v4298_v46  ;;  %v766_v46 = vcombine.high %v5311_v41, %v5311_v41  ;;  %v4393_v41 = vld [vmem:[%s6235_s1 + $0x924] ss:$8 sps:$4 sm:$0xff]  }
  0x9c   : > { %3116 = vmatpush1.bf16.msra.mxu0 %v4301_v47  ;;  %2871 = vmatprep.subr.bf16.mxu1 %v4306_v48  ;;  %v4382_v47 = vld [vmem:[%s6235_s1 + $0x310] ss:$8 sps:$4 sm:$0xff]  }
  0x9d   : > { %3117 = vmatprep.subr.bf16.mxu0 %v4309_v50  ;;  %v4385_v48 = vld [vmem:[%s6235_s1 + $0x910] ss:$8 sps:$4 sm:$0xff]   ;;  %v4388_v50 = vld [vmem:[%s6235_s1 + $0x320] ss:$8 sps:$4 sm:$0xff]  }
  0x9f   : > { %2872 = vmatpush1.bf16.msra.mxu1 %v4304_v51  ;;  %v4391_v51 = vld [vmem:[%s6235_s1 + $0x920] ss:$8 sps:$4 sm:$0xff]  }
  0xa0   : > { %3118 = vmatpush1.bf16.msra.mxu0 %v4307_v53  ;;  %2873 = vmatprep.subr.bf16.mxu1 %v4312_v54  ;;  %v4396_v53 = vld [vmem:[%s6235_s1 + $0x334] ss:$8 sps:$4 sm:$0xff]  }
  0xa1   : > { %3119 = vmatprep.subr.bf16.mxu0 %v4315_v55  ;;  %v4399_v54 = vld [vmem:[%s6235_s1 + $0x934] ss:$8 sps:$4 sm:$0xff]   ;;  %v4394_v55 = vld [vmem:[%s6235_s1 + $0x330] ss:$8 sps:$4 sm:$0xff]  }
  0xa3   : > { %2874 = vmatpush1.bf16.msra.mxu1 %v4310_v56  ;;  %v4397_v56 = vld [vmem:[%s6235_s1 + $0x930] ss:$8 sps:$4 sm:$0xff]  }
  0xa4   : > { %3120 = vmatpush1.bf16.msra.mxu0 %v4313_v57  ;;  %2875 = vmatprep.subr.bf16.mxu1 %v4318_v58  ;;  %v4402_v57 = vld [vmem:[%s6235_s1 + $0x344] ss:$8 sps:$4 sm:$0xff]  }
  0xa5   : > { %3121 = vmatprep.subr.bf16.mxu0 %v4321_v59  ;;  %v4405_v58 = vld [vmem:[%s6235_s1 + $0x944] ss:$8 sps:$4 sm:$0xff]   ;;  %v4400_v59 = vld [vmem:[%s6235_s1 + $0x340] ss:$8 sps:$4 sm:$0xff]  }
  0xa7   : > { %2876 = vmatpush1.bf16.msra.mxu1 %v4316_v60  ;;  %v4403_v60 = vld [vmem:[%s6235_s1 + $0x940] ss:$8 sps:$4 sm:$0xff]  }
  0xa8   : > { %3122 = vmatpush1.bf16.msra.mxu0 %v4319_v61  ;;  %2877 = vmatprep.subr.bf16.mxu1 %v4324_v62  ;;  %v4408_v61 = vld [vmem:[%s6235_s1 + $0x354] ss:$8 sps:$4 sm:$0xff]  }
  0xa9   : > { %3123 = vmatprep.subr.bf16.mxu0 %v4327_v63  ;;  %v4411_v62 = vld [vmem:[%s6235_s1 + $0x954] ss:$8 sps:$4 sm:$0xff]   ;;  %v4406_v63 = vld [vmem:[%s6235_s1 + $0x350] ss:$8 sps:$4 sm:$0xff]  }
  0xab   : > { %2878 = vmatpush1.bf16.msra.mxu1 %v4322_v0  ;;  %v4409_v0 = vld [vmem:[%s6235_s1 + $0x950] ss:$8 sps:$4 sm:$0xff]  }
  0xac   : > { %3124 = vmatpush1.bf16.msra.mxu0 %v4325_v1  ;;  %2879 = vmatprep.subr.bf16.mxu1 %v4330_v2  ;;  %v4414_v1 = vld [vmem:[%s6235_s1 + $0x364] ss:$8 sps:$4 sm:$0xff]  }
  0xad   : > { %3125 = vmatprep.subr.bf16.mxu0 %v4333_v3  ;;  %v4417_v2 = vld [vmem:[%s6235_s1 + $0x964] ss:$8 sps:$4 sm:$0xff]   ;;  %v4412_v3 = vld [vmem:[%s6235_s1 + $0x360] ss:$8 sps:$4 sm:$0xff]  }
  0xaf   : > { %2880 = vmatpush1.bf16.msra.mxu1 %v4328_v4  ;;  %v4415_v4 = vld [vmem:[%s6235_s1 + $0x960] ss:$8 sps:$4 sm:$0xff]  }
  0xb0   : > { %3126 = vmatpush1.bf16.msra.mxu0 %v4331_v5  ;;  %2881 = vmatprep.subr.bf16.mxu1 %v4336_v6  ;;  %v4420_v5 = vld [vmem:[%s6235_s1 + $0x374] ss:$8 sps:$4 sm:$0xff]  }
  0xb1   : > { %3127 = vmatprep.subr.bf16.mxu0 %v4339_v7  ;;  %v4423_v6 = vld [vmem:[%s6235_s1 + $0x974] ss:$8 sps:$4 sm:$0xff]   ;;  %v4418_v7 = vld [vmem:[%s6235_s1 + $0x370] ss:$8 sps:$4 sm:$0xff]  }
  0xb3   : > { %2882 = vmatpush1.bf16.msra.mxu1 %v4334_v8  ;;  %v4421_v8 = vld [vmem:[%s6235_s1 + $0x970] ss:$8 sps:$4 sm:$0xff]  }
  0xb4   : > { %3128 = vmatpush1.bf16.msra.mxu0 %v4337_v9  ;;  %2883 = vmatprep.subr.bf16.mxu1 %v4342_v10  ;;  %v4426_v9 = vld [vmem:[%s6235_s1 + $0x384] ss:$8 sps:$4 sm:$0xff]  }
  0xb5   : > { %3129 = vmatprep.subr.bf16.mxu0 %v4345_v11  ;;  %v4429_v10 = vld [vmem:[%s6235_s1 + $0x984] ss:$8 sps:$4 sm:$0xff]   ;;  %v4424_v11 = vld [vmem:[%s6235_s1 + $0x380] ss:$8 sps:$4 sm:$0xff]  }
  0xb7   : > { %2884 = vmatpush1.bf16.msra.mxu1 %v4340_v12  ;;  %v4427_v12 = vld [vmem:[%s6235_s1 + $0x980] ss:$8 sps:$4 sm:$0xff]  }
  0xb8   : > { %3130 = vmatpush1.bf16.msra.mxu0 %v4343_v13  ;;  %2885 = vmatprep.subr.bf16.mxu1 %v4348_v14  ;;  %v4432_v13 = vld [vmem:[%s6235_s1 + $0x394] ss:$8 sps:$4 sm:$0xff]  }
  0xb9   : > { %3131 = vmatprep.subr.bf16.mxu0 %v4351_v15  ;;  %v4435_v14 = vld [vmem:[%s6235_s1 + $0x994] ss:$8 sps:$4 sm:$0xff]   ;;  %v4430_v15 = vld [vmem:[%s6235_s1 + $0x390] ss:$8 sps:$4 sm:$0xff]  }
  0xbb   : > { %2886 = vmatpush1.bf16.msra.mxu1 %v4346_v16  ;;  %v4433_v16 = vld [vmem:[%s6235_s1 + $0x990] ss:$8 sps:$4 sm:$0xff]  }
  0xbc   : > { %3132 = vmatpush1.bf16.msra.mxu0 %v4349_v19  ;;  %2887 = vmatprep.subr.bf16.mxu1 %v4354_v20  ;;  %v4438_v19 = vld [vmem:[%s6235_s1 + $0x3a4] ss:$8 sps:$4 sm:$0xff]  }
  0xbd   : > { %3133 = vmatprep.subr.bf16.mxu0 %v4357_v21  ;;  %v4441_v20 = vld [vmem:[%s6235_s1 + $0x9a4] ss:$8 sps:$4 sm:$0xff]   ;;  %v4436_v21 = vld [vmem:[%s6235_s1 + $0x3a0] ss:$8 sps:$4 sm:$0xff]  }
  0xbf   : > { %2888 = vmatpush1.bf16.msra.mxu1 %v4352_v52  ;;  %v4439_v52 = vld [vmem:[%s6235_s1 + $0x9a0] ss:$8 sps:$4 sm:$0xff]  }
  0xc0   : > { %3134 = vmatpush1.bf16.msra.mxu0 %v4355_v23  ;;  %2889 = vmatprep.subr.bf16.mxu1 %v4360_v24  ;;  %v4444_v23 = vld [vmem:[%s6235_s1 + $0x3b4] ss:$8 sps:$4 sm:$0xff]  }
  0xc1   : > { %3135 = vmatprep.subr.bf16.mxu0 %v4363_v25  ;;  %v4447_v24 = vld [vmem:[%s6235_s1 + $0x9b4] ss:$8 sps:$4 sm:$0xff]   ;;  %v4442_v25 = vld [vmem:[%s6235_s1 + $0x3b0] ss:$8 sps:$4 sm:$0xff]  }
  0xc3   : > { %2890 = vmatpush1.bf16.msra.mxu1 %v4358_v26  ;;  %v4445_v26 = vld [vmem:[%s6235_s1 + $0x9b0] ss:$8 sps:$4 sm:$0xff]  }
  0xc4   : > { %3136 = vmatpush1.bf16.msra.mxu0 %v4361_v27  ;;  %2891 = vmatprep.subr.bf16.mxu1 %v4366_v28  ;;  %v4450_v27 = vld [vmem:[%s6235_s1 + $0x3c4] ss:$8 sps:$4 sm:$0xff]  }
  0xc5   : > { %3137 = vmatprep.subr.bf16.mxu0 %v4369_v29  ;;  %v4453_v28 = vld [vmem:[%s6235_s1 + $0x9c4] ss:$8 sps:$4 sm:$0xff]   ;;  %v4448_v29 = vld [vmem:[%s6235_s1 + $0x3c0] ss:$8 sps:$4 sm:$0xff]  }
  0xc7   : > { %2892 = vmatpush1.bf16.msra.mxu1 %v4364_v30  ;;  %v4451_v30 = vld [vmem:[%s6235_s1 + $0x9c0] ss:$8 sps:$4 sm:$0xff]  }
  0xc8   : > { %3138 = vmatpush1.bf16.msra.mxu0 %v4367_v31  ;;  %2893 = vmatprep.subr.bf16.mxu1 %v4372_v32  ;;  %v4456_v31 = vld [vmem:[%s6235_s1 + $0x3d4] ss:$8 sps:$4 sm:$0xff]  }
  0xc9   : > { %3139 = vmatprep.subr.bf16.mxu0 %v4375_v17  ;;  %v4459_v32 = vld [vmem:[%s6235_s1 + $0x9d4] ss:$8 sps:$4 sm:$0xff]   ;;  %v4454_v17 = vld [vmem:[%s6235_s1 + $0x3d0] ss:$8 sps:$4 sm:$0xff]  }
  0xcb   : > { %2894 = vmatpush1.bf16.msra.mxu1 %v4370_v34  ;;  %v4457_v34 = vld [vmem:[%s6235_s1 + $0x9d0] ss:$8 sps:$4 sm:$0xff]  }
  0xcc   : > { %3140 = vmatpush1.bf16.msra.mxu0 %v4373_v36  ;;  %2904 = vmatprep.subr.bf16.mxu1 %v4378_v37  ;;  %v4462_v36 = vld [vmem:[%s6235_s1 + $0x3e4] ss:$8 sps:$4 sm:$0xff]  }
  0xcd   : > { %3150 = vmatprep.subr.bf16.mxu0 %v4381_v38  ;;  %v4465_v37 = vld [vmem:[%s6235_s1 + $0x9e4] ss:$8 sps:$4 sm:$0xff]   ;;  %v719_v38 = vcombine.high %v5286_v33, %v5286_v33  ;;  %v4471_v33 = vld [vmem:[%s6235_s1 + $0x9f4] ss:$8 sps:$4 sm:$0xff]  }
  0xce   : > { %2896 = vmatmul.mubr.bf16.vlgmr.msra.gmra.mrb[0].mxu1 %v5484_v40 }
  0xcf   : > { %3142 = vmatmul.mubr.bf16.vlgmr.msra.gmra.mrb[0].mxu0 %v5488_v42  ;;  %2905 = vmatpush1.bf16.msra.mxu1 %v4376_v39  ;;  %v4460_v39 = vld [vmem:[%s6235_s1 + $0x3e0] ss:$8 sps:$4 sm:$0xff]  }
  0xd0   : > { %3151 = vmatpush1.bf16.msra.mxu0 %v4379_v44  ;;  %2906 = vmatprep.subr.bf16.mxu1 %v4384_v45  ;;  %v4463_v44 = vld [vmem:[%s6235_s1 + $0x9e0] ss:$8 sps:$4 sm:$0xff]   ;;  %v4468_v45 = vld [vmem:[%s6235_s1 + $0x3f4] ss:$8 sps:$4 sm:$0xff]  }
  0xd1   : > { %3152 = vmatprep.subr.bf16.mxu0 %v4387_v22  ;;  %2936 = vmatprep.mubr.bf16.mxu1 %v669_v35  ;;  %v5676_v22 = vld.sshfl [vmem:[%s4988_s30 + $0x8] sm:$0xff pattern:$0x75316420]  ;;  %v5679_v35 = vrot.slane %v719_v38, %v4977_v49  ;;  %v4541_v38 = vld [vmem:[%s6235_s1 + $0xab0] ss:$8 sps:$4 sm:$0xff]  }
  0xd2   : > { %3182 = vmatprep.mubr.bf16.mxu0 %v766_v46  ;;  %v4466_v46 = vld [vmem:[%s6235_s1 + $0x3f0] ss:$8 sps:$4 sm:$0xff]  }
  0xd3   : > { %2907 = vmatpush1.bf16.msra.mxu1 %v4382_v47  ;;  %v4469_v47 = vld [vmem:[%s6235_s1 + $0x9f0] ss:$8 sps:$4 sm:$0xff]  }
  0xd4   : > { %3153 = vmatpush1.bf16.msra.mxu0 %v4385_v48  ;;  %2908 = vmatprep.subr.bf16.mxu1 %v4390_v18  ;;  %v4474_v48 = vld [vmem:[%s6235_s1 + $0x404] ss:$8 sps:$4 sm:$0xff]  }
  0xd5   : > { %3154 = vmatprep.subr.bf16.mxu0 %v4393_v41  ;;  %v4477_v18 = vld [vmem:[%s6235_s1 + $0xa04] ss:$8 sps:$4 sm:$0xff]   ;;  %v685_v41 = vcombine.high %v5676_v22, %v5676_v22 }
  0xd7   : > { %2909 = vmatpush1.bf16.msra.mxu1 %v4388_v50  ;;  %v735_v50 = vcombine.high %v5679_v35, %v5679_v35 }
  0xd8   : > { %3155 = vmatpush1.bf16.msra.mxu0 %v4391_v51  ;;  %2910 = vmatprep.subr.bf16.mxu1 %v4396_v53  ;;  %v4472_v51 = vld [vmem:[%s6235_s1 + $0x400] ss:$8 sps:$4 sm:$0xff]   ;;  %v667_v53 = vcombine.high %v5484_v40, %v5484_v40  ;;  %v4478_v40 = vld [vmem:[%s6235_s1 + $0x410] ss:$8 sps:$4 sm:$0xff]  }
  0xd9   : > { %3156 = vmatprep.subr.bf16.mxu0 %v4399_v54  ;;  %v764_v54 = vcombine.high %v5488_v42, %v5488_v42  ;;  %v4481_v42 = vld [vmem:[%s6235_s1 + $0xa10] ss:$8 sps:$4 sm:$0xff]  }
  0xdb   : > { %2911 = vmatpush1.bf16.msra.mxu1 %v4394_v55  ;;  %v4475_v55 = vld [vmem:[%s6235_s1 + $0xa00] ss:$8 sps:$4 sm:$0xff]  }
  0xdc   : > { %3157 = vmatpush1.bf16.msra.mxu0 %v4397_v56  ;;  %2912 = vmatprep.subr.bf16.mxu1 %v4402_v57  ;;  %v4480_v56 = vld [vmem:[%s6235_s1 + $0x414] ss:$8 sps:$4 sm:$0xff]  }
  0xdd   : > { %3158 = vmatprep.subr.bf16.mxu0 %v4405_v58  ;;  %v4483_v57 = vld [vmem:[%s6235_s1 + $0xa14] ss:$8 sps:$4 sm:$0xff]   ;;  %v5720_v58 = vrot.slane %v685_v41, %v4977_v49  ;;  %v4558_v41 = vld [vmem:[%s6235_s1 + $0x4e4] ss:$8 sps:$4 sm:$0xff]  }
  0xdf   : > { %2913 = vmatpush1.bf16.msra.mxu1 %v4400_v59  ;;  %v5723_v59 = vrot.slane %v735_v50, %v4977_v49  ;;  %v4561_v50 = vld [vmem:[%s6235_s1 + $0xae4] ss:$8 sps:$4 sm:$0xff]  }
  0xe0   : > { %3159 = vmatpush1.bf16.msra.mxu0 %v4403_v60  ;;  %2914 = vmatprep.subr.bf16.mxu1 %v4408_v61  ;;  %v4486_v60 = vld [vmem:[%s6235_s1 + $0x424] ss:$8 sps:$4 sm:$0xff]  }
  0xe1   : > { %3160 = vmatprep.subr.bf16.mxu0 %v4411_v62  ;;  %v4489_v61 = vld [vmem:[%s6235_s1 + $0xa24] ss:$8 sps:$4 sm:$0xff]   ;;  %v4484_v62 = vld [vmem:[%s6235_s1 + $0x420] ss:$8 sps:$4 sm:$0xff]  }
  0xe3   : > { %2915 = vmatpush1.bf16.msra.mxu1 %v4406_v63  ;;  %v4487_v63 = vld [vmem:[%s6235_s1 + $0xa20] ss:$8 sps:$4 sm:$0xff]  }
  0xe4   : > { %3161 = vmatpush1.bf16.msra.mxu0 %v4409_v0  ;;  %2916 = vmatprep.subr.bf16.mxu1 %v4414_v1  ;;  %v4492_v0 = vld [vmem:[%s6235_s1 + $0x434] ss:$8 sps:$4 sm:$0xff]  }
  0xe5   : > { %3162 = vmatprep.subr.bf16.mxu0 %v4417_v2  ;;  %v4495_v1 = vld [vmem:[%s6235_s1 + $0xa34] ss:$8 sps:$4 sm:$0xff]   ;;  %v4490_v2 = vld [vmem:[%s6235_s1 + $0x430] ss:$8 sps:$4 sm:$0xff]  }
  0xe7   : > { %2917 = vmatpush1.bf16.msra.mxu1 %v4412_v3  ;;  %v4493_v3 = vld [vmem:[%s6235_s1 + $0xa30] ss:$8 sps:$4 sm:$0xff]  }
  0xe8   : > { %3163 = vmatpush1.bf16.msra.mxu0 %v4415_v4  ;;  %2918 = vmatprep.subr.bf16.mxu1 %v4420_v5  ;;  %v4498_v4 = vld [vmem:[%s6235_s1 + $0x444] ss:$8 sps:$4 sm:$0xff]  }
  0xe9   : > { %3164 = vmatprep.subr.bf16.mxu0 %v4423_v6  ;;  %v4501_v5 = vld [vmem:[%s6235_s1 + $0xa44] ss:$8 sps:$4 sm:$0xff]   ;;  %v4496_v6 = vld [vmem:[%s6235_s1 + $0x440] ss:$8 sps:$4 sm:$0xff]  }
  0xeb   : > { %2919 = vmatpush1.bf16.msra.mxu1 %v4418_v7  ;;  %v4499_v7 = vld [vmem:[%s6235_s1 + $0xa40] ss:$8 sps:$4 sm:$0xff]  }
  0xec   : > { %3165 = vmatpush1.bf16.msra.mxu0 %v4421_v8  ;;  %2920 = vmatprep.subr.bf16.mxu1 %v4426_v9  ;;  %v4504_v8 = vld [vmem:[%s6235_s1 + $0x454] ss:$8 sps:$4 sm:$0xff]  }
  0xed   : > { %3166 = vmatprep.subr.bf16.mxu0 %v4429_v10  ;;  %v4507_v9 = vld [vmem:[%s6235_s1 + $0xa54] ss:$8 sps:$4 sm:$0xff]   ;;  %v4502_v10 = vld [vmem:[%s6235_s1 + $0x450] ss:$8 sps:$4 sm:$0xff]  }
  0xef   : > { %2921 = vmatpush1.bf16.msra.mxu1 %v4424_v11  ;;  %v4505_v11 = vld [vmem:[%s6235_s1 + $0xa50] ss:$8 sps:$4 sm:$0xff]  }
  0xf0   : > { %3167 = vmatpush1.bf16.msra.mxu0 %v4427_v12  ;;  %2922 = vmatprep.subr.bf16.mxu1 %v4432_v13  ;;  %v4510_v12 = vld [vmem:[%s6235_s1 + $0x464] ss:$8 sps:$4 sm:$0xff]  }
  0xf1   : > { %3168 = vmatprep.subr.bf16.mxu0 %v4435_v14  ;;  %v4513_v13 = vld [vmem:[%s6235_s1 + $0xa64] ss:$8 sps:$4 sm:$0xff]   ;;  %v4508_v14 = vld [vmem:[%s6235_s1 + $0x460] ss:$8 sps:$4 sm:$0xff]  }
  0xf3   : > { %2923 = vmatpush1.bf16.msra.mxu1 %v4430_v15  ;;  %v4511_v15 = vld [vmem:[%s6235_s1 + $0xa60] ss:$8 sps:$4 sm:$0xff]  }
  0xf4   : > { %3169 = vmatpush1.bf16.msra.mxu0 %v4433_v16  ;;  %2924 = vmatprep.subr.bf16.mxu1 %v4438_v19  ;;  %v4516_v16 = vld [vmem:[%s6235_s1 + $0x474] ss:$8 sps:$4 sm:$0xff]  }
  0xf5   : > { %3170 = vmatprep.subr.bf16.mxu0 %v4441_v20  ;;  %v4519_v19 = vld [vmem:[%s6235_s1 + $0xa74] ss:$8 sps:$4 sm:$0xff]   ;;  %v4514_v20 = vld [vmem:[%s6235_s1 + $0x470] ss:$8 sps:$4 sm:$0xff]  }
  0xf7   : > { %2925 = vmatpush1.bf16.msra.mxu1 %v4436_v21  ;;  %v4517_v21 = vld [vmem:[%s6235_s1 + $0xa70] ss:$8 sps:$4 sm:$0xff]  }
  0xf8   : > { %3171 = vmatpush1.bf16.msra.mxu0 %v4439_v52  ;;  %2926 = vmatprep.subr.bf16.mxu1 %v4444_v23  ;;  %v4522_v52 = vld [vmem:[%s6235_s1 + $0x484] ss:$8 sps:$4 sm:$0xff]  }
  0xf9   : > { %3172 = vmatprep.subr.bf16.mxu0 %v4447_v24  ;;  %v4525_v23 = vld [vmem:[%s6235_s1 + $0xa84] ss:$8 sps:$4 sm:$0xff]   ;;  %v4520_v24 = vld [vmem:[%s6235_s1 + $0x480] ss:$8 sps:$4 sm:$0xff]  }
  0xfb   : > { %2927 = vmatpush1.bf16.msra.mxu1 %v4442_v25  ;;  %v4523_v25 = vld [vmem:[%s6235_s1 + $0xa80] ss:$8 sps:$4 sm:$0xff]  }
  0xfc   : > { %3173 = vmatpush1.bf16.msra.mxu0 %v4445_v26  ;;  %2928 = vmatprep.subr.bf16.mxu1 %v4450_v27  ;;  %v4528_v26 = vld [vmem:[%s6235_s1 + $0x494] ss:$8 sps:$4 sm:$0xff]  }
  0xfd   : > { %3174 = vmatprep.subr.bf16.mxu0 %v4453_v28  ;;  %v4531_v27 = vld [vmem:[%s6235_s1 + $0xa94] ss:$8 sps:$4 sm:$0xff]   ;;  %v4526_v28 = vld [vmem:[%s6235_s1 + $0x490] ss:$8 sps:$4 sm:$0xff]  }
  0xff   : > { %2929 = vmatpush1.bf16.msra.mxu1 %v4448_v29  ;;  %v4529_v29 = vld [vmem:[%s6235_s1 + $0xa90] ss:$8 sps:$4 sm:$0xff]  }
 0x100   : > { %3175 = vmatpush1.bf16.msra.mxu0 %v4451_v30  ;;  %2930 = vmatprep.subr.bf16.mxu1 %v4456_v31  ;;  %v4534_v30 = vld [vmem:[%s6235_s1 + $0x4a4] ss:$8 sps:$4 sm:$0xff]  }
 0x101   : > { %3176 = vmatprep.subr.bf16.mxu0 %v4459_v32  ;;  %v4537_v31 = vld [vmem:[%s6235_s1 + $0xaa4] ss:$8 sps:$4 sm:$0xff]   ;;  %v4532_v32 = vld [vmem:[%s6235_s1 + $0x4a0] ss:$8 sps:$4 sm:$0xff]  }
 0x103   : > { %2931 = vmatpush1.bf16.msra.mxu1 %v4454_v17  ;;  %v4535_v17 = vld [vmem:[%s6235_s1 + $0xaa0] ss:$8 sps:$4 sm:$0xff]  }
 0x104   : > { %3177 = vmatpush1.bf16.msra.mxu0 %v4457_v34  ;;  %2932 = vmatprep.subr.bf16.mxu1 %v4462_v36  ;;  %v4540_v34 = vld [vmem:[%s6235_s1 + $0x4b4] ss:$8 sps:$4 sm:$0xff]  }
 0x105   : > { %3178 = vmatprep.subr.bf16.mxu0 %v4465_v37  ;;  %v4543_v36 = vld [vmem:[%s6235_s1 + $0xab4] ss:$8 sps:$4 sm:$0xff]   ;;  %v4538_v37 = vld [vmem:[%s6235_s1 + $0x4b0] ss:$8 sps:$4 sm:$0xff]  }
 0x107   : > { %2933 = vmatpush1.bf16.msra.mxu1 %v4460_v39  ;;  %v4546_v39 = vld [vmem:[%s6235_s1 + $0x4c4] ss:$8 sps:$4 sm:$0xff]  }
 0x108   : > { %3179 = vmatpush1.bf16.msra.mxu0 %v4463_v44  ;;  %2934 = vmatprep.subr.bf16.mxu1 %v4468_v45  ;;  %v4549_v44 = vld [vmem:[%s6235_s1 + $0xac4] ss:$8 sps:$4 sm:$0xff]   ;;  %v4544_v45 = vld [vmem:[%s6235_s1 + $0x4c0] ss:$8 sps:$4 sm:$0xff]  }
 0x109   : > { %3180 = vmatprep.subr.bf16.mxu0 %v4471_v33  ;;  %v4547_v33 = vld [vmem:[%s6235_s1 + $0xac0] ss:$8 sps:$4 sm:$0xff]  }
 0x10b   : > { %2935 = vmatpush1.bf16.msra.mxu1 %v4466_v46  ;;  %v4552_v46 = vld [vmem:[%s6235_s1 + $0x4d4] ss:$8 sps:$4 sm:$0xff]  }
 0x10c   : > { %3181 = vmatpush1.bf16.msra.mxu0 %v4469_v47  ;;  %2945 = vmatprep.subr.bf16.mxu1 %v4474_v48  ;;  %v4555_v47 = vld [vmem:[%s6235_s1 + $0xad4] ss:$8 sps:$4 sm:$0xff]   ;;  %v4550_v48 = vld [vmem:[%s6235_s1 + $0x4d0] ss:$8 sps:$4 sm:$0xff]  }
 0x10d   : > { %3191 = vmatprep.subr.bf16.mxu0 %v4477_v18  ;;  %v4553_v18 = vld [vmem:[%s6235_s1 + $0xad0] ss:$8 sps:$4 sm:$0xff]  }
 0x10e   : > { %2937 = vmatmul.mubr.bf16.vlgmr.msra.gmra.mrb[0].mxu1 %v667_v53  ;;  %v4559_v53 = vld [vmem:[%s6235_s1 + $0xae0] ss:$8 sps:$4 sm:$0xff]  }
 0x10f   : > { %3183 = vmatmul.mubr.bf16.vlgmr.msra.gmra.mrb[0].mxu0 %v764_v54  ;;  %2946 = vmatpush1.bf16.msra.mxu1 %v4472_v51  ;;  %v4556_v51 = vld [vmem:[%s6235_s1 + $0x4e0] ss:$8 sps:$4 sm:$0xff]   ;;  %v4564_v54 = vld [vmem:[%s6235_s1 + $0x4f4] ss:$8 sps:$4 sm:$0xff]  }
 0x110   : > { %3192 = vmatpush1.bf16.msra.mxu0 %v4475_v55  ;;  %2947 = vmatprep.subr.bf16.mxu1 %v4480_v56  ;;  %v4567_v55 = vld [vmem:[%s6235_s1 + $0xaf4] ss:$8 sps:$4 sm:$0xff]   ;;  %v4562_v56 = vld [vmem:[%s6235_s1 + $0x4f0] ss:$8 sps:$4 sm:$0xff]  }
 0x111   : > { %3193 = vmatprep.subr.bf16.mxu0 %v4483_v57  ;;  %2977 = vmatprep.mubr.bf16.mxu1 %v5720_v58  ;;  %v4565_v57 = vld [vmem:[%s6235_s1 + $0xaf0] ss:$8 sps:$4 sm:$0xff]  }
 0x112   : > { %3223 = vmatprep.mubr.bf16.mxu0 %v5723_v59 }
 0x113   : > { %2948 = vmatpush1.bf16.msra.mxu1 %v4478_v40  ;;  %v4570_v40 = vld [vmem:[%s6235_s1 + $0x504] ss:$8 sps:$4 sm:$0xff]  }
 0x114   : > { %3194 = vmatpush1.bf16.msra.mxu0 %v4481_v42  ;;  %2949 = vmatprep.subr.bf16.mxu1 %v4486_v60  ;;  %v4574_v42 = vld [vmem:[%s6235_s1 + $0xb04] ss:$8 sps:$4 sm:$0xff]   ;;  %v5903_v60 = vrot.slane %v5676_v22, %v4977_v49  ;;  %v4577_v22 = vld [vmem:[%s6235_s1 + $0x514] ss:$8 sps:$4 sm:$0xff]  }
 0x115   : > { %3195 = vmatprep.subr.bf16.mxu0 %v4489_v61  ;;  %v5907_v61 = vrot.slane %v5679_v35, %v4977_v49  ;;  %v4580_v35 = vld [vmem:[%s6235_s1 + $0xb14] ss:$8 sps:$4 sm:$0xff]  }
 0x117   : > { %2950 = vmatpush1.bf16.msra.mxu1 %v4484_v62  ;;  %v4568_v62 = vld [vmem:[%s6235_s1 + $0x500] ss:$8 sps:$4 sm:$0xff]  }
 0x118   : > { %3196 = vmatpush1.bf16.msra.mxu0 %v4487_v63  ;;  %2951 = vmatprep.subr.bf16.mxu1 %v4492_v0  ;;  %v4572_v63 = vld [vmem:[%s6235_s1 + $0xb00] ss:$8 sps:$4 sm:$0xff]   ;;  %v717_v0 = vcombine.high %v5720_v58, %v5720_v58  ;;  %v4583_v58 = vld [vmem:[%s6235_s1 + $0x524] ss:$8 sps:$4 sm:$0xff]  }
 0x119   : > { %3197 = vmatprep.subr.bf16.mxu0 %v4495_v1  ;;  %v767_v1 = vcombine.high %v5723_v59, %v5723_v59  ;;  %v4586_v59 = vld [vmem:[%s6235_s1 + $0xb24] ss:$8 sps:$4 sm:$0xff]  }
 0x11b   : > { %2952 = vmatpush1.bf16.msra.mxu1 %v4490_v2  ;;  %v4575_v2 = vld [vmem:[%s6235_s1 + $0x510] ss:$8 sps:$4 sm:$0xff]  }
 0x11c   : > { %3198 = vmatpush1.bf16.msra.mxu0 %v4493_v3  ;;  %2953 = vmatprep.subr.bf16.mxu1 %v4498_v4  ;;  %v4578_v3 = vld [vmem:[%s6235_s1 + $0xb10] ss:$8 sps:$4 sm:$0xff]   ;;  %v4581_v4 = vld [vmem:[%s6235_s1 + $0x520] ss:$8 sps:$4 sm:$0xff]  }
 0x11d   : > { %3199 = vmatprep.subr.bf16.mxu0 %v4501_v5  ;;  %v4584_v5 = vld [vmem:[%s6235_s1 + $0xb20] ss:$8 sps:$4 sm:$0xff]  }
 0x11f   : > { %2954 = vmatpush1.bf16.msra.mxu1 %v4496_v6  ;;  %v4589_v6 = vld [vmem:[%s6235_s1 + $0x534] ss:$8 sps:$4 sm:$0xff]  }
 0x120   : > { %3200 = vmatpush1.bf16.msra.mxu0 %v4499_v7  ;;  %2955 = vmatprep.subr.bf16.mxu1 %v4504_v8  ;;  %v4592_v7 = vld [vmem:[%s6235_s1 + $0xb34] ss:$8 sps:$4 sm:$0xff]   ;;  %v4587_v8 = vld [vmem:[%s6235_s1 + $0x530] ss:$8 sps:$4 sm:$0xff]  }
 0x121   : > { %3201 = vmatprep.subr.bf16.mxu0 %v4507_v9  ;;  %v4590_v9 = vld [vmem:[%s6235_s1 + $0xb30] ss:$8 sps:$4 sm:$0xff]  }
 0x123   : > { %2956 = vmatpush1.bf16.msra.mxu1 %v4502_v10  ;;  %v4595_v10 = vld [vmem:[%s6235_s1 + $0x544] ss:$8 sps:$4 sm:$0xff]  }
 0x124   : > { %3202 = vmatpush1.bf16.msra.mxu0 %v4505_v11  ;;  %2957 = vmatprep.subr.bf16.mxu1 %v4510_v12  ;;  %v4598_v11 = vld [vmem:[%s6235_s1 + $0xb44] ss:$8 sps:$4 sm:$0xff]   ;;  %v4593_v12 = vld [vmem:[%s6235_s1 + $0x540] ss:$8 sps:$4 sm:$0xff]  }
 0x125   : > { %3203 = vmatprep.subr.bf16.mxu0 %v4513_v13  ;;  %v4596_v13 = vld [vmem:[%s6235_s1 + $0xb40] ss:$8 sps:$4 sm:$0xff]  }
 0x127   : > { %2958 = vmatpush1.bf16.msra.mxu1 %v4508_v14  ;;  %v4601_v14 = vld [vmem:[%s6235_s1 + $0x554] ss:$8 sps:$4 sm:$0xff]  }
 0x128   : > { %3204 = vmatpush1.bf16.msra.mxu0 %v4511_v15  ;;  %2959 = vmatprep.subr.bf16.mxu1 %v4516_v16  ;;  %v4604_v15 = vld [vmem:[%s6235_s1 + $0xb54] ss:$8 sps:$4 sm:$0xff]   ;;  %v4599_v16 = vld [vmem:[%s6235_s1 + $0x550] ss:$8 sps:$4 sm:$0xff]  }
 0x129   : > { %3205 = vmatprep.subr.bf16.mxu0 %v4519_v19  ;;  %v4602_v19 = vld [vmem:[%s6235_s1 + $0xb50] ss:$8 sps:$4 sm:$0xff]  }
 0x12b   : > { %2960 = vmatpush1.bf16.msra.mxu1 %v4514_v20  ;;  %v4607_v20 = vld [vmem:[%s6235_s1 + $0x564] ss:$8 sps:$4 sm:$0xff]  }
 0x12c   : > { %3206 = vmatpush1.bf16.msra.mxu0 %v4517_v21  ;;  %2961 = vmatprep.subr.bf16.mxu1 %v4522_v52  ;;  %v4610_v21 = vld [vmem:[%s6235_s1 + $0xb64] ss:$8 sps:$4 sm:$0xff]   ;;  %v4605_v52 = vld [vmem:[%s6235_s1 + $0x560] ss:$8 sps:$4 sm:$0xff]  }
 0x12d   : > { %3207 = vmatprep.subr.bf16.mxu0 %v4525_v23  ;;  %v4608_v23 = vld [vmem:[%s6235_s1 + $0xb60] ss:$8 sps:$4 sm:$0xff]  }
 0x12f   : > { %2962 = vmatpush1.bf16.msra.mxu1 %v4520_v24  ;;  %v4613_v24 = vld [vmem:[%s6235_s1 + $0x574] ss:$8 sps:$4 sm:$0xff]  }
 0x130   : > { %3208 = vmatpush1.bf16.msra.mxu0 %v4523_v25  ;;  %2963 = vmatprep.subr.bf16.mxu1 %v4528_v26  ;;  %v4616_v25 = vld [vmem:[%s6235_s1 + $0xb74] ss:$8 sps:$4 sm:$0xff]   ;;  %v4611_v26 = vld [vmem:[%s6235_s1 + $0x570] ss:$8 sps:$4 sm:$0xff]  }
 0x131   : > { %3209 = vmatprep.subr.bf16.mxu0 %v4531_v27  ;;  %v4614_v27 = vld [vmem:[%s6235_s1 + $0xb70] ss:$8 sps:$4 sm:$0xff]  }
 0x133   : > { %2964 = vmatpush1.bf16.msra.mxu1 %v4526_v28  ;;  %v4619_v28 = vld [vmem:[%s6235_s1 + $0x584] ss:$8 sps:$4 sm:$0xff]  }
 0x134   : > { %3210 = vmatpush1.bf16.msra.mxu0 %v4529_v29  ;;  %2965 = vmatprep.subr.bf16.mxu1 %v4534_v30  ;;  %v4622_v29 = vld [vmem:[%s6235_s1 + $0xb84] ss:$8 sps:$4 sm:$0xff]   ;;  %v4617_v30 = vld [vmem:[%s6235_s1 + $0x580] ss:$8 sps:$4 sm:$0xff]  }
 0x135   : > { %3211 = vmatprep.subr.bf16.mxu0 %v4537_v31  ;;  %v4620_v31 = vld [vmem:[%s6235_s1 + $0xb80] ss:$8 sps:$4 sm:$0xff]  }
 0x137   : > { %2966 = vmatpush1.bf16.msra.mxu1 %v4532_v32  ;;  %v4625_v32 = vld [vmem:[%s6235_s1 + $0x594] ss:$8 sps:$4 sm:$0xff]  }
 0x138   : > { %3212 = vmatpush1.bf16.msra.mxu0 %v4535_v17  ;;  %2967 = vmatprep.subr.bf16.mxu1 %v4540_v34  ;;  %v4628_v17 = vld [vmem:[%s6235_s1 + $0xb94] ss:$8 sps:$4 sm:$0xff]   ;;  %v4623_v34 = vld [vmem:[%s6235_s1 + $0x590] ss:$8 sps:$4 sm:$0xff]  }
 0x139   : > { %3213 = vmatprep.subr.bf16.mxu0 %v4543_v36  ;;  %v4626_v36 = vld [vmem:[%s6235_s1 + $0xb90] ss:$8 sps:$4 sm:$0xff]  }
 0x13b   : > { %2968 = vmatpush1.bf16.msra.mxu1 %v4538_v37  ;;  %v4631_v37 = vld [vmem:[%s6235_s1 + $0x5a4] ss:$8 sps:$4 sm:$0xff]  }
 0x13c   : > { %3214 = vmatpush1.bf16.msra.mxu0 %v4541_v38  ;;  %2969 = vmatprep.subr.bf16.mxu1 %v4546_v39  ;;  %v4634_v38 = vld [vmem:[%s6235_s1 + $0xba4] ss:$8 sps:$4 sm:$0xff]   ;;  %v4629_v39 = vld [vmem:[%s6235_s1 + $0x5a0] ss:$8 sps:$4 sm:$0xff]  }
 0x13d   : > { %3215 = vmatprep.subr.bf16.mxu0 %v4549_v44  ;;  %v4632_v44 = vld [vmem:[%s6235_s1 + $0xba0] ss:$8 sps:$4 sm:$0xff]  }
 0x13f   : > { %2970 = vmatpush1.bf16.msra.mxu1 %v4544_v45  ;;  %v4637_v45 = vld [vmem:[%s6235_s1 + $0x5b4] ss:$8 sps:$4 sm:$0xff]  }
 0x140   : > { %3216 = vmatpush1.bf16.msra.mxu0 %v4547_v33  ;;  %2971 = vmatprep.subr.bf16.mxu1 %v4552_v46  ;;  %v4640_v33 = vld [vmem:[%s6235_s1 + $0xbb4] ss:$8 sps:$4 sm:$0xff]   ;;  %v4635_v46 = vld [vmem:[%s6235_s1 + $0x5b0] ss:$8 sps:$4 sm:$0xff]  }
 0x141   : > { %3217 = vmatprep.subr.bf16.mxu0 %v4555_v47  ;;  %v4638_v47 = vld [vmem:[%s6235_s1 + $0xbb0] ss:$8 sps:$4 sm:$0xff]  }
 0x143   : > { %2972 = vmatpush1.bf16.msra.mxu1 %v4550_v48  ;;  %v4643_v48 = vld [vmem:[%s6235_s1 + $0x5c4] ss:$8 sps:$4 sm:$0xff]  }
 0x144   : > { %3218 = vmatpush1.bf16.msra.mxu0 %v4553_v18  ;;  %2973 = vmatprep.subr.bf16.mxu1 %v4558_v41  ;;  %v4646_v18 = vld [vmem:[%s6235_s1 + $0xbc4] ss:$8 sps:$4 sm:$0xff]   ;;  %v4641_v41 = vld [vmem:[%s6235_s1 + $0x5c0] ss:$8 sps:$4 sm:$0xff]  }
 0x145   : > { %3219 = vmatprep.subr.bf16.mxu0 %v4561_v50  ;;  %v4644_v50 = vld [vmem:[%s6235_s1 + $0xbc0] ss:$8 sps:$4 sm:$0xff]  }
 0x147   : > { %2974 = vmatpush1.bf16.msra.mxu1 %v4556_v51  ;;  %v4649_v51 = vld [vmem:[%s6235_s1 + $0x5d4] ss:$8 sps:$4 sm:$0xff]  }
 0x148   : > { %3220 = vmatpush1.bf16.msra.mxu0 %v4559_v53  ;;  %2975 = vmatprep.subr.bf16.mxu1 %v4564_v54  ;;  %v4652_v53 = vld [vmem:[%s6235_s1 + $0xbd4] ss:$8 sps:$4 sm:$0xff]   ;;  %v4647_v54 = vld [vmem:[%s6235_s1 + $0x5d0] ss:$8 sps:$4 sm:$0xff]  }
 0x149   : > { %3221 = vmatprep.subr.bf16.mxu0 %v4567_v55  ;;  %v4650_v55 = vld [vmem:[%s6235_s1 + $0xbd0] ss:$8 sps:$4 sm:$0xff]  }
 0x14b   : > { %2976 = vmatpush1.bf16.msra.mxu1 %v4562_v56  ;;  %v4655_v56 = vld [vmem:[%s6235_s1 + $0x5e4] ss:$8 sps:$4 sm:$0xff]  }
 0x14c   : > { %3222 = vmatpush1.bf16.msra.mxu0 %v4565_v57  ;;  %2986 = vmatprep.subr.bf16.mxu1 %v4570_v40  ;;  %v4658_v57 = vld [vmem:[%s6235_s1 + $0xbe4] ss:$8 sps:$4 sm:$0xff]   ;;  %v4653_v40 = vld [vmem:[%s6235_s1 + $0x5e0] ss:$8 sps:$4 sm:$0xff]  }
 0x14d   : > { %3232 = vmatprep.subr.bf16.mxu0 %v4574_v42  ;;  %v4656_v42 = vld [vmem:[%s6235_s1 + $0xbe0] ss:$8 sps:$4 sm:$0xff]  }
 0x14e   : > { %2978 = vmatmul.mubr.bf16.vlgmr.msra.gmra.mrb[0].mxu1 %v5903_v60 }
 0x14f   : > { %3224 = vmatmul.mubr.bf16.vlgmr.msra.gmra.mrb[0].mxu0 %v5907_v61  ;;  %2987 = vmatpush1.bf16.msra.mxu1 %v4568_v62  ;;  %v4661_v62 = vld [vmem:[%s6235_s1 + $0x5f4] ss:$8 sps:$4 sm:$0xff]  }
 0x150   : > { %3233 = vmatpush1.bf16.msra.mxu0 %v4572_v63  ;;  %2988 = vmatprep.subr.bf16.mxu1 %v4577_v22  ;;  %v4664_v63 = vld [vmem:[%s6235_s1 + $0xbf4] ss:$8 sps:$4 sm:$0xff]   ;;  %v4659_v22 = vld [vmem:[%s6235_s1 + $0x5f0] ss:$8 sps:$4 sm:$0xff]  }
 0x151   : > { %3234 = vmatprep.subr.bf16.mxu0 %v4580_v35  ;;  %3018 = vmatprep.mubr.bf16.mxu1 %v717_v0  ;;  %v4662_v35 = vld [vmem:[%s6235_s1 + $0xbf0] ss:$8 sps:$4 sm:$0xff]   ;;  %v4667_v0 = vld [vmem:[%s6235_s1 + $0xc04] ss:$8 sps:$4 sm:$0xff]  }
 0x152   : > { %3264 = vmatprep.mubr.bf16.mxu0 %v767_v1  ;;  %v4677_v1 = vld [vmem:[%s6237_s3 + $0x40] sm:$0xff]  }
 0x153   : > { %2989 = vmatpush1.bf16.msra.mxu1 %v4575_v2  ;;  %v715_v2 = vcombine.high %v5903_v60, %v5903_v60  ;;  %v4679_v60 = vld [vmem:[%s6237_s3 + $0x48] sm:$0xff]  }
 0x154   : > { %3235 = vmatpush1.bf16.msra.mxu0 %v4578_v3  ;;  %2990 = vmatprep.subr.bf16.mxu1 %v4583_v58  ;;  %v765_v3 = vcombine.high %v5907_v61, %v5907_v61  ;;  %v4665_v58 = vld [vmem:[%s6235_s1 + $0xc00] ss:$8 sps:$4 sm:$0xff]   ;;  %v4668_v61 = vld [vmem:[%s6235_s1 + $0xc10] ss:$8 sps:$4 sm:$0xff]  }
 0x155   : > { %3236 = vmatprep.subr.bf16.mxu0 %v4586_v59  ;;  %v4670_v59 = vld [vmem:[%s6235_s1 + $0xc14] ss:$8 sps:$4 sm:$0xff]  }
 0x157   : > { %2991 = vmatpush1.bf16.msra.mxu1 %v4581_v4  ;;  %v4678_v4 = vld [vmem:[%s6237_s3] sm:$0xff]  }
 0x158   : > { %3237 = vmatpush1.bf16.msra.mxu0 %v4584_v5  ;;  %2992 = vmatprep.subr.bf16.mxu1 %v4589_v6  ;;  %v4760_v5 = vmov 0   ;;  %v4673_v6 = vld [vmem:[%s6235_s1 + $0xc24] ss:$8 sps:$4 sm:$0xff]  }
 0x159   : > { %3238 = vmatprep.subr.bf16.mxu0 %v4592_v7  ;;  %v4680_v7 = vld [vmem:[%s6237_s3 + $0x8] sm:$0xff]  }
 0x15b   : > { %2993 = vmatpush1.bf16.msra.mxu1 %v4587_v8  ;;  %v4671_v8 = vld [vmem:[%s6235_s1 + $0xc20] ss:$8 sps:$4 sm:$0xff]  }
 0x15c   : > { %3239 = vmatpush1.bf16.msra.mxu0 %v4590_v9  ;;  %2994 = vmatprep.subr.bf16.mxu1 %v4595_v10  ;;  %v4676_v9 = vld [vmem:[%s6235_s1 + $0xc34] ss:$8 sps:$4 sm:$0xff]   ;;  %v4674_v10 = vld [vmem:[%s6235_s1 + $0xc30] ss:$8 sps:$4 sm:$0xff]  }
 0x15d   : > { %3240 = vmatprep.subr.bf16.mxu0 %v4598_v11  ;;  %v3561_v11 = vld.sshfl [vmem:[%s4988_s30 + $0x18] sm:$0x1 pattern:$0x75316420]  ;;  %s4701_s30 = scalar_lea.vmem %s4700_s6, 32 }
 0x15e   : > { %p4703_p1 = scmp.lt.s32.totalorder %s4701_s30, %s4695_s22 }
 0x15f   : > { %2995 = vmatpush1.bf16.msra.mxu1 %v4593_v12  ;;  %v781_v12 = vrot.slane %v3561_v11, %v4977_v49  ;;  %v4684_v49 = vld [vmem:[%s6237_s3 + $0x18] sm:$0xff]  }
 0x160   : > { %3241 = vmatpush1.bf16.msra.mxu0 %v4596_v13  ;;  %2996 = vmatprep.subr.bf16.mxu1 %v4601_v14  ;;  %v4681_v13 = vld [vmem:[%s6237_s3 + $0x50] sm:$0xff]   ;;  %p4704_p2 = por %p4703_p1, %p4702_p0 }
 0x161   : > { %3242 = vmatprep.subr.bf16.mxu0 %v4604_v15  ;;  %v4682_v14 = vld [vmem:[%s6237_s3 + $0x10] sm:$0xff]   ;;  %v4683_v15 = vld [vmem:[%s6237_s3 + $0x58] sm:$0xff]  }
 0x162   : > { %p4705_p3 = pnand %p4704_p2, %p4698_p13 }
 0x163   : > { %2997 = vmatpush1.bf16.msra.mxu1 %v4599_v16  ;;  %v4685_v16 = vld [vmem:[%s6237_s3 + $0x60] sm:$0xff]  }
 0x164   : > { %3243 = vmatpush1.bf16.msra.mxu0 %v4602_v19  ;;  %2998 = vmatprep.subr.bf16.mxu1 %v4607_v20  ;;  %v4686_v19 = vld [vmem:[%s6237_s3 + $0x20] sm:$0xff]   ;;  %v4687_v20 = vld [vmem:[%s6237_s3 + $0x68] sm:$0xff]  }
 0x165   : > { %3244 = vmatprep.subr.bf16.mxu0 %v4610_v21  ;;  %v4688_v21 = vld [vmem:[%s6237_s3 + $0x28] sm:$0xff]  }
 0x167   : > { %2999 = vmatpush1.bf16.msra.mxu1 %v4605_v52  ;;  %v4689_v52 = vld [vmem:[%s6237_s3 + $0x70] sm:$0xff]  }
 0x168   : > { %3245 = vmatpush1.bf16.msra.mxu0 %v4608_v23  ;;  %3000 = vmatprep.subr.bf16.mxu1 %v4613_v24  ;;  %v4690_v23 = vld [vmem:[%s6237_s3 + $0x30] sm:$0xff]   ;;  %v4691_v24 = vld [vmem:[%s6237_s3 + $0x78] sm:$0xff]  }
 0x169   : > { %3246 = vmatprep.subr.bf16.mxu0 %v4616_v25  ;;  %v4692_v25 = vld [vmem:[%s6237_s3 + $0x38] sm:$0xff]  }
 0x16b   : > { %3001 = vmatpush1.bf16.msra.mxu1 %v4611_v26 }
 0x16c   : > { %3247 = vmatpush1.bf16.msra.mxu0 %v4614_v27  ;;  %3002 = vmatprep.subr.bf16.mxu1 %v4619_v28 }
 0x16d   : > { %3248 = vmatprep.subr.bf16.mxu0 %v4622_v29 }
 0x16f   : > { %3003 = vmatpush1.bf16.msra.mxu1 %v4617_v30  ;;  %v2769_v30 = vsub.s32 0, %v4959_v43 }
 0x170   : > { %3249 = vmatpush1.bf16.msra.mxu0 %v4620_v31  ;;  %3004 = vmatprep.subr.bf16.mxu1 %v4625_v32  ;;  %v616_v31 = vld [vmem:[%s6236_s2] sm:$0x3]  ;;  %v2773_v32 = vsub.s32 1, %v4959_v43 }
 0x171   : > { %3250 = vmatprep.subr.bf16.mxu0 %v4628_v17  ;;  %v2770_v17 = vrot.slane %v616_v31, %v2769_v30 }
 0x173   : > { %3005 = vmatpush1.bf16.msra.mxu1 %v4623_v34  ;;  %v2774_v34 = vrot.slane %v616_v31, %v2773_v32 }
 0x174   : > { %3251 = vmatpush1.bf16.msra.mxu0 %v4626_v36  ;;  %3006 = vmatprep.subr.bf16.mxu1 %v4631_v37 }
 0x175   : > { %3252 = vmatprep.subr.bf16.mxu0 %v4634_v38 }
 0x177   : > { %3007 = vmatpush1.bf16.msra.mxu1 %v4629_v39 }
 0x178   : > { %3253 = vmatpush1.bf16.msra.mxu0 %v4632_v44  ;;  %3008 = vmatprep.subr.bf16.mxu1 %v4637_v45 }
 0x179   : > { %3254 = vmatprep.subr.bf16.mxu0 %v4640_v33 }
 0x17b   : > { %3009 = vmatpush1.bf16.msra.mxu1 %v4635_v46 }
 0x17c   : > { %3255 = vmatpush1.bf16.msra.mxu0 %v4638_v47  ;;  %3010 = vmatprep.subr.bf16.mxu1 %v4643_v48 }
 0x17d   : > { %3256 = vmatprep.subr.bf16.mxu0 %v4646_v18 }
 0x17f   : > { %3011 = vmatpush1.bf16.msra.mxu1 %v4641_v41 }
 0x180   : > { %3257 = vmatpush1.bf16.msra.mxu0 %v4644_v50  ;;  %3012 = vmatprep.subr.bf16.mxu1 %v4649_v51  ;;  %v3350_v50 = vld [vmem:[%s6238_s4] sm:$0x1] }
 0x181   : > { %3258 = vmatprep.subr.bf16.mxu0 %v4652_v53 }
 0x183   : > { %3013 = vmatpush1.bf16.msra.mxu1 %v4647_v54 }
 0x184   : > { %3259 = vmatpush1.bf16.msra.mxu0 %v4650_v55  ;;  %3014 = vmatprep.subr.bf16.mxu1 %v4655_v56 }
 0x185   : > { %3260 = vmatprep.subr.bf16.mxu0 %v4658_v57 }
 0x187   : > { %3015 = vmatpush1.bf16.msra.mxu1 %v4653_v40 }
 0x188   : > { %3261 = vmatpush1.bf16.msra.mxu0 %v4656_v42  ;;  %3016 = vmatprep.subr.bf16.mxu1 %v4661_v62 }
 0x189   : > { %3262 = vmatprep.subr.bf16.mxu0 %v4664_v63 }
 0x18b   : > { %3017 = vmatpush1.bf16.msra.mxu1 %v4659_v22 }
 0x18c   : > { %3263 = vmatpush1.bf16.msra.mxu0 %v4662_v35  ;;  %3974 = vmatprep.subr.bf16.mxu1 %v4677_v1 }
 0x18d   : > { %3273 = vmatprep.subr.bf16.mxu0 %v4667_v0 }
 0x18e   : > { %3019 = vmatmul.mubr.bf16.vlgmr.msra.gmra.mrb[0].mxu1 %v715_v2 }
 0x18f   : > { %3265 = vmatmul.mubr.bf16.vlgmr.msra.gmra.mrb[0].mxu0 %v765_v3  ;;  %3975 = vmatpush3.bf16.msra.mxu1 %v4678_v4 }
 0x190   : > { %3274 = vmatpush1.bf16.msra.mxu0 %v4665_v58  ;;  %3305 = vmatprep.mubr.bf16.mxu0 %v4760_v5 }
 0x191   : > { %3275 = vmatprep.subr.bf16.mxu0 %v4670_v59  ;;  %3976 = vmatprep.subr.bf16.mxu1 %v4679_v60 }
 0x193   : > { %3977 = vmatpush3.bf16.msra.mxu1 %v4680_v7 }
 0x194   : > { %3276 = vmatpush1.bf16.msra.mxu0 %v4668_v61  ;;  %3978 = vmatprep.subr.bf16.mxu1 %v4681_v13 }
 0x195   : > { %3277 = vmatprep.subr.bf16.mxu0 %v4673_v6 }
 0x197   : > { %3979 = vmatpush3.bf16.msra.mxu1 %v4682_v14 }
 0x198   : > { %3278 = vmatpush1.bf16.msra.mxu0 %v4671_v8  ;;  %3980 = vmatprep.subr.bf16.mxu1 %v4683_v15 }
 0x199   : > { %3279 = vmatprep.subr.bf16.mxu0 %v4676_v9 }
 0x19b   : > { %3981 = vmatpush3.bf16.msra.mxu1 %v4684_v49 }
 0x19c   : > { %3280 = vmatpush1.bf16.msra.mxu0 %v4674_v10  ;;  %3982 = vmatprep.subr.bf16.mxu1 %v4685_v16 }
 0x19f   : > { %3954 = vmatmul.mubr.msk.bf16.vlgmr.msra.gmra.mrb[0].mxu0 %vm2777_vm0, %v781_v12  ;;  %3983 = vmatpush3.bf16.msra.mxu1 %v4686_v19 }
 0x1a0   : > { %3984 = vmatprep.subr.bf16.mxu1 %v4687_v20 }
 0x1a3   : > { %3985 = vmatpush3.bf16.msra.mxu1 %v4688_v21 }
 0x1a4   : > { %3986 = vmatprep.subr.bf16.mxu1 %v4689_v52 }
 0x1a7   : > { %3987 = vmatpush3.bf16.msra.mxu1 %v4690_v23 }
 0x1a8   : > { %3988 = vmatprep.subr.bf16.mxu1 %v4691_v24 }
 0x1ab   : > { %3989 = vmatpush3.bf16.msra.mxu1 %v4692_v25 }
 0x261   : > { %v3020_v26 = vpop.f32.mrb[0].mxu1 }
 0x262   : > { %v3022_v27 = vpop.f32.mrb[1].mxu1  ;;  %v3996_v36 = vadd.f32 %v3020_v26, %v2770_v17 }
 0x263   : > { %v3024_v28 = vpop.f32.mrb[2].mxu1  ;;  %v3998_v37 = vadd.f32 %v3022_v27, %v2774_v34 }
 0x264   : > { %v3025_v29 = vpop.f32.mrb[3].mxu1 }
 0x272   : > { %v3307_v38 = vpop.f32.mrb[0].mxu0 }
 0x273   : > { %v3997_v39 = vadd.f32 %v3996_v36, %v3307_v38  ;;  %v3309_v44 = vpop.f32.mrb[1].mxu0 }
 0x274   : > { %v3999_v45 = vadd.f32 %v3998_v37, %v3309_v44  ;;  %v3311_v33 = vpop.f32.mrb[2].mxu0 }
 0x275   : > { %v3314_v46 = vmax.f32 %v3997_v39, 0.0  ;;  %v3312_v47 = vpop.f32.mrb[3].mxu0 }
 0x276   : > { %v3315_v48 = vmax.f32 %v3999_v45, 0.0 }
 0x277   : > { %v3316_v41 = vpack.c.bf16 %v3314_v46, %v3314_v46 }
 0x278   : > { %v3317_v18 = vpack.c.bf16 %v3315_v48, %v3315_v48 }
 0x27a   : > { %3479 = vmatprep.mubr.bf16.mxu1 %v3317_v18 }
 0x27b   : > { %3480 = vmatmul.mubr.bf16.vlgmr.msra.gmra.mrb[4].mxu1 %v3316_v41 }
 0x34e   : > { %v3990_v43 = vpop.f32.mrb[4].mxu1 }
 0x34f   : > { %v3991_v51 = vpop.f32.mrb[5].mxu1 }
 0x350   : > { %v3992_v53 = vadd.f32 %v3991_v51, %v3990_v43  ;;  %v3993_v54 = vpop.f32.mrb[6].mxu1 }
 0x351   : > { %v3994_v55 = vpop.f32.mrb[7].mxu1 }
 0x352   : > { %v3482_v56 = vadd.f32 %v3992_v53, %v3350_v50 }
 0x354   : > { %3488 = vst.msk [vmem:[%s214_s14] sm:$0x1] %vm3487_vm1, %v3482_v56 }
 0x355   : > { %4708 = shalt.err (!%p4705_p3)
}
 0x356   : > { %s4709_s7 = scalar_lea.hbm %s6192_s23, 16  ;;  %s4713_s10 = scalar_lea.hbm %s6239_s5, 32 }
 0x357   : > { %p4710_p4 = scmp.ne.s32.totalorder %s6192_s23, %s4709_s7  ;;  %p4714_p9 = scmp.lt.u32.totalorder %s6192_s23, %s6239_s5 }
 0x358   : > { %p4715_p10 = scmp.lt.u32.totalorder %s4713_s10, %s4709_s7  ;;  %p4717_p12 = scmp.lt.u32.totalorder %s4709_s7, %s6192_s23 }
 0x359   : > { %p4711_p7 = pnand %p4710_p4, %p4830_p5 }
 0x35a   : > { %p4716_p11 = por %p4715_p10, %p4714_p9 }
 0x35b   : > { %p4712_p8 = pneg %p4711_p7 }
 0x35c   : > { %p4718_p13 = por %p4717_p12, %p4716_p11 }
 0x35e   : > { %p4719_p0 = pnand %p4718_p13, %p4712_p8 }
 0x360   : > { %4722 = shalt.err (!%p4719_p0)
}
 0x361   : > { %4045 = dma.vmem_to_hbm [thread:$0]  (%p4830_p5), %s6194_s15, 16, %s6192_s23, %s3490_s25  }
 0x362 PF: > { %p4051_p1 = scmp.ge.s32.totalorder %s4757_s21, 2  ;;  %s3514_s13 = sand.u32 1, %s4745_s18  }
 0x363   : > { %s3515_s14 = scalar_lea.sflag [#allocation3], %s3514_s13 }
 0x364   : > { %p4048_p2 = pnand %p4051_p1, %p4834_p6 }
 0x366   : > { %4740 = dma.done.wait (!%p4048_p2), %s3515_s14, 16  }
 0x367   : > { %4742 = vsyncadd (!%p4048_p2), %s3515_s14, 4294967280  ;;  %p15_p3 = scmp.ge.s32.totalorder %s4817_s24, 4   ;;  %s6242_s18 = smov %s4749_s19 }
 0x368   : > { %s6243_s19 = smov %s4753_s20  ;;  %s6244_s20 = smov %s4828_s27 }
 0x369   : > { %s6245_s21 = smov %s4817_s24  ;;  %17 = sbr.rel (!%p15_p3) target bundleno = 3 (0x3), region = 75 }
 0x370   :  { %3519 = vsyncpa [#allocation3], 1 }
 0x371   :  { %3521 = vsyncpa [#allocation3 + $0x1], 1 }

</bundles_post_ra>
